<compile_context>
chip_gen: v6e
topology: v6e:2x2x1
jax: 0.10.0
libtpu: 0.0.40
codegen_flags: <defaults>
</compile_context>

<pallas_src>
import functools

import jax
import jax.numpy as jnp
from jax.experimental import pallas as pl
from jax.experimental.pallas import tpu as pltpu

_LANE = 128


def _round_up(x, m):
    return ((x + m - 1) // m) * m


def _vmem_capacity_bytes():
    """Best-effort VMEM capacity query; falls back to a v7x-sized 64 MiB."""
    try:
        info = pltpu.get_tpu_info()
        cap = getattr(info, "vmem_capacity_bytes", None)
        if cap:
            return int(cap)
    except Exception:
        pass
    return 64 * 1024 * 1024


def _elu(x):
    # ELU(alpha=1): x if x > 0 else exp(x) - 1   (clamp arg of exp for safety)
    return jnp.where(x > 0, x, jnp.exp(jnp.minimum(x, 0.0)) - 1.0)


# ----------------------------------------------------------------------------
# Conv block kernels
# ----------------------------------------------------------------------------
def _build_patch(xp_ref, patch_ref, row0, RH, W, cin):
    """Build im2col rows for output rows [row0, row0+RH).

    Compact packing: tap t = kh*3 + kw occupies lanes [t*cin, (t+1)*cin) of the
    patch; lanes >= 9*cin are zeroed so the (zero) weight tail cannot multiply
    uninitialized VMEM.
    """
    K = patch_ref.shape[-1]
    rows = RH * W
    if K > 9 * cin:
        patch_ref[:, 9 * cin:] = jnp.zeros((rows, K - 9 * cin),
                                           patch_ref.dtype)
    for kh in range(3):
        for kw in range(3):
            t = kh * 3 + kw
            sl = xp_ref[0, row0 + kh:row0 + kh + RH, kw:kw + W, :cin]
            patch_ref[:, t * cin:(t + 1) * cin] = (
                sl.reshape(rows, cin).astype(patch_ref.dtype))


def _avg_pool_2x2(act, RH, W, pw):
    """2x2 stride-2 average pool of f32 (RH*W, C) row-major activations."""
    C = act.shape[-1]
    RHh, Wh = RH // 2, W // 2
    # Vertical pairs are whole W-row blocks apart: regroup + VPU add.
    v = act.reshape(RHh, 2 * W, C)
    v = v[:, :W, :] + v[:, W:, :]                      # (RHh, W, C)
    # Horizontal pairs via a tiny shared (Wh, W) 0.25-selection matmul.
    pwb = jnp.broadcast_to(pw[None], (RHh, Wh, W))
    return jnp.einsum('auw,awc->auc', pwb, v,
                      preferred_element_type=jnp.float32)   # (RHh, Wh, C)


def _conv_block_kernel(xp_ref, w_ref, b_ref, pw_ref, o_ref, patch_ref, *,
                       H, W, cin, n_chunk, cache_patch):
    RH = H // n_chunk
    RHh, Wh = RH // 2, W // 2
    # Zero the whole halo-padded output block (the 1-px border stays zero and
    # serves as the next block's 'same' padding); the interior is overwritten.
    o_ref[...] = jnp.zeros(o_ref.shape, o_ref.dtype)
    for c in range(n_chunk):
        if cache_patch:
            # The patch only depends on the batch index; the cout-tile axis is
            # innermost + "arbitrary", so the scratch persists across it.
            @pl.when(pl.program_id(1) == 0)
            def _build():
                _build_patch(xp_ref, patch_ref, 0, RH, W, cin)
        else:
            _build_patch(xp_ref, patch_ref, c * RH, RH, W, cin)
        acc = jnp.dot(patch_ref[...], w_ref[...],
                      preferred_element_type=jnp.float32)    # (RH*W, Ct) f32
        acc = _elu(acc + b_ref[...])
        pooled = _avg_pool_2x2(acc, RH, W, pw_ref[...])       # (RHh, Wh, Ct)
        o_ref[0, 1 + c * RHh:1 + (c + 1) * RHh, 1:1 + Wh, :] = (
            pooled.astype(o_ref.dtype))


def _conv_block_reduce_kernel(xp_ref, w_ref, b_ref, o_ref, patch_ref, *,
                              H, W, cin, n_chunk, cache_patch):
    # Final block: AvgPool2d(2,2) followed by a global spatial mean equals the
    # global mean over all H*W pixels (H, W even), so the pool is skipped and
    # the (1, Ct) spatial mean is emitted directly (sublane reduce, no matmul).
    Ct = w_ref.shape[-1]
    RH = H // n_chunk
    total = jnp.zeros((1, Ct), jnp.float32)
    for c in range(n_chunk):
        if cache_patch:
            @pl.when(pl.program_id(1) == 0)
            def _build():
                _build_patch(xp_ref, patch_ref, 0, RH, W, cin)
        else:
            _build_patch(xp_ref, patch_ref, c * RH, RH, W, cin)
        acc = jnp.dot(patch_ref[...], w_ref[...],
                      preferred_element_type=jnp.float32)
        acc = _elu(acc + b_ref[...])
        total = total + jnp.sum(acc, axis=0, keepdims=True)
    o_ref[0] = (total * (1.0 / (H * W))).astype(o_ref.dtype)


def conv_block(x, w9, b, *, cin, reduce_spatial=False, input_has_halo=False,
               compute_dtype=jnp.bfloat16):
    """One ConvBlock: 3x3 'same' conv + bias + ELU + 2x2 avg pool.

    x: if input_has_halo: (B, H+2, W+2, Cx) spatially zero-padded activation in
       `compute_dtype` with real channels in [0, cin) (extra lanes are zero);
       otherwise the raw (B, H, W, Cx) NHWC input (padded/cast here).
    w9: (9, cin, cout) taps flattened as kh*3 + kw.   b: (1, cout)
    Returns:
       reduce_spatial: (B, Cout_p) f32 global spatial mean features.
       otherwise: (B, H//2+2, W//2+2, Cout_p) `compute_dtype`, pooled output
       written at offset (1, 1) with a zero 1-px halo border.
    """
    cout = w9.shape[2]
    assert w9.shape[0] == 9 and w9.shape[1] == cin
    if input_has_halo:
        B, Hp2, Wp2, Cx = x.shape
        H, W = Hp2 - 2, Wp2 - 2
        xp = x
    else:
        B, H, W, Cx = x.shape
        xp = jnp.pad(x, ((0, 0), (1, 1), (1, 1), (0, 0))).astype(compute_dtype)
    assert H % 2 == 0 and W % 2 == 0, "2x2 pool needs even spatial dims"
    assert Cx >= cin
    Hh, Wh = H // 2, W // 2

    # Compact contraction packing: tap t -> rows [t*cin, (t+1)*cin) of w.
    K = _round_up(9 * cin, _LANE)
    Cout_p = _round_up(cout, _LANE)
    w_p = jnp.zeros((K, Cout_p), jnp.float32)
    w_p = w_p.at[:9 * cin, :cout].set(
        w9.astype(jnp.float32).reshape(9 * cin, cout))
    w_p = w_p.astype(compute_dtype)
    b_p = jnp.zeros((1, Cout_p), jnp.float32).at[:, :cout].set(
        b.astype(jnp.float32))

    # ---- generation-aware tiling / VMEM budget ----
    cbytes = jnp.dtype(compute_dtype).itemsize
    cap = _vmem_capacity_bytes()
    budget = int(cap * 0.75)            # ~48 MiB on v7x, ~96 MiB on v5e/v6e
    max_tile = 1024 if budget >= 80 * 2 ** 20 else 512
    cout_tile = _LANE
    while Cout_p % (2 * cout_tile) == 0 and 2 * cout_tile <= max_tile:
        cout_tile *= 2

    def vmem_est(ct, rh):
        inp = (H + 2) * (W + 2) * Cx * cbytes * 2          # double buffered
        wgt = (K + 1) * ct * cbytes * 2
        outb = (ct * 4 * 2 if reduce_spatial
                else (Hh + 2) * (Wh + 2) * ct * cbytes * 2)
        patch = rh * W * K * cbytes
        work = rh * W * ct * 4 * 2                          # acc + temporaries
        return inp + wgt + outb + patch + work

    # Row-chunk the im2col build so the patch scratch fits the budget.
    rh_cands = [d for d in range(H, 0, -1) if H % d == 0 and d % 2 == 0]
    RH = rh_cands[-1]
    for d in rh_cands:
        if vmem_est(cout_tile, d) <= budget:
            RH = d
            break
    while cout_tile > _LANE and vmem_est(cout_tile, RH) > budget:
        cout_tile //= 2
    n_ct = Cout_p // cout_tile
    n_chunk = H // RH

    # Weight-resident grid order for weight-dominated blocks: batch innermost
    # so each (K, cout_tile) weight tile is fetched once instead of B times.
    weight_resident = (
        n_ct > 1 and B > 1 and
        K * cout_tile * cbytes > (H + 2) * (W + 2) * Cx * cbytes)
    cache_patch = (not weight_resident) and n_chunk == 1

    kern_fn = _conv_block_reduce_kernel if reduce_spatial else _conv_block_kernel
    kern = functools.partial(kern_fn, H=H, W=W, cin=cin,
                             n_chunk=n_chunk, cache_patch=cache_patch)

    if weight_resident:
        grid = (n_ct, B)
        xp_map = lambda j, i: (i, 0, 0, 0)
        wb_map = lambda j, i: (0, j)
        pw_map = lambda j, i: (0, 0)
        o4_map = lambda j, i: (i, 0, 0, j)
        o3_map = lambda j, i: (i, 0, j)
        semantics = ("arbitrary", "parallel")
    else:
        grid = (B, n_ct)
        xp_map = lambda i, j: (i, 0, 0, 0)
        wb_map = lambda i, j: (0, j)
        pw_map = lambda i, j: (0, 0)
        o4_map = lambda i, j: (i, 0, 0, j)
        o3_map = lambda i, j: (i, 0, j)
        # cout axis must be "arbitrary": the cached im2col scratch is carried
        # across it (megacore parallelism stays on the batch axis).
        semantics = ("parallel", "arbitrary")

    in_specs = [
        pl.BlockSpec((1, H + 2, W + 2, Cx), xp_map),
        pl.BlockSpec((K, cout_tile), wb_map),
        pl.BlockSpec((1, cout_tile), wb_map),
    ]
    operands = [xp, w_p, b_p]
    if not reduce_spatial:
        u = jnp.arange(Wh)[:, None]
        ww = jnp.arange(W)[None, :]
        pw = jnp.where((ww == 2 * u) | (ww == 2 * u + 1), 0.25,
                       0.0).astype(jnp.float32)
        in_specs.append(pl.BlockSpec((Wh, W), pw_map))
        operands.append(pw)

    params = pltpu.CompilerParams(dimension_semantics=semantics,
                                  vmem_limit_bytes=budget)
    scratch = [pltpu.VMEM((RH * W, K), compute_dtype)]

    if reduce_spatial:
        out = pl.pallas_call(
            kern,
            out_shape=jax.ShapeDtypeStruct((B, 1, Cout_p), jnp.float32),
            grid=grid,
            in_specs=in_specs,
            out_specs=pl.BlockSpec((1, 1, cout_tile), o3_map),
            scratch_shapes=scratch,
            compiler_params=params,
        )(*operands)
        return out[:, 0, :]

    out = pl.pallas_call(
        kern,
        out_shape=jax.ShapeDtypeStruct((B, Hh + 2, Wh + 2, Cout_p),
                                       compute_dtype),
        grid=grid,
        in_specs=in_specs,
        out_specs=pl.BlockSpec((1, Hh + 2, Wh + 2, cout_tile), o4_map),
        scratch_shapes=scratch,
        compiler_params=params,
    )(*operands)
    return out


# ----------------------------------------------------------------------------
# Head kernel: GroupNorm(1 group, affine folded into Linear1) -> Linear ->
# ELU -> Linear (n_classes padded to 128 for a lane-dense store).
# ----------------------------------------------------------------------------
def _head_kernel(f_ref, w1_ref, b1_ref, w2_ref, b2_ref, o_ref):
    feat = f_ref[...]                                      # (B, C) f32
    mu = jnp.mean(feat, axis=-1, keepdims=True)
    var = jnp.mean((feat - mu) ** 2, axis=-1, keepdims=True)
    xh = (feat - mu) * jax.lax.rsqrt(var + 1e-5)
    h = jnp.dot(xh, w1_ref[...], preferred_element_type=jnp.float32) + b1_ref[...]
    h = _elu(h)
    logits = jnp.dot(h, w2_ref[...],
                     preferred_element_type=jnp.float32) + b2_ref[...]
    o_ref[...] = logits.astype(o_ref.dtype)


def head(feat, gamma, beta, w1, b1, w2, b2):
    B, C = feat.shape
    n_classes = w2.shape[-1]
    Np = _round_up(n_classes, _LANE)
    # Fold the GroupNorm affine into the first Linear: (x*g + bt) @ w1 + b1.
    w1f = gamma.reshape(C, 1) * w1
    b1f = beta @ w1 + b1
    w2p = jnp.zeros((C, Np), jnp.float32).at[:, :n_classes].set(w2)
    b2p = jnp.zeros((1, Np), jnp.float32).at[:, :n_classes].set(b2)
    out = pl.pallas_call(
        _head_kernel,
        out_shape=jax.ShapeDtypeStruct((B, Np), jnp.float32),
        grid=(1,),
        in_specs=[
            pl.BlockSpec((B, C), lambda i: (0, 0)),
            pl.BlockSpec((C, C), lambda i: (0, 0)),
            pl.BlockSpec((1, C), lambda i: (0, 0)),
            pl.BlockSpec((C, Np), lambda i: (0, 0)),
            pl.BlockSpec((1, Np), lambda i: (0, 0)),
        ],
        out_specs=pl.BlockSpec((B, Np), lambda i: (0, 0)),
    )(feat.astype(jnp.float32), w1f, b1f, w2p, b2p)
    return out[:, :n_classes]


# ----------------------------------------------------------------------------
# Parameter init + full forward (+ pure-JAX f32 reference for validation)
# ----------------------------------------------------------------------------
def init_params(key, in_channels, out_channels, n_classes):
    keys = jax.random.split(key, 4 * len(out_channels) + 8)
    conv_params = []
    cin = in_channels
    ki = 0
    for cout in out_channels:
        w = 0.1 * jax.random.normal(keys[ki], (9, cin, cout), jnp.float32)
        b = 0.1 * jax.random.normal(keys[ki + 1], (1, cout), jnp.float32)
        conv_params.append((w, b))
        cin = cout
        ki += 2
    C = out_channels[-1]
    gamma = 1.0 + 0.1 * jax.random.normal(keys[ki], (1, C), jnp.float32)
    beta = 0.1 * jax.random.normal(keys[ki + 1], (1, C), jnp.float32)
    w1 = 0.1 * jax.random.normal(keys[ki + 2], (C, C), jnp.float32)
    b1 = 0.1 * jax.random.normal(keys[ki + 3], (1, C), jnp.float32)
    w2 = 0.1 * jax.random.normal(keys[ki + 4], (C, n_classes), jnp.float32)
    b2 = 0.1 * jax.random.normal(keys[ki + 5], (1, n_classes), jnp.float32)
    return conv_params, (gamma, beta, w1, b1, w2, b2)


def pann_like_forward(x_nchw, params, *, compute_dtype=jnp.bfloat16):
    conv_params, head_params = params
    z = jnp.transpose(x_nchw, (0, 2, 3, 1))                # NCHW -> NHWC
    n = len(conv_params)
    has_halo = False
    for bi, (w, b) in enumerate(conv_params):
        z = conv_block(z, w, b, cin=w.shape[1],
                       reduce_spatial=(bi == n - 1),
                       input_has_halo=has_halo,
                       compute_dtype=compute_dtype)
        has_halo = True
    C = conv_params[-1][0].shape[2]
    feat = z[:, :C]                                        # drop lane padding
    return head(feat, *head_params)


def reference_forward(x_nchw, params):
    conv_params, (gamma, beta, w1, b1, w2, b2) = params
    z = jnp.transpose(x_nchw, (0, 2, 3, 1))
    for (w, b) in conv_params:
        cin, cout = w.shape[1], w.shape[2]
        w_hwio = w.reshape(3, 3, cin, cout)
        z = jax.lax.conv_general_dilated(
            z, w_hwio, window_strides=(1, 1), padding="SAME",
            dimension_numbers=("NHWC", "HWIO", "NHWC")) + b.reshape(1, 1, 1, cout)
        z = _elu(z)
        B, Hc, Wc, C = z.shape
        z = z.reshape(B, Hc // 2, 2, Wc // 2, 2, C).mean(axis=(2, 4))
    feat = z.mean(axis=(1, 2))
    mu = feat.mean(axis=-1, keepdims=True)
    var = ((feat - mu) ** 2).mean(axis=-1, keepdims=True)
    h = (feat - mu) / jnp.sqrt(var + 1e-5) * gamma + beta
    h = _elu(h @ w1 + b1)
    return h @ w2 + b2


if __name__ == "__main__":
    key = jax.random.PRNGKey(0)
    k_x, k_p = jax.random.split(key)

    # small, forward-consistent shapes
    B, in_channels, n_mels, time = 2, 4, 16, 16
    out_channels = (8, 16)
    n_classes = 5

    x = jax.random.normal(k_x, (B, in_channels, n_mels, time), jnp.float32)
    params = init_params(k_p, in_channels, out_channels, n_classes)

    logits = jax.block_until_ready(pann_like_forward(x, params))
    assert logits.shape == (B, n_classes), logits.shape

    ref = reference_forward(x, params)
    # bf16 MXU operands / bf16 inter-block activations -> loose tolerance.
    err_bf16 = float(jnp.max(jnp.abs(logits - ref)))
    assert jnp.allclose(logits, ref, rtol=5e-2, atol=5e-2), err_bf16

    # Tighter validation with f32 operands end-to-end (same kernels, f32 path).
    logits_f32 = jax.block_until_ready(
        pann_like_forward(x, params, compute_dtype=jnp.float32))
    err_f32 = float(jnp.max(jnp.abs(logits_f32 - ref)))
    assert jnp.allclose(logits_f32, ref, rtol=1e-2, atol=1e-2), err_f32

    print("KERNEL_OK")
</pallas_src>

<mosaic_0001>
module attributes {stable_mosaic.version = 11 : i64} {
  func.func @_conv_block_kernel(%arg0: i32, %arg1: i32, %arg2: memref<1x18x18x4xbf16, #tpu.memory_space<vmem>>, %arg3: memref<128x128xbf16, #tpu.memory_space<vmem>>, %arg4: memref<1x128xf32, #tpu.memory_space<vmem>>, %arg5: memref<8x16xf32, #tpu.memory_space<vmem>>, %arg6: memref<1x10x10x128xbf16, #tpu.memory_space<vmem>>, %arg7: memref<256x128xbf16, #tpu.memory_space<vmem>>) attributes {dimension_semantics = [#tpu.dimension_semantics<parallel>, #tpu.dimension_semantics<arbitrary>], iteration_bounds = array<i64: 2, 1>, scalar_prefetch = 0 : i64, scratch_operands = 1 : i64, tpu.core_type = #tpu.core_type<tc>, window_params = [{transform_indices = @transform_0, window_bounds = array<i64: 1, 18, 18, 4>}, {transform_indices = @transform_1, window_bounds = array<i64: 128, 128>}, {transform_indices = @transform_2, window_bounds = array<i64: 1, 128>}, {pipeline_mode = #tpu.pipeline_mode<synchronous>, transform_indices = @transform_3, window_bounds = array<i64: 8, 16>}, {transform_indices = @transform_4, window_bounds = array<i64: 1, 10, 10, 128>}]} {
    %cst = arith.constant 0.000000e+00 : bf16
    %0 = vector.broadcast %cst : bf16 to vector<1x10x10x128xbf16>
    %c0 = arith.constant 0 : index
    %c0_0 = arith.constant 0 : index
    %c0_1 = arith.constant 0 : index
    %c0_2 = arith.constant 0 : index
    %1 = vector.load %arg6[%c0, %c0_0, %c0_1, %c0_2] : memref<1x10x10x128xbf16, #tpu.memory_space<vmem>>, vector<1x10x10x128xbf16>
    tpu.vector_store %arg6[%c0, %c0_0, %c0_1, %c0_2], %0 {strides = array<i32>} : memref<1x10x10x128xbf16, #tpu.memory_space<vmem>>, vector<1x10x10x128xbf16>,
    %c0_i32 = arith.constant 0 : i32
    %2 = arith.cmpi eq, %arg1, %c0_i32 : i32
    %3 = arith.extui %2 : i1 to i32
    %c0_i32_3 = arith.constant 0 : i32
    %4 = arith.cmpi ne, %3, %c0_i32_3 : i32
    scf.if %4 {
      %cst_20 = arith.constant 0.000000e+00 : bf16
      %32 = vector.broadcast %cst_20 : bf16 to vector<256x92xbf16>
      %c0_21 = arith.constant 0 : index
      %c36 = arith.constant 36 : index
      %33 = vector.load %arg7[%c0_21, %c36] : memref<256x128xbf16, #tpu.memory_space<vmem>>, vector<256x92xbf16>
      tpu.vector_store %arg7[%c0_21, %c36], %32 {strides = array<i32>} : memref<256x128xbf16, #tpu.memory_space<vmem>>, vector<256x92xbf16>,
      %c0_22 = arith.constant 0 : index
      %c0_23 = arith.constant 0 : index
      %c0_24 = arith.constant 0 : index
      %c0_25 = arith.constant 0 : index
      %34 = vector.load %arg2[%c0_22, %c0_23, %c0_24, %c0_25] : memref<1x18x18x4xbf16, #tpu.memory_space<vmem>>, vector<1x16x16x4xbf16>
      %35 = vector.shape_cast %34 : vector<1x16x16x4xbf16> to vector<16x16x4xbf16>
      %36 = vector.shape_cast %35 : vector<16x16x4xbf16> to vector<256x4xbf16>
      %c0_26 = arith.constant 0 : index
      %c0_27 = arith.constant 0 : index
      %37 = vector.load %arg7[%c0_26, %c0_27] : memref<256x128xbf16, #tpu.memory_space<vmem>>, vector<256x4xbf16>
      tpu.vector_store %arg7[%c0_26, %c0_27], %36 {strides = array<i32>} : memref<256x128xbf16, #tpu.memory_space<vmem>>, vector<256x4xbf16>,
      %c0_28 = arith.constant 0 : index
      %c0_29 = arith.constant 0 : index
      %c1_30 = arith.constant 1 : index
      %c0_31 = arith.constant 0 : index
      %38 = vector.load %arg2[%c0_28, %c0_29, %c1_30, %c0_31] : memref<1x18x18x4xbf16, #tpu.memory_space<vmem>>, vector<1x16x16x4xbf16>
      %39 = vector.shape_cast %38 : vector<1x16x16x4xbf16> to vector<16x16x4xbf16>
      %40 = vector.shape_cast %39 : vector<16x16x4xbf16> to vector<256x4xbf16>
      %c0_32 = arith.constant 0 : index
      %c4 = arith.constant 4 : index
      %41 = vector.load %arg7[%c0_32, %c4] : memref<256x128xbf16, #tpu.memory_space<vmem>>, vector<256x4xbf16>
      tpu.vector_store %arg7[%c0_32, %c4], %40 {strides = array<i32>} : memref<256x128xbf16, #tpu.memory_space<vmem>>, vector<256x4xbf16>,
      %c0_33 = arith.constant 0 : index
      %c0_34 = arith.constant 0 : index
      %c2 = arith.constant 2 : index
      %c0_35 = arith.constant 0 : index
      %42 = vector.load %arg2[%c0_33, %c0_34, %c2, %c0_35] : memref<1x18x18x4xbf16, #tpu.memory_space<vmem>>, vector<1x16x16x4xbf16>
      %43 = vector.shape_cast %42 : vector<1x16x16x4xbf16> to vector<16x16x4xbf16>
      %44 = vector.shape_cast %43 : vector<16x16x4xbf16> to vector<256x4xbf16>
      %c0_36 = arith.constant 0 : index
      %c8 = arith.constant 8 : index
      %45 = vector.load %arg7[%c0_36, %c8] : memref<256x128xbf16, #tpu.memory_space<vmem>>, vector<256x4xbf16>
      tpu.vector_store %arg7[%c0_36, %c8], %44 {strides = array<i32>} : memref<256x128xbf16, #tpu.memory_space<vmem>>, vector<256x4xbf16>,
      %c0_37 = arith.constant 0 : index
      %c1_38 = arith.constant 1 : index
      %c0_39 = arith.constant 0 : index
      %c0_40 = arith.constant 0 : index
      %46 = vector.load %arg2[%c0_37, %c1_38, %c0_39, %c0_40] : memref<1x18x18x4xbf16, #tpu.memory_space<vmem>>, vector<1x16x16x4xbf16>
      %47 = vector.shape_cast %46 : vector<1x16x16x4xbf16> to vector<16x16x4xbf16>
      %48 = vector.shape_cast %47 : vector<16x16x4xbf16> to vector<256x4xbf16>
      %c0_41 = arith.constant 0 : index
      %c12 = arith.constant 12 : index
      %49 = vector.load %arg7[%c0_41, %c12] : memref<256x128xbf16, #tpu.memory_space<vmem>>, vector<256x4xbf16>
      tpu.vector_store %arg7[%c0_41, %c12], %48 {strides = array<i32>} : memref<256x128xbf16, #tpu.memory_space<vmem>>, vector<256x4xbf16>,
      %c0_42 = arith.constant 0 : index
      %c1_43 = arith.constant 1 : index
      %c1_44 = arith.constant 1 : index
      %c0_45 = arith.constant 0 : index
      %50 = vector.load %arg2[%c0_42, %c1_43, %c1_44, %c0_45] : memref<1x18x18x4xbf16, #tpu.memory_space<vmem>>, vector<1x16x16x4xbf16>
      %51 = vector.shape_cast %50 : vector<1x16x16x4xbf16> to vector<16x16x4xbf16>
      %52 = vector.shape_cast %51 : vector<16x16x4xbf16> to vector<256x4xbf16>
      %c0_46 = arith.constant 0 : index
      %c16 = arith.constant 16 : index
      %53 = vector.load %arg7[%c0_46, %c16] : memref<256x128xbf16, #tpu.memory_space<vmem>>, vector<256x4xbf16>
      tpu.vector_store %arg7[%c0_46, %c16], %52 {strides = array<i32>} : memref<256x128xbf16, #tpu.memory_space<vmem>>, vector<256x4xbf16>,
      %c0_47 = arith.constant 0 : index
      %c1_48 = arith.constant 1 : index
      %c2_49 = arith.constant 2 : index
      %c0_50 = arith.constant 0 : index
      %54 = vector.load %arg2[%c0_47, %c1_48, %c2_49, %c0_50] : memref<1x18x18x4xbf16, #tpu.memory_space<vmem>>, vector<1x16x16x4xbf16>
      %55 = vector.shape_cast %54 : vector<1x16x16x4xbf16> to vector<16x16x4xbf16>
      %56 = vector.shape_cast %55 : vector<16x16x4xbf16> to vector<256x4xbf16>
      %c0_51 = arith.constant 0 : index
      %c20 = arith.constant 20 : index
      %57 = vector.load %arg7[%c0_51, %c20] : memref<256x128xbf16, #tpu.memory_space<vmem>>, vector<256x4xbf16>
      tpu.vector_store %arg7[%c0_51, %c20], %56 {strides = array<i32>} : memref<256x128xbf16, #tpu.memory_space<vmem>>, vector<256x4xbf16>,
      %c0_52 = arith.constant 0 : index
      %c2_53 = arith.constant 2 : index
      %c0_54 = arith.constant 0 : index
      %c0_55 = arith.constant 0 : index
      %58 = vector.load %arg2[%c0_52, %c2_53, %c0_54, %c0_55] : memref<1x18x18x4xbf16, #tpu.memory_space<vmem>>, vector<1x16x16x4xbf16>
      %59 = vector.shape_cast %58 : vector<1x16x16x4xbf16> to vector<16x16x4xbf16>
      %60 = vector.shape_cast %59 : vector<16x16x4xbf16> to vector<256x4xbf16>
      %c0_56 = arith.constant 0 : index
      %c24 = arith.constant 24 : index
      %61 = vector.load %arg7[%c0_56, %c24] : memref<256x128xbf16, #tpu.memory_space<vmem>>, vector<256x4xbf16>
      tpu.vector_store %arg7[%c0_56, %c24], %60 {strides = array<i32>} : memref<256x128xbf16, #tpu.memory_space<vmem>>, vector<256x4xbf16>,
      %c0_57 = arith.constant 0 : index
      %c2_58 = arith.constant 2 : index
      %c1_59 = arith.constant 1 : index
      %c0_60 = arith.constant 0 : index
      %62 = vector.load %arg2[%c0_57, %c2_58, %c1_59, %c0_60] : memref<1x18x18x4xbf16, #tpu.memory_space<vmem>>, vector<1x16x16x4xbf16>
      %63 = vector.shape_cast %62 : vector<1x16x16x4xbf16> to vector<16x16x4xbf16>
      %64 = vector.shape_cast %63 : vector<16x16x4xbf16> to vector<256x4xbf16>
      %c0_61 = arith.constant 0 : index
      %c28 = arith.constant 28 : index
      %65 = vector.load %arg7[%c0_61, %c28] : memref<256x128xbf16, #tpu.memory_space<vmem>>, vector<256x4xbf16>
      tpu.vector_store %arg7[%c0_61, %c28], %64 {strides = array<i32>} : memref<256x128xbf16, #tpu.memory_space<vmem>>, vector<256x4xbf16>,
      %c0_62 = arith.constant 0 : index
      %c2_63 = arith.constant 2 : index
      %c2_64 = arith.constant 2 : index
      %c0_65 = arith.constant 0 : index
      %66 = vector.load %arg2[%c0_62, %c2_63, %c2_64, %c0_65] : memref<1x18x18x4xbf16, #tpu.memory_space<vmem>>, vector<1x16x16x4xbf16>
      %67 = vector.shape_cast %66 : vector<1x16x16x4xbf16> to vector<16x16x4xbf16>
      %68 = vector.shape_cast %67 : vector<16x16x4xbf16> to vector<256x4xbf16>
      %c0_66 = arith.constant 0 : index
      %c32 = arith.constant 32 : index
      %69 = vector.load %arg7[%c0_66, %c32] : memref<256x128xbf16, #tpu.memory_space<vmem>>, vector<256x4xbf16>
      tpu.vector_store %arg7[%c0_66, %c32], %68 {strides = array<i32>} : memref<256x128xbf16, #tpu.memory_space<vmem>>, vector<256x4xbf16>,
    } else {
    }
    %c0_4 = arith.constant 0 : index
    %c0_5 = arith.constant 0 : index
    %5 = vector.load %arg7[%c0_4, %c0_5] : memref<256x128xbf16, #tpu.memory_space<vmem>>, vector<256x128xbf16>
    %c0_6 = arith.constant 0 : index
    %c0_7 = arith.constant 0 : index
    %6 = vector.load %arg3[%c0_6, %c0_7] : memref<128x128xbf16, #tpu.memory_space<vmem>>, vector<128x128xbf16>
    %cst_8 = arith.constant dense<0.000000e+00> : vector<256x128xf32>
    %7 = tpu.matmul %5, %6, %cst_8 {dimension_numbers = #tpu.dot_dimension_numbers<[1], [0], [0], [1], [0, 0, 1, 1], [], []>} : vector<256x128xbf16>, vector<128x128xbf16>, vector<256x128xf32> -> vector<256x128xf32>
    %c0_9 = arith.constant 0 : index
    %c0_10 = arith.constant 0 : index
    %8 = vector.load %arg4[%c0_9, %c0_10] : memref<1x128xf32, #tpu.memory_space<vmem>>, vector<1x128xf32>
    %9 = vector.broadcast %8 : vector<1x128xf32> to vector<256x128xf32>
    %10 = arith.addf %7, %9 : vector<256x128xf32>
    %cst_11 = arith.constant 0.000000e+00 : f32
    %11 = vector.broadcast %cst_11 : f32 to vector<256x128xf32>
    %12 = arith.cmpf ogt, %10, %11 : vector<256x128xf32>
    %cst_12 = arith.constant 0.000000e+00 : f32
    %13 = vector.broadcast %cst_12 : f32 to vector<256x128xf32>
    %14 = arith.minimumf %10, %13 : vector<256x128xf32>
    %15 = math.exp %14 : vector<256x128xf32>
    %cst_13 = arith.constant 1.000000e+00 : f32
    %16 = vector.broadcast %cst_13 : f32 to vector<256x128xf32>
    %17 = arith.subf %15, %16 : vector<256x128xf32>
    %18 = arith.select %12, %10, %17 : vector<256x128xi1>, vector<256x128xf32>
    %c0_14 = arith.constant 0 : index
    %c0_15 = arith.constant 0 : index
    %19 = vector.load %arg5[%c0_14, %c0_15] : memref<8x16xf32, #tpu.memory_space<vmem>>, vector<8x16xf32>
    %20 = vector.shape_cast %18 : vector<256x128xf32> to vector<8x32x128xf32>
    %21 = vector.extract_strided_slice %20 {offsets = [0, 0, 0], sizes = [8, 16, 128], strides = [1, 1, 1]} : vector<8x32x128xf32> to vector<8x16x128xf32>
    %22 = vector.extract_strided_slice %20 {offsets = [0, 16, 0], sizes = [8, 16, 128], strides = [1, 1, 1]} : vector<8x32x128xf32> to vector<8x16x128xf32>
    %23 = arith.addf %21, %22 : vector<8x16x128xf32>
    %24 = vector.shape_cast %19 : vector<8x16xf32> to vector<1x8x16xf32>
    %25 = vector.shape_cast %24 : vector<1x8x16xf32> to vector<1x8x16xf32>
    %26 = vector.broadcast %25 : vector<1x8x16xf32> to vector<8x8x16xf32>
    "tpu.trace_start"() <{level = 10 : i32, message = "auw,awc->auc"}> : () -> ()
    %cst_16 = arith.constant dense<0.000000e+00> : vector<8x8x128xf32>
    %27 = tpu.matmul %26, %23, %cst_16 {dimension_numbers = #tpu.dot_dimension_numbers<[2], [1], [1], [2], [0, 0, 0, 1, 1, 2], [0], [0]>} : vector<8x8x16xf32>, vector<8x16x128xf32>, vector<8x8x128xf32> -> vector<8x8x128xf32>
    "tpu.trace_stop"() : () -> ()
    %28 = arith.truncf %27 : vector<8x8x128xf32> to vector<8x8x128xbf16>
    %c0_17 = arith.constant 0 : index
    %c1 = arith.constant 1 : index
    %c1_18 = arith.constant 1 : index
    %c0_19 = arith.constant 0 : index
    %29 = vector.load %arg6[%c0_17, %c1, %c1_18, %c0_19] : memref<1x10x10x128xbf16, #tpu.memory_space<vmem>>, vector<1x8x8x128xbf16>
    %30 = vector.shape_cast %29 : vector<1x8x8x128xbf16> to vector<8x8x128xbf16>
    %31 = vector.shape_cast %28 : vector<8x8x128xbf16> to vector<1x8x8x128xbf16>
    tpu.vector_store %arg6[%c0_17, %c1, %c1_18, %c0_19], %31 {strides = array<i32>} : memref<1x10x10x128xbf16, #tpu.memory_space<vmem>>, vector<1x8x8x128xbf16>,
    return
  }
  func.func @transform_0(%arg0: i32, %arg1: i32) -> (i32, i32, i32, i32) {
    %c0_i32 = arith.constant 0 : i32
    %c0_i32_0 = arith.constant 0 : i32
    %c0_i32_1 = arith.constant 0 : i32
    %c0_i32_2 = arith.constant 0 : i32
    return %arg0, %c0_i32, %c0_i32_0, %c0_i32_1 : i32, i32, i32, i32
  }
  func.func @transform_1(%arg0: i32, %arg1: i32) -> (i32, i32) {
    %c0_i32 = arith.constant 0 : i32
    %c0_i32_0 = arith.constant 0 : i32
    return %c0_i32, %arg1 : i32, i32
  }
  func.func @transform_2(%arg0: i32, %arg1: i32) -> (i32, i32) {
    %c0_i32 = arith.constant 0 : i32
    %c0_i32_0 = arith.constant 0 : i32
    return %c0_i32, %arg1 : i32, i32
  }
  func.func @transform_3(%arg0: i32, %arg1: i32) -> (i32, i32) {
    %c0_i32 = arith.constant 0 : i32
    %c0_i32_0 = arith.constant 0 : i32
    %c0_i32_1 = arith.constant 0 : i32
    return %c0_i32, %c0_i32_0 : i32, i32
  }
  func.func @transform_4(%arg0: i32, %arg1: i32) -> (i32, i32, i32, i32) {
    %c0_i32 = arith.constant 0 : i32
    %c0_i32_0 = arith.constant 0 : i32
    %c0_i32_1 = arith.constant 0 : i32
    return %arg0, %c0_i32, %c0_i32_0, %arg1 : i32, i32, i32, i32
  }
}

</mosaic_0001>

<bundles_post_ra>
// kernel: tpu_custom_call.1
= control target key start
LH: loop header
LB: loop body
LE: loop exit
PB: predicated region body
PF: predicated region fallthrough
CT: control target
= control target key end

     0   :  { %s5646_s15 = smov 0   ;;  %s5648_s16 = smov 0   ;;  %s7565_s0 = inlined_call_operand.vmem [shape: bf16[2,18,18,4], index: 0, kind: input, shape index: {}]   ;;  %s7566_s1 = inlined_call_operand.vmem [shape: bf16[128,128], index: 1, kind: input, shape index: {}]   ;;  %s7567_s2 = inlined_call_operand.vmem [shape: f32[1,128], index: 2, kind: input, shape index: {}]   ;;  %s7568_s3 = inlined_call_operand.vmem [shape: f32[8,16], index: 3, kind: input, shape index: {}]   ;;  %s7569_s4 = inlined_call_operand.vmem [shape: bf16[2,10,10,128], index: 4, kind: output, shape index: {}]  }
   0x1   :  { %s5650_s17 = smov 0  }
   0x2 LB: > { %s26_s18 = sadd.s32 1, %s5604_s16  ;;  %p4871_p0 = scmp.ge.s32.totalorder %s5608_s17, 1  ;;  %s5608_s17 = sphi %s5650_s17, %s14_s17   ;;  %s5604_s16 = sphi %s5648_s16, %s7579_s16   ;;  %s5600_s15 = sphi %s5646_s15, %s7578_s15  }
   0x3   : > { %p28_p1 = scmp.ge.s32.totalorder %s26_s18, 2  ;;  %p193_p2 = scmp.lt.s32.totalorder %s5608_s17, 3 }
   0x5   : > { %s7581_s18 = smov (%p28_p1, %s26_s18), 0  ;;  %p194_p3 = pnand %p4871_p0, %p193_p2 }
   0x6   : > { %p229_p4 = scmp.lt.s32.totalorder (!%p194_p3), %s5600_s15, 1  ;;  %s5611_s23 = smov (!%p194_p3), 12  }
   0x7   : > { %197 = sbr.rel (%p194_p3) target bundleno = 1089 (0x441), region = 36  ;;  %s5612_s24 = smov (!%p194_p3), 8  }
   0x8   : > { %s5613_s25 = smov (!%p194_p3), 4   ;;  %s5614_s26 = smov (!%p194_p3), 16  }
   0x9   : > { %s5615_s29 = smov (!%p194_p3), 20   ;;  %s5616_s8 = smov (!%p194_p3), 24  }
   0xa   : > { %s5617_s13 = smov (!%p194_p3), 28   ;;  %s5618_s27 = smov (!%p194_p3), 32  }
   0xc   : > { %s7583_s15 = smov (!%p229_p4, %s5600_s15), 1  ;;  %vm1032_vm0 = vcmask 1042432   ;;  %vm1033_vm1 = vcmask 1046532   ;;  %vm274_vm3 = vcmask 1043744   ;;  %vm420_vm4 = vsmask.f32 3328 }
   0xd   : > { %s5461_s19 = smul.u32 216, %s7583_s15  ;;  %vm5672_vm2 = vmor %vm1032_vm0, %vm1033_vm1  ;;  %vm421_vm5 = vsmask.f32 7440  ;;  %v5610_v4 = vmov 0   ;;  %vm339_vm7 = vcmask 27648   ;;  %vm903_vm8 = vcmask 60448  }
   0xe   : > { %277 = vst.msk [vmem:[#allocation2 + $0x8] sm:$0xf] %vm274_vm3, %v5610_v4  ;;  %275 = vst.msk [vmem:[#allocation2] sm:$0xf] %vm274_vm3, %v5610_v4  ;;  %vm1243_vm9 = vcmask 93248   ;;  %vm1437_vm10 = vcmask 126048  }
   0xf   : > { %s5670_s22 = scalar_lea.vmem %s7565_s0, %s5461_s19  ;;  %276 = vst.msk [vmem:[#allocation2 + $0x4] sm:$0xf] %vm274_vm3, %v5610_v4  ;;  %278 = vst.msk [vmem:[#allocation2 + $0xc] sm:$0xf] %vm274_vm3, %v5610_v4  ;;  %vm1998_vm11 = vcmask 158848   ;;  %vm2335_vm12 = vcmask 191648  }
  0x10   : > { %v4891_v1 = vld [vmem:[%s5670_s22 + $0x10] sm:$0xf]  ;;  %v936_v2 = vld [vmem:[%s5670_s22] sm:$0xe]  ;;  %v937_v3 = vld [vmem:[%s5670_s22 + $0x4] sm:$0xf] }
  0x11   : > { %279 = vst.msk [vmem:[#allocation2 + $0x10] sm:$0xf] %vm274_vm3, %v5610_v4  ;;  %280 = vst.msk [vmem:[#allocation2 + $0x14] sm:$0xf] %vm274_vm3, %v5610_v4  ;;  %1343 = vrot.lane.b32.xlu1 %v4891_v1, %s5611_s23  ;;  %v4874_v5 = vrot.slane %v936_v2, 9  ;;  %v1037_v6 = vrot.slane %v937_v3, 5 }
  0x12   : > { %281 = vst.msk [vmem:[#allocation2 + $0x18] sm:$0xf] %vm274_vm3, %v5610_v4  ;;  %282 = vst.msk [vmem:[#allocation2 + $0x1c] sm:$0xf] %vm274_vm3, %v5610_v4  ;;  %v938_v7 = vld [vmem:[%s5670_s22 + $0x8] sm:$0x1] }
  0x13   : > { %283 = vst.msk [vmem:[#allocation2 + $0x20] sm:$0xf] %vm274_vm3, %v5610_v4  ;;  %284 = vst.msk [vmem:[#allocation2 + $0x24] sm:$0xf] %vm274_vm3, %v5610_v4  ;;  %v939_v8 = vld [vmem:[%s5670_s22 + $0xc] sm:$0xe]  ;;  %v1038_v13 = vsel %vm5672_vm2, %v4874_v5, %v1037_v6 }
  0x14   : > { %285 = vst.msk [vmem:[#allocation2 + $0x28] sm:$0xf] %vm274_vm3, %v5610_v4  ;;  %286 = vst.msk [vmem:[#allocation2 + $0x2c] sm:$0xf] %vm274_vm3, %v5610_v4  ;;  %v1040_v9 = vrot.slane %v938_v7, 5  ;;  %v4875_v11 = vrot.slane %v939_v8, 9  ;;  %1147 = vrot.lane.b32.xlu0 %v1038_v13, %s5612_s24 }
  0x15   : > { %287 = vst.msk [vmem:[#allocation2 + $0x30] sm:$0xf] %vm274_vm3, %v5610_v4  ;;  %288 = vst.msk [vmem:[#allocation2 + $0x34] sm:$0xf] %vm274_vm3, %v5610_v4  ;;  %v940_v10 = vld [vmem:[%s5670_s22 + $0x10] sm:$0xf] }
  0x16   : > { %289 = vst.msk [vmem:[#allocation2 + $0x38] sm:$0xf] %vm274_vm3, %v5610_v4  ;;  %290 = vst.msk [vmem:[#allocation2 + $0x3c] sm:$0xf] %vm274_vm3, %v5610_v4  ;;  %v941_v12 = vld [vmem:[%s5670_s22 + $0x14] sm:$0x1] }
  0x17   : > { %291 = vst.msk [vmem:[#allocation2 + $0x40] sm:$0xf] %vm274_vm3, %v5610_v4  ;;  %292 = vst.msk [vmem:[#allocation2 + $0x44] sm:$0xf] %vm274_vm3, %v5610_v4  ;;  %v1039_v14 = vrot.slane %v1037_v6, 4  ;;  %v1044_v15 = vrot.slane %v940_v10, 5 }
  0x18   : > { %293 = vst.msk [vmem:[#allocation2 + $0x48] sm:$0xf] %vm274_vm3, %v5610_v4  ;;  %294 = vst.msk [vmem:[#allocation2 + $0x4c] sm:$0xf] %vm274_vm3, %v5610_v4  ;;  %v1047_v16 = vrot.slane %v941_v12, 5  ;;  %vm2529_vm13 = vcmask 224448  }
  0x19   : > { %295 = vst.msk [vmem:[#allocation2 + $0x50] sm:$0xf] %vm274_vm3, %v5610_v4  ;;  %296 = vst.msk [vmem:[#allocation2 + $0x54] sm:$0xf] %vm274_vm3, %v5610_v4  ;;  %v375_v17 = vld [vmem:[%s5670_s22 + $0xc] sm:$0xf]  ;;  %v1041_v20 = vsel %vm5672_vm2, %v1039_v14, %v1040_v9  ;;  %v1045_v21 = vsel %vm5672_vm2, %v4875_v11, %v1044_v15 }
  0x1a   : > { %297 = vst.msk [vmem:[#allocation2 + $0x58] sm:$0xf] %vm274_vm3, %v5610_v4  ;;  %298 = vst.msk [vmem:[#allocation2 + $0x5c] sm:$0xf] %vm274_vm3, %v5610_v4  ;;  %v376_v18 = vld [vmem:[%s5670_s22 + $0x10] sm:$0xf]  ;;  %1149 = vrot.lane.b32.xlu1 %v1041_v20, %s5612_s24  ;;  %1151 = vrot.lane.b32.xlu0 %v1045_v21, %s5612_s24 }
  0x1b   : > { %299 = vst.msk [vmem:[#allocation2 + $0x60] sm:$0xf] %vm274_vm3, %v5610_v4  ;;  %300 = vst.msk [vmem:[#allocation2 + $0x64] sm:$0xf] %vm274_vm3, %v5610_v4  ;;  %v372_v19 = vld [vmem:[%s5670_s22] sm:$0xf] }
  0x1c   : > { %301 = vst.msk [vmem:[#allocation2 + $0x68] sm:$0xf] %vm274_vm3, %v5610_v4  ;;  %302 = vst.msk [vmem:[#allocation2 + $0x6c] sm:$0xf] %vm274_vm3, %v5610_v4  ;;  %v1046_v22 = vrot.slane %v1044_v15, 4  ;;  %v448_v23 = vshrl.u32 %v375_v17, 16 }
  0x1d   : > { %303 = vst.msk [vmem:[#allocation2 + $0x70] sm:$0xf] %vm274_vm3, %v5610_v4  ;;  %304 = vst.msk [vmem:[#allocation2 + $0x74] sm:$0xf] %vm274_vm3, %v5610_v4  ;;  %v373_v24 = vld [vmem:[%s5670_s22 + $0x4] sm:$0xf] }
  0x1e   : > { %305 = vst.msk [vmem:[#allocation2 + $0x78] sm:$0xf] %vm274_vm3, %v5610_v4  ;;  %306 = vst.msk [vmem:[#allocation2 + $0x7c] sm:$0xf] %vm274_vm3, %v5610_v4  ;;  %v451_v25 = vshll.u32 %v375_v17, 16  ;;  %v457_v26 = vshll.u32 %v376_v18, 16  ;;  %v1048_v30 = vsel %vm5672_vm2, %v1046_v22, %v1047_v16 }
  0x1f   : > { %v461_v27 = vshrl.u32 %v376_v18, 16  ;;  %v424_v28 = vshrl.u32 %v372_v19, 16  ;;  %v377_v29 = vld [vmem:[%s5670_s22 + $0x14] sm:$0x1]  ;;  %v450_v31 = vrot.slane %v448_v23, 4  ;;  %v427_v32 = vshll.u32 %v372_v19, 16  ;;  %1153 = vrot.lane.b32.xlu1 %v1048_v30, %s5612_s24  ;;  %vm5770_vm6 = vmor %vm420_vm4, %vm421_vm5 }
  0x20   : > { %v433_v33 = vshll.u32 %v373_v24, 16  ;;  %v374_v34 = vld [vmem:[%s5670_s22 + $0x8] sm:$0x1]  ;;  %v4890_v35 = vld [vmem:[%s5670_s22 + $0xc] sm:$0xf]  ;;  %v453_v36 = vrot.slane %v451_v25, 5 }
  0x21   : > { %v459_v37 = vrot.slane %v457_v26, 5  ;;  %v426_v38 = vrot.slane %v424_v28, 4  ;;  %v437_v39 = vshrl.u32 %v373_v24, 16  ;;  %v429_v40 = vrot.slane %v427_v32, 5  ;;  %v4923_v44 = vld [vmem:[%s5670_s22 + $0x10] sm:$0xf]  ;;  %1341 = vrot.lane.b32.xlu0 %v4890_v35, %s5611_s23 }
  0x22   : > { %v435_v41 = vrot.slane %v433_v33, 5  ;;  %v463_v42 = vrot.slane %v461_v27, 4  ;;  %v467_v43 = vshll.u32 %v377_v29, 16  ;;  %v454_v45 = vor.u32 %v453_v36, %v450_v31  ;;  %v4922_v54 = vld [vmem:[%s5670_s22 + $0xc] sm:$0xf] }
  0x23   : > { %v439_v46 = vrot.slane %v437_v39, 4  ;;  %v443_v47 = vshll.u32 %v374_v34, 16  ;;  %v1528_v48 = vshll.u32 %v4923_v44, 16  ;;  %v430_v50 = vor.u32 %v429_v40, %v426_v38  ;;  %v4924_v57 = vld [vmem:[%s5670_s22 + $0x14] sm:$0x1] }
  0x24   : > { %v464_v51 = vor.u32 %v463_v42, %v459_v37  ;;  %v469_v52 = vrot.slane %v467_v43, 5  ;;  %v1532_v53 = vshrl.u32 %v4923_v44, 16  ;;  %v455_v55 = vrot.slane %v454_v45, 4  ;;  %v4926_v63 = vld [vmem:[%s5670_s22 + $0x1c] sm:$0xf] }
  0x25   : > { %v440_v56 = vor.u32 %v439_v46, %v435_v41  ;;  %v1530_v58 = vrot.slane %v1528_v48, 5  ;;  %v431_v59 = vrot.slane %v430_v50, 4  ;;  %v445_v61 = vrot.slane %v443_v47, 5  ;;  %v4925_v6 = vld [vmem:[%s5670_s22 + $0x18] sm:$0xf] }
  0x26   : > { %v465_v60 = vrot.slane %v464_v51, 4  ;;  %v1534_v62 = vrot.slane %v1532_v53, 4  ;;  %v460_v1 = vsel %vm5770_vm6, %v455_v55, %v459_v37  ;;  %v1519_v3 = vshrl.u32 %v4922_v54, 16  ;;  %v4927_v15 = vld [vmem:[%s5670_s22 + $0x20] sm:$0x1] }
  0x27   : > { %v441_v2 = vrot.slane %v440_v56, 4  ;;  %v1522_v5 = vshll.u32 %v4922_v54, 16  ;;  %811 = vrot.lane.b32.xlu1 %v460_v1, %s5613_s25  ;;  %v436_v7 = vsel %vm5770_vm6, %v431_v59, %v435_v41  ;;  %v1538_v9 = vshll.u32 %v4924_v57, 16  ;;  %v4893_v23 = vld [vmem:[%s5670_s22 + $0x1c] sm:$0xf] }
  0x28   : > { %v470_v8 = vsel %vm5770_vm6, %v465_v60, %v469_v52  ;;  %807 = vrot.lane.b32.xlu0 %v436_v7, %s5613_s25  ;;  %v1535_v10 = vor.u32 %v1534_v62, %v1530_v58  ;;  %v1521_v11 = vrot.slane %v1519_v3, 4  ;;  %v1552_v13 = vshll.u32 %v4926_v63, 16  ;;  %v4892_v28 = vld [vmem:[%s5670_s22 + $0x18] sm:$0xf]  ;;  %v4971_v31 = vld [vmem:[%s5670_s22 + $0x10] sm:$0xf] }
  0x29   : > { %v1524_v12 = vrot.slane %v1522_v5, 5  ;;  %v446_v14 = vsel %vm5770_vm6, %v441_v2, %v445_v61  ;;  %v1556_v16 = vshrl.u32 %v4926_v63, 16  ;;  %v1543_v17 = vshrl.u32 %v4925_v6, 16  ;;  %v4974_v37 = vld [vmem:[%s5670_s22 + $0x1c] sm:$0xf]  ;;  %v5499_v5 = vld [vmem:[%s7566_s1 + $0x30] sm:$0xff]  }
  0x2a   : > { %v1554_v19 = vrot.slane %v1552_v13, 5  ;;  %v1546_v20 = vshll.u32 %v4925_v6, 16  ;;  %v1536_v24 = vrot.slane %v1535_v10, 4  ;;  %v1540_v25 = vrot.slane %v1538_v9, 5  ;;  %v4972_v40 = vld [vmem:[%s5670_s22 + $0x14] sm:$0x1] }
  0x2b   : > { %v1525_v18 = vor.u32 %v1524_v12, %v1521_v11  ;;  %813 = vrot.lane.b32.xlu1 %v470_v8, %s5613_s25  ;;  %v1558_v21 = vrot.slane %v1556_v16, 4  ;;  %v1545_v22 = vrot.slane %v1543_v17, 4  ;;  %v1562_v26 = vshll.u32 %v4927_v15, 16  ;;  %v4970_v41 = vld [vmem:[%s5670_s22 + $0xc] sm:$0xe]  ;;  %v5498_v56 = vld [vmem:[%s7566_s1 + $0x38] sm:$0xff]  }
  0x2c   : > { %809 = vrot.lane.b32.xlu0 %v446_v14, %s5613_s25  ;;  %v1548_v27 = vrot.slane %v1546_v20, 5  ;;  %v1541_v33 = vsel %vm5770_vm6, %v1536_v24, %v1540_v25  ;;  %v2129_v36 = vrot.slane %v4971_v31, 5  ;;  %v2136_v42 = vrot.slane %v4974_v37, 5  ;;  %v4975_v46 = vld [vmem:[%s5670_s22 + $0x20] sm:$0x1]  ;;  %5341 = vmatprep.subr.bf16.mxu0 %v5498_v56 }
  0x2d   : > { %v1526_v29 = vrot.slane %v1525_v18, 4  ;;  %v1559_v30 = vor.u32 %v1558_v21, %v1554_v19  ;;  %v1564_v35 = vrot.slane %v1562_v26, 5  ;;  %v2132_v45 = vrot.slane %v4972_v40, 5  ;;  %v4973_v47 = vld [vmem:[%s5670_s22 + $0x18] sm:$0xe]  ;;  %5445 = vmatprep.subr.bf16.mxu1 %v5498_v56  ;;  %5342 = vmatpush3.bf16.msra.mxu0 %v5498_v56  ;;  %v5500_v21 = vld [vmem:[%s7566_s1 + $0x28] sm:$0xff]  }
  0x2e   : > { %v1549_v32 = vor.u32 %v1548_v27, %v1545_v22  ;;  %v2131_v44 = vrot.slane %v2129_v36, 4  ;;  %v5018_v50 = vrot.slane %v4970_v41, 9  ;;  %v5067_v51 = vld [vmem:[%s5670_s22 + $0x1c] sm:$0xf]  ;;  %v5066_v52 = vld [vmem:[%s5670_s22 + $0x18] sm:$0xf]  ;;  %5453 = vmatpush3.bf16.msra.mxu1 %v5498_v56  ;;  %5343 = vmatprep.subr.bf16.mxu0 %v5499_v5 }
  0x2f   : > { %1347 = vrot.lane.b32.xlu1 %v4893_v23, %s5611_s23  ;;  %v1560_v34 = vrot.slane %v1559_v30, 4  ;;  %v1531_v38 = vsel %vm5770_vm6, %v1526_v29, %v1530_v58  ;;  %v2138_v53 = vrot.slane %v2136_v42, 4  ;;  %v2139_v54 = vrot.slane %v4975_v46, 5  ;;  %v5070_v63 = vld [vmem:[%s5670_s22 + $0x28] sm:$0xf]  ;;  %5446 = vmatprep.subr.bf16.mxu1 %v5499_v5  ;;  %v5501_v31 = vld [vmem:[%s7566_s1 + $0x20] sm:$0xff]  }
  0x30   : > { %1345 = vrot.lane.b32.xlu0 %v4892_v28, %s5611_s23  ;;  %v1550_v39 = vrot.slane %v1549_v32, 4  ;;  %v5019_v55 = vrot.slane %v4973_v47, 9  ;;  %v2133_v57 = vsel %vm5672_vm2, %v2131_v44, %v2132_v45  ;;  %v2620_v58 = vshll.u32 %v5067_v51, 16  ;;  %v5069_v1 = vld [vmem:[%s5670_s22 + $0x24] sm:$0xf]  ;;  %v5502_v46 = vld [vmem:[%s7566_s1 + $0x18] sm:$0xff]  }
  0x31   : > { %v1565_v43 = vsel %vm5770_vm6, %v1560_v34, %v1564_v35  ;;  %v2624_v59 = vshrl.u32 %v5067_v51, 16  ;;  %v2130_v60 = vsel %vm5672_vm2, %v5018_v50, %v2129_v36  ;;  %v2611_v61 = vshrl.u32 %v5066_v52, 16  ;;  %v5068_v6 = vld [vmem:[%s5670_s22 + $0x20] sm:$0x1]  ;;  %5344 = vmatpush3.bf16.msra.mxu0 %v5499_v5  ;;  %v5035_v15 = vld [vmem:[%s5670_s22 + $0x1c] sm:$0xf] }
  0x32   : > { %v1555_v48 = vsel %vm5770_vm6, %v1550_v39, %v1554_v19  ;;  %v2614_v62 = vshll.u32 %v5066_v52, 16  ;;  %v2140_v2 = vsel %vm5672_vm2, %v2138_v53, %v2139_v54  ;;  %v2137_v3 = vsel %vm5672_vm2, %v5019_v55, %v2136_v42  ;;  %5454 = vmatpush3.bf16.msra.mxu1 %v5499_v5  ;;  %v5071_v18 = vld [vmem:[%s5670_s22 + $0x2c] sm:$0x1]  ;;  %v5034_v22 = vld [vmem:[%s5670_s22 + $0x18] sm:$0xf]  ;;  %5345 = vmatprep.subr.bf16.mxu0 %v5500_v21 }
  0x33   : > { %1904 = vrot.lane.b32.xlu1 %v1541_v33, %s5614_s26  ;;  %v5835_v7 = vrot.slane %v2620_v58, 5  ;;  %v2626_v8 = vrot.slane %v2624_v59, 4  ;;  %v2644_v9 = vshll.u32 %v5070_v63, 16  ;;  %v2648_v10 = vshrl.u32 %v5070_v63, 16  ;;  %v379_v26 = vld [vmem:[%s5670_s22 + $0x1c] sm:$0xf]  ;;  %5447 = vmatprep.subr.bf16.mxu1 %v5500_v21 }
  0x34   : > { %1902 = vrot.lane.b32.xlu0 %v1531_v38, %s5614_s26  ;;  %v2613_v11 = vrot.slane %v2611_v61, 4  ;;  %v2616_v12 = vrot.slane %v2614_v62, 5  ;;  %v2635_v13 = vshrl.u32 %v5069_v1, 16  ;;  %v2638_v14 = vshll.u32 %v5069_v1, 16  ;;  %v378_v27 = vld [vmem:[%s5670_s22 + $0x18] sm:$0xf] }
  0x35   : > { %v2630_v16 = vshll.u32 %v5068_v6, 16  ;;  %v2627_v17 = vor.u32 %v2626_v8, %v5835_v7  ;;  %v5842_v19 = vrot.slane %v2644_v9, 5  ;;  %v2650_v20 = vrot.slane %v2648_v10, 4  ;;  %v5037_v28 = vld [vmem:[%s5670_s22 + $0x28] sm:$0xf]  ;;  %5346 = vmatpush3.bf16.msra.mxu0 %v5500_v21  ;;  %v5503_v63 = vld [vmem:[%s7566_s1 + $0x10] sm:$0xff]  }
  0x36   : > { %v2617_v23 = vor.u32 %v2616_v12, %v2613_v11  ;;  %v2637_v24 = vrot.slane %v2635_v13, 4  ;;  %v2640_v25 = vrot.slane %v2638_v14, 5  ;;  %v2654_v30 = vshll.u32 %v5071_v18, 16  ;;  %v5858_v34 = vld [vmem:[%s5670_s22 + $0x1c] sm:$0xf]  ;;  %5455 = vmatpush3.bf16.msra.mxu1 %v5500_v21  ;;  %5347 = vmatprep.subr.bf16.mxu0 %v5501_v31  ;;  %v5504_v18 = vld [vmem:[%s7566_s1 + $0x8] sm:$0xff]  }
  0x37   : > { %1908 = vrot.lane.b32.xlu1 %v1565_v43, %s5614_s26  ;;  %v2632_v29 = vrot.slane %v2630_v16, 5  ;;  %v2628_v32 = vrot.slane %v2627_v17, 4  ;;  %v2651_v33 = vor.u32 %v2650_v20, %v5842_v19  ;;  %v481_v35 = vshll.u32 %v379_v26, 16  ;;  %v5036_v37 = vld [vmem:[%s5670_s22 + $0x24] sm:$0xf]  ;;  %5448 = vmatprep.subr.bf16.mxu1 %v5501_v31 }
  0x38   : > { %1906 = vrot.lane.b32.xlu0 %v1555_v48, %s5614_s26  ;;  %v485_v36 = vshrl.u32 %v379_v26, 16  ;;  %v2618_v38 = vrot.slane %v2617_v23, 4  ;;  %v2641_v39 = vor.u32 %v2640_v25, %v2637_v24  ;;  %v472_v40 = vshrl.u32 %v378_v27, 16  ;;  %v5116_v42 = vld [vmem:[%s5670_s22 + $0x20] sm:$0x1] }
  0x39   : > { %v475_v41 = vshll.u32 %v378_v27, 16  ;;  %v2656_v43 = vrot.slane %v2654_v30, 5  ;;  %v3221_v44 = vrot.slane %v5858_v34, 5  ;;  %v5114_v45 = vld [vmem:[%s5670_s22 + $0x18] sm:$0xe]  ;;  %5348 = vmatpush3.bf16.msra.mxu0 %v5501_v31  ;;  %v2633_v47 = vsel %vm5770_vm6, %v2628_v32, %v2632_v29  ;;  %v5506_v34 = vld [vmem:[%s7566_s1] sm:$0xff]  }
  0x3a   : > { %v2652_v48 = vrot.slane %v2651_v33, 4  ;;  %v380_v50 = vld [vmem:[%s5670_s22 + $0x20] sm:$0x1]  ;;  %v5872_v51 = vrot.slane %v481_v35, 5  ;;  %v487_v52 = vrot.slane %v485_v36, 4  ;;  %5456 = vmatpush3.bf16.msra.mxu1 %v5501_v31  ;;  %v2623_v53 = vsel %vm5770_vm6, %v2618_v38, %v5835_v7  ;;  %5349 = vmatprep.subr.bf16.mxu0 %v5502_v46 }
  0x3b   : > { %2241 = vrot.lane.b32.xlu1 %v2133_v57, %s5615_s29  ;;  %v2642_v54 = vrot.slane %v2641_v39, 4  ;;  %v474_v55 = vrot.slane %v472_v40, 4  ;;  %v477_v56 = vrot.slane %v475_v41, 5  ;;  %v382_v57 = vld [vmem:[%s5670_s22 + $0x28] sm:$0xf]  ;;  %5449 = vmatprep.subr.bf16.mxu1 %v5502_v46  ;;  %v3223_v59 = vrot.slane %v3221_v44, 4 }
  0x3c   : > { %2239 = vrot.lane.b32.xlu0 %v2130_v60, %s5615_s29  ;;  %v381_v58 = vld [vmem:[%s5670_s22 + $0x24] sm:$0xf]  ;;  %v3224_v60 = vrot.slane %v5116_v42, 5  ;;  %v5162_v61 = vrot.slane %v5114_v45, 9  ;;  %v491_v62 = vshll.u32 %v380_v50, 16  ;;  %v2657_v1 = vsel %vm5770_vm6, %v2652_v48, %v2656_v43 }
  0x3d   : > { %5350 = vmatpush3.bf16.msra.mxu0 %v5502_v46  ;;  %v509_v5 = vshrl.u32 %v382_v57, 16  ;;  %v2647_v6 = vsel %vm5770_vm6, %v2642_v54, %v5842_v19  ;;  %v478_v7 = vor.u32 %v477_v56, %v474_v55  ;;  %v5118_v8 = vld [vmem:[%s5670_s22 + $0x28] sm:$0xf]  ;;  %v496_v9 = vshrl.u32 %v381_v58, 16  ;;  %v5119_v13 = vld [vmem:[%s5670_s22 + $0x2c] sm:$0x1] }
  0x3e   : > { %5457 = vmatpush3.bf16.msra.mxu1 %v5502_v46  ;;  %v499_v10 = vshll.u32 %v381_v58, 16  ;;  %5351 = vmatprep.subr.bf16.mxu0 %v5503_v63  ;;  %v3225_v11 = vsel %vm5672_vm2, %v3223_v59, %v3224_v60  ;;  %v493_v12 = vrot.slane %v491_v62, 5  ;;  %v3222_v19 = vsel %vm5672_vm2, %v5162_v61, %v3221_v44  ;;  %v383_v21 = vld [vmem:[%s5670_s22 + $0x2c] sm:$0x1]  ;;  %v5117_v24 = vld [vmem:[%s5670_s22 + $0x24] sm:$0xe] }
  0x3f   : > { %2245 = vrot.lane.b32.xlu1 %v2140_v2, %s5615_s29  ;;  %v488_v2 = vor.u32 %v487_v52, %v5872_v51  ;;  %5450 = vmatprep.subr.bf16.mxu1 %v5503_v63  ;;  %v511_v17 = vrot.slane %v509_v5, 4  ;;  %v479_v20 = vrot.slane %v478_v7, 4  ;;  %v3231_v25 = vrot.slane %v5119_v13, 5  ;;  %v943_v33 = vld [vmem:[%s5670_s22 + $0x1c] sm:$0xf] }
  0x40   : > { %2243 = vrot.lane.b32.xlu0 %v2137_v3, %s5615_s29  ;;  %v505_v3 = vshll.u32 %v382_v57, 16  ;;  %v501_v23 = vrot.slane %v499_v10, 5  ;;  %v515_v29 = vshll.u32 %v383_v21, 16  ;;  %v5163_v31 = vrot.slane %v5117_v24, 9  ;;  %v946_v39 = vld [vmem:[%s5670_s22 + $0x28] sm:$0xf] }
  0x41   : > { %5352 = vmatpush3.bf16.msra.mxu0 %v5503_v63  ;;  %v489_v14 = vrot.slane %v488_v2, 4  ;;  %v484_v30 = vsel %vm5770_vm6, %v479_v20, %v5872_v51  ;;  %v1051_v38 = vrot.slane %v943_v33, 5  ;;  %v944_v42 = vld [vmem:[%s5670_s22 + $0x20] sm:$0x1]  ;;  %v942_v43 = vld [vmem:[%s5670_s22 + $0x18] sm:$0xe] }
  0x42   : > { %v5896_v16 = vrot.slane %v505_v3, 5  ;;  %5458 = vmatpush3.bf16.msra.mxu1 %v5503_v63  ;;  %5353 = vmatprep.subr.bf16.mxu0 %v5504_v18  ;;  %v309_v44 = vld [vmem:[%s5670_s22 + $0xc] sm:$0xf]  ;;  %v1058_v45 = vrot.slane %v946_v39, 5  ;;  %v307_v46 = vld [vmem:[%s5670_s22] sm:$0xf] }
  0x43   : > { %2435 = vrot.lane.b32.xlu1 %v5035_v15, %s5616_s8  ;;  %v3228_v15 = vrot.slane %v5118_v8, 5  ;;  %5451 = vmatprep.subr.bf16.mxu1 %v5504_v18  ;;  %v494_v26 = vsel %vm5770_vm6, %v489_v14, %v493_v12  ;;  %342 = vst.msk [vmem:[#allocation2 + $0x8] sm:$0xf] %vm339_vm7, %v309_v44  ;;  %v1053_v48 = vrot.slane %v1051_v38, 4  ;;  %v1054_v50 = vrot.slane %v944_v42, 5 }
  0x44   : > { %2433 = vrot.lane.b32.xlu0 %v5034_v22, %s5616_s8  ;;  %v498_v22 = vrot.slane %v496_v9, 4  ;;  %v947_v51 = vld [vmem:[%s5670_s22 + $0x2c] sm:$0x1]  ;;  %v945_v52 = vld [vmem:[%s5670_s22 + $0x24] sm:$0xe]  ;;  %v4876_v54 = vrot.slane %v942_v43, 9 }
  0x45   : > { %5354 = vmatpush3.bf16.msra.mxu0 %v5504_v18  ;;  %v3230_v27 = vrot.slane %v3228_v15, 4  ;;  %v3229_v40 = vsel %vm5672_vm2, %v5163_v31, %v3228_v15  ;;  %340 = vst.msk [vmem:[#allocation2] sm:$0xf] %vm339_vm7, %v307_v46  ;;  %v4929_v55 = vld [vmem:[%s5670_s22 + $0x28] sm:$0xf]  ;;  %v1060_v58 = vrot.slane %v1058_v45, 4  ;;  %v1055_v62 = vsel %vm5672_vm2, %v1053_v48, %v1054_v50 }
  0x46   : > { %5459 = vmatpush3.bf16.msra.mxu1 %v5504_v18  ;;  %v502_v32 = vor.u32 %v501_v23, %v498_v22  ;;  %5355 = vmatprep.subr.bf16.mxu0 %v5506_v34  ;;  %v4928_v56 = vld [vmem:[%s5670_s22 + $0x24] sm:$0xf]  ;;  %v310_v57 = vld [vmem:[%s5670_s22 + $0x10] sm:$0xf]  ;;  %v1061_v59 = vrot.slane %v947_v51, 5  ;;  %v4877_v60 = vrot.slane %v945_v52, 9  ;;  %v1052_v2 = vsel %vm5672_vm2, %v4876_v54, %v1051_v38 }
  0x47   : > { %2439 = vrot.lane.b32.xlu1 %v5037_v28, %s5616_s8  ;;  %v512_v28 = vor.u32 %v511_v17, %v5896_v16  ;;  %v3232_v35 = vsel %vm5672_vm2, %v3230_v27, %v3231_v25  ;;  %5452 = vmatprep.subr.bf16.mxu1 %v5506_v34  ;;  %343 = vst.msk [vmem:[#allocation2 + $0xc] sm:$0xf] %vm339_vm7, %v310_v57  ;;  %v308_v61 = vld [vmem:[%s5670_s22 + $0x4] sm:$0xf]  ;;  %v1576_v63 = vshll.u32 %v4929_v55, 16  ;;  %v1567_v3 = vshrl.u32 %v4928_v56, 16 }
  0x48   : > { %2437 = vrot.lane.b32.xlu0 %v5036_v37, %s5616_s8  ;;  %v517_v37 = vrot.slane %v515_v29, 5  ;;  %v503_v41 = vrot.slane %v502_v32, 4  ;;  %341 = vst.msk [vmem:[#allocation2 + $0x4] sm:$0xf] %vm339_vm7, %v308_v61  ;;  %v1570_v5 = vshll.u32 %v4928_v56, 16  ;;  %v1062_v8 = vsel %vm5672_vm2, %v1060_v58, %v1061_v59 }
  0x49   : > { %v513_v36 = vrot.slane %v512_v28, 4  ;;  %5356 = vmatpush3.bf16.msra.mxu0 %v5506_v34  ;;  %v4931_v7 = vld [vmem:[%s5670_s22 + $0x30] sm:$0xf]  ;;  %v1059_v9 = vsel %vm5672_vm2, %v4877_v60, %v1058_v45  ;;  %v1578_v10 = vrot.slane %v1576_v63, 5  ;;  %v4930_v14 = vld [vmem:[%s5670_s22 + $0x2c] sm:$0x1] }
  0x4a   : > { %5460 = vmatpush3.bf16.msra.mxu1 %v5506_v34  ;;  %v1569_v15 = vrot.slane %v1567_v3, 4  ;;  %v1591_v17 = vshrl.u32 %v4931_v7, 16  ;;  %v1594_v18 = vshll.u32 %v4931_v7, 16  ;;  %v1586_v21 = vshll.u32 %v4930_v14, 16  ;;  %v4894_v24 = vld [vmem:[%s5670_s22 + $0x24] sm:$0xf] }
  0x4b   : > { %2996 = vrot.lane.b32.xlu1 %v2633_v47, %s5617_s13  ;;  %v518_v47 = vsel %vm5770_vm6, %v513_v36, %v517_v37  ;;  %v4897_v29 = vld [vmem:[%s5670_s22 + $0x34] sm:$0xf]  ;;  %v4896_v34 = vld [vmem:[%s5670_s22 + $0x30] sm:$0xf]  ;;  %v4977_v37 = vld [vmem:[%s5670_s22 + $0x28] sm:$0xf] }
  0x4c   : > { %2994 = vrot.lane.b32.xlu0 %v2623_v53, %s5617_s13  ;;  %v508_v53 = vsel %vm5770_vm6, %v503_v41, %v5896_v16  ;;  %v1572_v16 = vrot.slane %v1570_v5, 5  ;;  %v1593_v27 = vrot.slane %v1591_v17, 4  ;;  %v1596_v28 = vrot.slane %v1594_v18, 5  ;;  %v4980_v42 = vld [vmem:[%s5670_s22 + $0x34] sm:$0xf] }
  0x4d   : > { %v1588_v31 = vrot.slane %v1586_v21, 5  ;;  %v2143_v41 = vrot.slane %v4977_v37, 5  ;;  %v4978_v45 = vld [vmem:[%s5670_s22 + $0x2c] sm:$0x1]  ;;  %v4976_v46 = vld [vmem:[%s5670_s22 + $0x24] sm:$0xe] }
  0x4e   : > { %v1573_v25 = vor.u32 %v1572_v16, %v1569_v15  ;;  %v1597_v36 = vor.u32 %v1596_v28, %v1593_v27  ;;  %v2146_v51 = vrot.slane %v4978_v45, 5  ;;  %v4981_v52 = vld [vmem:[%s5670_s22 + $0x38] sm:$0x1]  ;;  %v5073_v56 = vld [vmem:[%s5670_s22 + $0x34] sm:$0xf]  ;;  %vm3090_vm14 = vcmask 257248  }
  0x4f   : > { %3000 = vrot.lane.b32.xlu1 %v2657_v1, %s5617_s13  ;;  %v1580_v1 = vshrl.u32 %v4929_v55, 16  ;;  %v2145_v50 = vrot.slane %v2143_v41, 4  ;;  %v5020_v55 = vrot.slane %v4976_v46, 9  ;;  %v312_v57 = vld [vmem:[%s5670_s22 + $0x1c] sm:$0xf]  ;;  %v2153_v61 = vrot.slane %v4981_v52, 5 }
  0x50   : > { %2998 = vrot.lane.b32.xlu0 %v2647_v6, %s5617_s13  ;;  %v4932_v6 = vld [vmem:[%s5670_s22 + $0x34] sm:$0xf]  ;;  %v1598_v44 = vrot.slane %v1597_v36, 4  ;;  %v5072_v58 = vld [vmem:[%s5670_s22 + $0x30] sm:$0xf]  ;;  %vm3427_vm15 = vcmask 290048  }
  0x51   : > { %v1600_v12 = vshll.u32 %v4932_v6, 16  ;;  %v1604_v13 = vshrl.u32 %v4932_v6, 16  ;;  %345 = vst.msk [vmem:[#allocation2 + $0x14] sm:$0xf] %vm339_vm7, %v312_v57  ;;  %v311_v59 = vld [vmem:[%s5670_s22 + $0x18] sm:$0xf]  ;;  %v2147_v63 = vsel %vm5672_vm2, %v2145_v50, %v2146_v51  ;;  %v2144_v3 = vsel %vm5672_vm2, %v5020_v55, %v2143_v41 }
  0x52   : > { %344 = vst.msk [vmem:[#allocation2 + $0x10] sm:$0xf] %vm339_vm7, %v311_v59  ;;  %v2659_v5 = vshrl.u32 %v5072_v58, 16  ;;  %v2662_v6 = vshll.u32 %v5072_v58, 16  ;;  %v5076_v7 = vld [vmem:[%s5670_s22 + $0x40] sm:$0xf] }
  0x53   : > { %3333 = vrot.lane.b32.xlu1 %v3225_v11, %s5618_s27  ;;  %v1582_v11 = vrot.slane %v1580_v1, 4  ;;  %v1602_v22 = vrot.slane %v1600_v12, 5  ;;  %v1606_v23 = vrot.slane %v1604_v13, 4  ;;  %v2668_v1 = vshll.u32 %v5073_v56, 16  ;;  %v313_v21 = vld [vmem:[%s5670_s22 + $0x24] sm:$0xf] }
  0x54   : > { %3331 = vrot.lane.b32.xlu0 %v3222_v19, %s5618_s27  ;;  %v4895_v19 = vld [vmem:[%s5670_s22 + $0x28] sm:$0xf]  ;;  %v2692_v14 = vshll.u32 %v5076_v7, 16  ;;  %v2696_v15 = vshrl.u32 %v5076_v7, 16  ;;  %v2661_v16 = vrot.slane %v2659_v5, 4  ;;  %v2664_v17 = vrot.slane %v2662_v6, 5 }
  0x55   : > { %v1583_v20 = vor.u32 %v1582_v11, %v1578_v10  ;;  %v1607_v32 = vor.u32 %v1606_v23, %v1602_v22  ;;  %v1603_v54 = vsel %vm5770_vm6, %v1598_v44, %v1602_v22  ;;  %v5074_v11 = vld [vmem:[%s5670_s22 + $0x38] sm:$0x1]  ;;  %v6008_v12 = vrot.slane %v2668_v1, 5  ;;  %v5039_v22 = vld [vmem:[%s5670_s22 + $0x34] sm:$0xf] }
  0x56   : > { %v5038_v23 = vld [vmem:[%s5670_s22 + $0x30] sm:$0xf]  ;;  %346 = vst.msk [vmem:[#allocation2 + $0x18] sm:$0xf] %vm339_vm7, %v313_v21  ;;  %v2694_v27 = vrot.slane %v2692_v14, 5  ;;  %v2698_v28 = vrot.slane %v2696_v15, 4 }
  0x57   : > { %817 = vrot.lane.b32.xlu1 %v494_v26, %s5613_s25  ;;  %v4933_v26 = vld [vmem:[%s5670_s22 + $0x38] sm:$0x1]  ;;  %v1608_v39 = vrot.slane %v1607_v32, 4  ;;  %v385_v32 = vld [vmem:[%s5670_s22 + $0x34] sm:$0xf]  ;;  %vm5620_vm4 = vmmov 0  }
  0x58   : > { %815 = vrot.lane.b32.xlu0 %v484_v30, %s5613_s25  ;;  %v1584_v30 = vrot.slane %v1583_v20, 4  ;;  %v1610_v33 = vshll.u32 %v4933_v26, 16  ;;  %v314_v20 = vld [vmem:[%s5670_s22 + $0x28] sm:$0xf]  ;;  %v5077_v26 = vld [vmem:[%s5670_s22 + $0x44] sm:$0x1] }
  0x59   : > { %347 = vst.msk [vmem:[#allocation2 + $0x1c] sm:$0xf] %vm339_vm7, %v314_v20  ;;  %v2702_v36 = vshll.u32 %v5077_v26, 16  ;;  %v533_v41 = vshrl.u32 %v385_v32, 16  ;;  %v5120_v51 = vld [vmem:[%s5670_s22 + $0x30] sm:$0xe] }
  0x5a   : > { %v1589_v38 = vsel %vm5770_vm6, %v1584_v30, %v1588_v31  ;;  %v5125_v20 = vld [vmem:[%s5670_s22 + $0x44] sm:$0x1] }
  0x5b   : > { %3337 = vrot.lane.b32.xlu1 %v3232_v35, %s5618_s27  ;;  %v1574_v35 = vrot.slane %v1573_v25, 4  ;;  %v389_v26 = vld [vmem:[%s5670_s22 + $0x44] sm:$0x1] }
  0x5c   : > { %3335 = vrot.lane.b32.xlu0 %v3229_v40, %s5618_s27  ;;  %v1612_v40 = vrot.slane %v1610_v33, 5  ;;  %v384_v33 = vld [vmem:[%s5670_s22 + $0x30] sm:$0xf] }
  0x5d   : > { %v1579_v43 = vsel %vm5770_vm6, %v1574_v35, %v1578_v10  ;;  %v520_v45 = vshrl.u32 %v384_v33, 16  ;;  %v523_v46 = vshll.u32 %v384_v33, 16 }
  0x5e   : > { %v1613_v48 = vsel %vm5770_vm6, %v1608_v39, %v1612_v40  ;;  %v5121_v39 = vld [vmem:[%s5670_s22 + $0x34] sm:$0xf]  ;;  %v529_v40 = vshll.u32 %v385_v32, 16 }
  0x5f   : > { %821 = vrot.lane.b32.xlu1 %v518_v47, %s5613_s25  ;;  %v2150_v47 = vrot.slane %v4980_v42, 5  ;;  %v5040_v42 = vld [vmem:[%s5670_s22 + $0x3c] sm:$0xf]  ;;  %v3235_v50 = vrot.slane %v5121_v39, 5  ;;  %v522_v59 = vrot.slane %v520_v45, 4 }
  0x60   : > { %819 = vrot.lane.b32.xlu0 %v508_v53, %s5613_s25  ;;  %v4979_v53 = vld [vmem:[%s5670_s22 + $0x30] sm:$0xe]  ;;  %v531_v55 = vrot.slane %v529_v40, 5  ;;  %v949_v40 = vld [vmem:[%s5670_s22 + $0x34] sm:$0xf] }
  0x61   : > { %v2152_v60 = vrot.slane %v2150_v47, 4  ;;  %v3237_v1 = vrot.slane %v3235_v50, 4  ;;  %v1065_v45 = vrot.slane %v949_v40, 5  ;;  %v4898_v40 = vld [vmem:[%s5670_s22 + $0x3c] sm:$0xf] }
  0x63   : > { %1157 = vrot.lane.b32.xlu1 %v1055_v62, %s5612_s24  ;;  %v5021_v62 = vrot.slane %v4979_v53, 9 }
  0x64   : > { %1155 = vrot.lane.b32.xlu0 %v1052_v2, %s5612_s24  ;;  %v2672_v2 = vshrl.u32 %v5073_v56, 16  ;;  %v535_v56 = vrot.slane %v533_v41, 4 }
  0x65   : > { %v2151_v10 = vsel %vm5672_vm2, %v5021_v62, %v2150_v47  ;;  %v2704_v47 = vrot.slane %v2702_v36, 5  ;;  %v387_v62 = vld [vmem:[%s5670_s22 + $0x3c] sm:$0xf]  ;;  %v563_v36 = vshll.u32 %v389_v26, 16 }
  0x66   : > { %v2674_v13 = vrot.slane %v2672_v2, 4  ;;  %v536_v7 = vor.u32 %v535_v56, %v531_v55  ;;  %v547_v14 = vshll.u32 %v387_v62, 16  ;;  %v315_v56 = vld [vmem:[%s5670_s22 + $0x30] sm:$0xf] }
  0x67   : > { %1161 = vrot.lane.b32.xlu1 %v1062_v8, %s5612_s24  ;;  %v5075_v8 = vld [vmem:[%s5670_s22 + $0x3c] sm:$0xf]  ;;  %348 = vst.msk [vmem:[#allocation2 + $0x20] sm:$0xf] %vm339_vm7, %v315_v56  ;;  %v4983_v56 = vld [vmem:[%s5670_s22 + $0x40] sm:$0xf] }
  0x68   : > { %1159 = vrot.lane.b32.xlu0 %v1059_v9, %s5612_s24  ;;  %v2154_v9 = vsel %vm5672_vm2, %v2152_v60, %v2153_v61  ;;  %v2683_v18 = vshrl.u32 %v5075_v8, 16  ;;  %v2675_v25 = vor.u32 %v2674_v13, %v6008_v12  ;;  %v525_v60 = vrot.slane %v523_v46, 5  ;;  %v388_v61 = vld [vmem:[%s5670_s22 + $0x40] sm:$0xf] }
  0x69   : > { %v544_v13 = vshrl.u32 %v387_v62, 16  ;;  %v952_v46 = vld [vmem:[%s5670_s22 + $0x40] sm:$0xf] }
  0x6a   : > { %v2685_v30 = vrot.slane %v2683_v18, 4  ;;  %v2676_v37 = vrot.slane %v2675_v25, 4 }
  0x6b   : > { %1351 = vrot.lane.b32.xlu1 %v4895_v19, %s5611_s23  ;;  %v2686_v19 = vshll.u32 %v5075_v8, 16  ;;  %v553_v8 = vshll.u32 %v388_v61, 16 }
  0x6c   : > { %1349 = vrot.lane.b32.xlu0 %v4894_v24, %s5611_s23  ;;  %v2678_v24 = vshll.u32 %v5074_v11, 16  ;;  %v526_v11 = vor.u32 %v525_v60, %v522_v59  ;;  %v953_v60 = vld [vmem:[%s5670_s22 + $0x44] sm:$0x1] }
  0x6d   : > { %v2688_v31 = vrot.slane %v2686_v19, 5  ;;  %v537_v19 = vrot.slane %v536_v7, 4 }
  0x6e   : > { %v2680_v35 = vrot.slane %v2678_v24, 5  ;;  %v527_v25 = vrot.slane %v526_v11, 4 }
  0x6f   : > { %1355 = vrot.lane.b32.xlu1 %v4897_v29, %s5611_s23  ;;  %v2665_v29 = vor.u32 %v2664_v17, %v2661_v16  ;;  %v2689_v44 = vor.u32 %v2688_v31, %v2685_v30  ;;  %v5123_v30 = vld [vmem:[%s5670_s22 + $0x3c] sm:$0xe]  ;;  %v3245_v31 = vrot.slane %v5125_v20, 5 }
  0x70   : > { %1353 = vrot.lane.b32.xlu0 %v4896_v34, %s5611_s23  ;;  %v5041_v34 = vld [vmem:[%s5670_s22 + $0x40] sm:$0xf]  ;;  %v2681_v52 = vsel %vm5770_vm6, %v2676_v37, %v2680_v35  ;;  %v532_v37 = vsel %vm5770_vm6, %v527_v25, %v531_v55  ;;  %v316_v55 = vld [vmem:[%s5670_s22 + $0x34] sm:$0xf] }
  0x71   : > { %v2690_v58 = vrot.slane %v2689_v44, 4  ;;  %v565_v44 = vrot.slane %v563_v36, 5  ;;  %349 = vst.msk [vmem:[#allocation2 + $0x24] sm:$0xf] %vm339_vm7, %v316_v55 }
  0x73   : > { %1912 = vrot.lane.b32.xlu1 %v1589_v38, %s5614_s26  ;;  %v2699_v38 = vor.u32 %v2698_v28, %v2694_v27  ;;  %v549_v28 = vrot.slane %v547_v14, 5 }
  0x74   : > { %1910 = vrot.lane.b32.xlu0 %v1579_v43, %s5614_s26  ;;  %v2666_v43 = vrot.slane %v2665_v29, 4 }
  0x75   : > { %v2700_v53 = vrot.slane %v2699_v38, 4  ;;  %v5165_v38 = vrot.slane %v5123_v30, 9 }
  0x76   : > { %v2671_v57 = vsel %vm5770_vm6, %v2666_v43, %v6008_v12  ;;  %v5124_v12 = vld [vmem:[%s5670_s22 + $0x40] sm:$0xf] }
  0x77   : > { %1916 = vrot.lane.b32.xlu1 %v1613_v48, %s5614_s26  ;;  %v5122_v48 = vld [vmem:[%s5670_s22 + $0x38] sm:$0x1]  ;;  %v2705_v6 = vsel %vm5770_vm6, %v2700_v53, %v2704_v47  ;;  %v3242_v21 = vrot.slane %v5124_v12, 5  ;;  %v948_v53 = vld [vmem:[%s5670_s22 + $0x30] sm:$0xe] }
  0x78   : > { %1914 = vrot.lane.b32.xlu0 %v1603_v54, %s5614_s26  ;;  %v386_v54 = vld [vmem:[%s5670_s22 + $0x38] sm:$0x1]  ;;  %v3238_v2 = vrot.slane %v5122_v48, 5 }
  0x79   : > { %v539_v5 = vshll.u32 %v386_v54, 16  ;;  %v3243_v48 = vsel %vm5672_vm2, %v5165_v38, %v3242_v21  ;;  %v1072_v54 = vrot.slane %v952_v46, 5  ;;  %v4901_v46 = vld [vmem:[%s5670_s22 + $0x4c] sm:$0xf] }
  0x7a   : > { %v3239_v16 = vsel %vm5672_vm2, %v3237_v1, %v3238_v2  ;;  %v4878_v2 = vrot.slane %v948_v53, 9  ;;  %v4900_v53 = vld [vmem:[%s5670_s22 + $0x48] sm:$0xf] }
  0x7b   : > { %2249 = vrot.lane.b32.xlu1 %v2147_v63, %s5615_s29  ;;  %v541_v17 = vrot.slane %v539_v5, 5  ;;  %v1074_v7 = vrot.slane %v1072_v54, 4 }
  0x7c   : > { %2247 = vrot.lane.b32.xlu0 %v2144_v3, %s5615_s29  ;;  %v5164_v3 = vrot.slane %v5120_v51, 9  ;;  %v950_v51 = vld [vmem:[%s5670_s22 + $0x38] sm:$0x1] }
  0x7d   : > { %v542_v33 = vsel %vm5770_vm6, %v537_v19, %v541_v17  ;;  %v1068_v59 = vrot.slane %v950_v51, 5  ;;  %v4938_v19 = vld [vmem:[%s5670_s22 + $0x4c] sm:$0xf] }
  0x7e   : > { %v3236_v24 = vsel %vm5672_vm2, %v5164_v3, %v3235_v50  ;;  %v4935_v3 = vld [vmem:[%s5670_s22 + $0x40] sm:$0xf]  ;;  %v1648_v25 = vshll.u32 %v4938_v19, 16  ;;  %v1652_v26 = vshrl.u32 %v4938_v19, 16  ;;  %v4985_v19 = vld [vmem:[%s5670_s22 + $0x48] sm:$0xe] }
  0x7f   : > { %2253 = vrot.lane.b32.xlu1 %v2154_v9, %s5615_s29  ;;  %v557_v9 = vshrl.u32 %v388_v61, 16  ;;  %v951_v61 = vld [vmem:[%s5670_s22 + $0x3c] sm:$0xe]  ;;  %v1624_v11 = vshll.u32 %v4935_v3, 16  ;;  %v1628_v12 = vshrl.u32 %v4935_v3, 16 }
  0x80   : > { %2251 = vrot.lane.b32.xlu0 %v2151_v10, %s5615_s29  ;;  %v2695_v10 = vsel %vm5770_vm6, %v2690_v58, %v2694_v27  ;;  %v546_v27 = vrot.slane %v544_v13, 4  ;;  %v1067_v58 = vrot.slane %v1065_v45, 4  ;;  %v318_v13 = vld [vmem:[%s5670_s22 + $0x40] sm:$0xf]  ;;  %v1654_v38 = vrot.slane %v1652_v26, 4 }
  0x81   : > { %351 = vst.msk [vmem:[#allocation2 + $0x2c] sm:$0xf] %vm339_vm7, %v318_v13 }
  0x82   : > { %v550_v39 = vor.u32 %v549_v28, %v546_v27  ;;  %v4936_v28 = vld [vmem:[%s5670_s22 + $0x44] sm:$0x1] }
  0x83   : > { %2443 = vrot.lane.b32.xlu1 %v5039_v22, %s5616_s8  ;;  %v6039_v63 = vpop.permute.xlu1 %1343  ;;  %v6055_v22 = vrot.slane %v553_v8, 5  ;;  %v1075_v8 = vrot.slane %v953_v60, 5  ;;  %v1634_v36 = vshll.u32 %v4936_v28, 16 }
  0x84   : > { %2441 = vrot.lane.b32.xlu0 %v5038_v23, %s5616_s8  ;;  %v559_v23 = vrot.slane %v557_v9, 4  ;;  %v551_v50 = vrot.slane %v550_v39, 4  ;;  %v4879_v9 = vrot.slane %v951_v61, 9  ;;  %v2157_v61 = vrot.slane %v4983_v56, 5 }
  0x86   : > { %v1148_v15 = vpop.permute.xlu0 %1147  ;;  %v560_v35 = vor.u32 %v559_v23, %v6055_v22  ;;  %v556_v1 = vsel %vm5770_vm6, %v551_v50, %v6055_v22  ;;  %v1073_v22 = vsel %vm5672_vm2, %v4879_v9, %v1072_v54  ;;  %v6125_v23 = vrot.slane %v1624_v11, 5 }
  0x87   : > { %2447 = vrot.lane.b32.xlu1 %v5041_v34, %s5616_s8  ;;  %v3244_v34 = vrot.slane %v3242_v21, 4  ;;  %v4937_v21 = vld [vmem:[%s5670_s22 + $0x48] sm:$0xf] }
  0x88   : > { %2445 = vrot.lane.b32.xlu0 %v5040_v42, %s5616_s8  ;;  %v561_v43 = vrot.slane %v560_v35, 4 }
  0x89   : > { %v3246_v42 = vsel %vm5672_vm2, %v3244_v34, %v3245_v31  ;;  %v1639_v31 = vshrl.u32 %v4937_v21, 16  ;;  %v4899_v34 = vld [vmem:[%s5670_s22 + $0x40] sm:$0xf] }
  0x8b   : > { %3004 = vrot.lane.b32.xlu1 %v2681_v52, %s5617_s13 }
  0x8c   : > { %3002 = vrot.lane.b32.xlu0 %v2671_v57, %s5617_s13  ;;  %v6051_v18 = vpop.permute.xlu1 %1149  ;;  %v1152_v29 = vpop.permute.xlu0 %1151  ;;  %v566_v57 = vsel %vm5770_vm6, %v561_v43, %v565_v44  ;;  %v1641_v43 = vrot.slane %v1639_v31, 4 }
  0x8f   : > { %3008 = vrot.lane.b32.xlu1 %v2705_v6, %s5617_s13  ;;  %v4934_v6 = vld [vmem:[%s5670_s22 + $0x3c] sm:$0xf] }
  0x90   : > { %3006 = vrot.lane.b32.xlu0 %v2695_v10, %s5617_s13  ;;  %v1069_v10 = vsel %vm5672_vm2, %v1067_v58, %v1068_v59  ;;  %v1618_v17 = vshll.u32 %v4934_v6, 16 }
  0x91   : > { %v1154_v32 = vpop.permute.xlu1 %1153 }
  0x92   : > { %v1620_v30 = vrot.slane %v1618_v17, 5 }
  0x93   : > { %3341 = vrot.lane.b32.xlu1 %v3239_v16, %s5618_s27  ;;  %v1342_v41 = vpop.permute.xlu0 %1341  ;;  %v1615_v16 = vshrl.u32 %v4934_v6, 16 }
  0x94   : > { %3339 = vrot.lane.b32.xlu0 %v3236_v24, %s5618_s27  ;;  %v1630_v24 = vrot.slane %v1628_v12, 4  ;;  %v4987_v12 = vld [vmem:[%s5670_s22 + $0x50] sm:$0x1] }
  0x96   : > { %v1631_v35 = vor.u32 %v1630_v24, %v6125_v23  ;;  %v5082_v24 = vld [vmem:[%s5670_s22 + $0x58] sm:$0xf] }
  0x97   : > { %825 = vrot.lane.b32.xlu1 %v542_v33, %s5613_s25 }
  0x98   : > { %823 = vrot.lane.b32.xlu0 %v532_v37, %s5613_s25  ;;  %v1650_v37 = vrot.slane %v1648_v25, 5 }
  0x99   : > { %v812_v47 = vpop.permute.xlu1 %811 }
  0x9a   : > { %906 = vst.msk [vmem:[#allocation2 + $0x8] sm:$0xf] %vm903_vm8, %v812_v47  ;;  %v808_v52 = vpop.permute.xlu0 %807  ;;  %v1632_v47 = vrot.slane %v1631_v35, 4  ;;  %v1655_v50 = vor.u32 %v1654_v38, %v1650_v37  ;;  %v5080_v35 = vld [vmem:[%s5670_s22 + $0x50] sm:$0x1] }
  0x9b   : > { %904 = vst.msk [vmem:[#allocation2] sm:$0xf] %vm903_vm8, %v808_v52  ;;  %3345 = vrot.lane.b32.xlu1 %v3246_v42, %s5618_s27  ;;  %v4939_v42 = vld [vmem:[%s5670_s22 + $0x50] sm:$0x1] }
  0x9c   : > { %1246 = vst.msk [vmem:[#allocation2 + $0x8] sm:$0xf] %vm1243_vm9, %v1152_v29  ;;  %1244 = vst.msk [vmem:[#allocation2] sm:$0xf] %vm1243_vm9, %v1148_v15  ;;  %3343 = vrot.lane.b32.xlu0 %v3243_v48, %s5618_s27  ;;  %v1066_v15 = vsel %vm5672_vm2, %v4878_v2, %v1065_v45  ;;  %v1617_v29 = vrot.slane %v1615_v16, 4  ;;  %v1636_v48 = vrot.slane %v1634_v36, 5 }
  0x9d   : > { %v814_v62 = vpop.permute.xlu1 %813  ;;  %1438 = vst.msk [vmem:[#allocation2] sm:$0xf] %vm1437_vm10, %v1342_v41  ;;  %v1658_v51 = vshll.u32 %v4939_v42, 16  ;;  %v1656_v59 = vrot.slane %v1655_v50, 4  ;;  %v5079_v16 = vld [vmem:[%s5670_s22 + $0x4c] sm:$0xf] }
  0x9e   : > { %907 = vst.msk [vmem:[#allocation2 + $0xc] sm:$0xf] %vm903_vm8, %v814_v62  ;;  %v810_v5 = vpop.permute.xlu0 %809  ;;  %v1621_v41 = vor.u32 %v1620_v30, %v1617_v29  ;;  %v1637_v58 = vsel %vm5770_vm6, %v1632_v47, %v1636_v48  ;;  %v4986_v62 = vld [vmem:[%s5670_s22 + $0x4c] sm:$0xf]  ;;  %v5081_v30 = vld [vmem:[%s5670_s22 + $0x54] sm:$0xf] }
  0x9f   : > { %1247 = vst.msk [vmem:[#allocation2 + $0xc] sm:$0xf] %vm1243_vm9, %v1154_v32  ;;  %829 = vrot.lane.b32.xlu1 %v566_v57, %s5613_s25  ;;  %v1642_v32 = vshll.u32 %v4937_v21, 16  ;;  %v1660_v60 = vrot.slane %v1658_v51, 5  ;;  %v2167_v21 = vrot.slane %v4987_v12, 5  ;;  %v2731_v38 = vshrl.u32 %v5081_v30, 16 }
  0xa0   : > { %905 = vst.msk [vmem:[#allocation2 + $0x4] sm:$0xf] %vm903_vm8, %v810_v5  ;;  %827 = vrot.lane.b32.xlu0 %v556_v1, %s5613_s25  ;;  %v1622_v54 = vrot.slane %v1621_v41, 4  ;;  %v4984_v5 = vld [vmem:[%s5670_s22 + $0x44] sm:$0x1] }
  0xa1   : > { %1245 = vst.msk [vmem:[#allocation2 + $0x4] sm:$0xf] %vm1243_vm9, %v6051_v18  ;;  %v1348_v14 = vpop.permute.xlu1 %1347  ;;  %v317_v18 = vld [vmem:[%s5670_s22 + $0x3c] sm:$0xf]  ;;  %v1644_v44 = vrot.slane %v1642_v32, 5  ;;  %v1661_v9 = vsel %vm5770_vm6, %v1656_v59, %v1660_v60  ;;  %v2160_v11 = vrot.slane %v4984_v5, 5 }
  0xa2   : > { %1439 = vst.msk [vmem:[#allocation2 + $0x4] sm:$0xf] %vm1437_vm10, %v6039_v63  ;;  %1441 = vst.msk [vmem:[#allocation2 + $0xc] sm:$0xf] %vm1437_vm10, %v1348_v14  ;;  %v1346_v20 = vpop.permute.xlu0 %1345  ;;  %v1076_v63 = vsel %vm5672_vm2, %v1074_v7, %v1075_v8  ;;  %v1627_v2 = vsel %vm5770_vm6, %v1622_v54, %v6125_v23  ;;  %v4982_v7 = vld [vmem:[%s5670_s22 + $0x3c] sm:$0xe] }
  0xa3   : > { %350 = vst.msk [vmem:[#allocation2 + $0x28] sm:$0xf] %vm339_vm7, %v317_v18  ;;  %1165 = vrot.lane.b32.xlu1 %v1069_v10, %s5612_s24  ;;  %v1645_v55 = vor.u32 %v1644_v44, %v1641_v43  ;;  %v2164_v8 = vrot.slane %v4986_v62, 5  ;;  %v2159_v10 = vrot.slane %v2157_v61, 4  ;;  %v5078_v18 = vld [vmem:[%s5670_s22 + $0x48] sm:$0xf] }
  0xa4   : > { %1440 = vst.msk [vmem:[#allocation2 + $0x8] sm:$0xf] %vm1437_vm10, %v1346_v20  ;;  %1163 = vrot.lane.b32.xlu0 %v1066_v15, %s5612_s24  ;;  %v5022_v15 = vrot.slane %v4982_v7, 9  ;;  %v2720_v23 = vshrl.u32 %v5079_v16, 16  ;;  %v2707_v28 = vshrl.u32 %v5078_v18, 16  ;;  %v2710_v29 = vshll.u32 %v5078_v18, 16 }
  0xa5   : > { %v1905_v27 = vpop.permute.xlu1 %1904  ;;  %v1646_v3 = vrot.slane %v1645_v55, 4  ;;  %v2166_v20 = vrot.slane %v2164_v8, 4  ;;  %v5043_v50 = vld [vmem:[%s5670_s22 + $0x4c] sm:$0xf]  ;;  %v5042_v55 = vld [vmem:[%s5670_s22 + $0x48] sm:$0xf] }
  0xa6   : > { %2000 = vst.msk [vmem:[#allocation2 + $0x4] sm:$0xf] %vm1998_vm11, %v1905_v27  ;;  %v1903_v33 = vpop.permute.xlu0 %1902  ;;  %v2158_v26 = vsel %vm5672_vm2, %v5022_v15, %v2157_v61  ;;  %v5023_v27 = vrot.slane %v4985_v19, 9  ;;  %v2709_v42 = vrot.slane %v2707_v28, 4  ;;  %v2712_v43 = vrot.slane %v2710_v29, 5 }
  0xa7   : > { %1999 = vst.msk [vmem:[#allocation2] sm:$0xf] %vm1998_vm11, %v1903_v33  ;;  %1169 = vrot.lane.b32.xlu1 %v1076_v63, %s5612_s24  ;;  %v1651_v14 = vsel %vm5770_vm6, %v1646_v3, %v1650_v37  ;;  %v2161_v63 = vsel %vm5672_vm2, %v2159_v10, %v2160_v11  ;;  %v2168_v32 = vsel %vm5672_vm2, %v2166_v20, %v2167_v21  ;;  %v2740_v33 = vshll.u32 %v5082_v24, 16  ;;  %v390_v60 = vld [vmem:[%s5670_s22 + $0x48] sm:$0xf] }
  0xa8   : > { %1167 = vrot.lane.b32.xlu0 %v1073_v22, %s5612_s24  ;;  %v2716_v22 = vshll.u32 %v5079_v16, 16  ;;  %v2722_v37 = vrot.slane %v2720_v23, 4  ;;  %v2165_v41 = vsel %vm5672_vm2, %v5023_v27, %v2164_v8  ;;  %v2713_v56 = vor.u32 %v2712_v43, %v2709_v42  ;;  %v5045_v61 = vld [vmem:[%s5670_s22 + $0x58] sm:$0xf]  ;;  %v6207_v5 = vld [vmem:[%s5670_s22 + $0x4c] sm:$0xf] }
  0xa9   : > { %v1909_v39 = vpop.permute.xlu1 %1908  ;;  %v6192_v47 = vrot.slane %v2740_v33, 5  ;;  %v568_v11 = vshrl.u32 %v390_v60, 16  ;;  %v571_v12 = vshll.u32 %v390_v60, 16  ;;  %v5128_v16 = vld [vmem:[%s5670_s22 + $0x50] sm:$0x1] }
  0xaa   : > { %2002 = vst.msk [vmem:[#allocation2 + $0xc] sm:$0xf] %vm1998_vm11, %v1909_v39  ;;  %v1907_v45 = vpop.permute.xlu0 %1906  ;;  %v6184_v36 = vrot.slane %v2716_v22, 5  ;;  %v2734_v39 = vshll.u32 %v5081_v30, 16  ;;  %v2714_v10 = vrot.slane %v2713_v56, 4 }
  0xab   : > { %2001 = vst.msk [vmem:[#allocation2 + $0x8] sm:$0xf] %vm1998_vm11, %v1907_v45  ;;  %1359 = vrot.lane.b32.xlu1 %v4899_v34, %s5611_s23  ;;  %v2744_v34 = vshrl.u32 %v5082_v24, 16  ;;  %v2726_v45 = vshll.u32 %v5080_v35, 16  ;;  %v5126_v19 = vld [vmem:[%s5670_s22 + $0x48] sm:$0xe] }
  0xac   : > { %1357 = vrot.lane.b32.xlu0 %v4898_v40, %s5611_s23  ;;  %v2723_v51 = vor.u32 %v2722_v37, %v6184_v36  ;;  %v392_v21 = vld [vmem:[%s5670_s22 + $0x50] sm:$0x1]  ;;  %v2719_v24 = vsel %vm5770_vm6, %v2714_v10, %v6184_v36  ;;  %v394_v27 = vld [vmem:[%s5670_s22 + $0x58] sm:$0xf]  ;;  %v320_v28 = vld [vmem:[%s5670_s22 + $0x4c] sm:$0xf] }
  0xad   : > { %v2242_v52 = vpop.permute.xlu1 %2241  ;;  %v2746_v48 = vrot.slane %v2744_v34, 4  ;;  %v2728_v62 = vrot.slane %v2726_v45, 5  ;;  %v393_v30 = vld [vmem:[%s5670_s22 + $0x54] sm:$0xf]  ;;  %353 = vst.msk [vmem:[#allocation2 + $0x34] sm:$0xf] %vm339_vm7, %v320_v28 }
  0xae   : > { %2337 = vst.msk [vmem:[#allocation2 + $0x4] sm:$0xf] %vm2335_vm12, %v2242_v52  ;;  %v2240_v57 = vpop.permute.xlu0 %2239  ;;  %v2733_v52 = vrot.slane %v2731_v38, 4  ;;  %v3252_v34 = vrot.slane %v5128_v16, 5  ;;  %v5166_v35 = vrot.slane %v5126_v19, 9  ;;  %v587_v37 = vshll.u32 %v392_v21, 16 }
  0xaf   : > { %2336 = vst.msk [vmem:[#allocation2] sm:$0xf] %vm2335_vm12, %v2240_v57  ;;  %1363 = vrot.lane.b32.xlu1 %v4901_v46, %s5611_s23  ;;  %v5083_v46 = vld [vmem:[%s5670_s22 + $0x5c] sm:$0x1]  ;;  %v391_v57 = vld [vmem:[%s5670_s22 + $0x4c] sm:$0xf] }
  0xb0   : > { %1361 = vrot.lane.b32.xlu0 %v4900_v53, %s5611_s23  ;;  %v2736_v53 = vrot.slane %v2734_v39, 5  ;;  %v2750_v59 = vshll.u32 %v5083_v46, 16  ;;  %v581_v7 = vshrl.u32 %v391_v57, 16  ;;  %v6239_v38 = vld [vmem:[%s5670_s22 + $0x58] sm:$0xf]  ;;  %v601_v39 = vshll.u32 %v394_v27, 16 }
  0xb1   : > { %v2246_v1 = vpop.permute.xlu1 %2245  ;;  %v595_v45 = vshll.u32 %v393_v30, 16  ;;  %v958_v21 = vld [vmem:[%s5670_s22 + $0x58] sm:$0xf] }
  0xb2   : > { %2339 = vst.msk [vmem:[#allocation2 + $0xc] sm:$0xf] %vm2335_vm12, %v2246_v1  ;;  %v2244_v6 = vpop.permute.xlu0 %2243  ;;  %v2747_v1 = vor.u32 %v2746_v48, %v6192_v47  ;;  %v2737_v3 = vor.u32 %v2736_v53, %v2733_v52  ;;  %v583_v22 = vrot.slane %v581_v7, 4  ;;  %v3256_v52 = vrot.slane %v6239_v38, 5  ;;  %v4940_v38 = vld [vmem:[%s5670_s22 + $0x54] sm:$0xf] }
  0xb3   : > { %2338 = vst.msk [vmem:[#allocation2 + $0x8] sm:$0xf] %vm2335_vm12, %v2244_v6  ;;  %1920 = vrot.lane.b32.xlu1 %v1637_v58, %s5614_s26  ;;  %v577_v6 = vshll.u32 %v391_v57, 16  ;;  %v589_v53 = vrot.slane %v587_v37, 5 }
  0xb4   : > { %1918 = vrot.lane.b32.xlu0 %v1627_v2, %s5614_s26  ;;  %v2724_v2 = vrot.slane %v2723_v51, 4  ;;  %v2748_v15 = vrot.slane %v2747_v1, 4  ;;  %v2738_v20 = vrot.slane %v2737_v3, 4  ;;  %v5131_v51 = vld [vmem:[%s5670_s22 + $0x5c] sm:$0x1]  ;;  %v3258_v7 = vrot.slane %v3256_v52, 4 }
  0xb5   : > { %v2436_v13 = vpop.permute.xlu1 %2435  ;;  %v321_v3 = vld [vmem:[%s5670_s22 + $0x54] sm:$0xf] }
  0xb6   : > { %2531 = vst.msk [vmem:[#allocation2 + $0x4] sm:$0xf] %vm2529_vm13, %v2436_v13  ;;  %v2434_v17 = vpop.permute.xlu0 %2433  ;;  %v2729_v18 = vsel %vm5770_vm6, %v2724_v2, %v2728_v62  ;;  %v2743_v42 = vsel %vm5770_vm6, %v2738_v20, %v6192_v47  ;;  %v322_v62 = vld [vmem:[%s5670_s22 + $0x58] sm:$0xf]  ;;  %v5129_v2 = vld [vmem:[%s5670_s22 + $0x54] sm:$0xe] }
  0xb7   : > { %2530 = vst.msk [vmem:[#allocation2] sm:$0xf] %vm2529_vm13, %v2434_v17  ;;  %1924 = vrot.lane.b32.xlu1 %v1661_v9, %s5614_s26  ;;  %v5044_v9 = vld [vmem:[%s5670_s22 + $0x54] sm:$0xf]  ;;  %v3249_v17 = vrot.slane %v6207_v5, 5  ;;  %v3259_v5 = vrot.slane %v5131_v51, 5 }
  0xb8   : > { %1922 = vrot.lane.b32.xlu0 %v1651_v14, %s5614_s26  ;;  %v2752_v14 = vrot.slane %v2750_v59, 5  ;;  %355 = vst.msk [vmem:[#allocation2 + $0x3c] sm:$0xf] %vm339_vm7, %v322_v62  ;;  %354 = vst.msk [vmem:[#allocation2 + $0x38] sm:$0xf] %vm339_vm7, %v321_v3 }
  0xb9   : > { %v2440_v25 = vpop.permute.xlu1 %2439  ;;  %v3251_v33 = vrot.slane %v3249_v17, 4  ;;  %v4944_v51 = vld [vmem:[%s5670_s22 + $0x64] sm:$0xf] }
  0xba   : > { %2533 = vst.msk [vmem:[#allocation2 + $0xc] sm:$0xf] %vm2529_vm13, %v2440_v25  ;;  %v2438_v31 = vpop.permute.xlu0 %2437  ;;  %v570_v25 = vrot.slane %v568_v11, 4 }
  0xbb   : > { %2532 = vst.msk [vmem:[#allocation2 + $0x8] sm:$0xf] %vm2529_vm13, %v2438_v31  ;;  %2257 = vrot.lane.b32.xlu1 %v2161_v63, %s5615_s29  ;;  %v6220_v63 = vrot.slane %v577_v6, 5  ;;  %v319_v31 = vld [vmem:[%s5670_s22 + $0x48] sm:$0xf] }
  0xbc   : > { %2255 = vrot.lane.b32.xlu0 %v2158_v26, %s5615_s29  ;;  %v573_v26 = vrot.slane %v571_v12, 5  ;;  %352 = vst.msk [vmem:[#allocation2 + $0x30] sm:$0xf] %vm339_vm7, %v319_v31  ;;  %v5167_v12 = vrot.slane %v5129_v2, 9  ;;  %v959_v31 = vld [vmem:[%s5670_s22 + $0x5c] sm:$0x1] }
  0xbd   : > { %v2997_v40 = vpop.permute.xlu1 %2996  ;;  %v584_v36 = vor.u32 %v583_v22, %v6220_v63 }
  0xbe   : > { %3092 = vst.msk [vmem:[#allocation2 + $0x4] sm:$0xf] %vm3090_vm14, %v2997_v40  ;;  %v2995_v44 = vpop.permute.xlu0 %2994  ;;  %v605_v40 = vshrl.u32 %v394_v27, 16  ;;  %v574_v43 = vor.u32 %v573_v26, %v570_v25  ;;  %v3257_v22 = vsel %vm5672_vm2, %v5167_v12, %v3256_v52  ;;  %v954_v26 = vld [vmem:[%s5670_s22 + $0x48] sm:$0xe]  ;;  %v1086_v27 = vrot.slane %v958_v21, 5 }
  0xbf   : > { %3091 = vst.msk [vmem:[#allocation2] sm:$0xf] %vm3090_vm14, %v2995_v44  ;;  %2261 = vrot.lane.b32.xlu1 %v2168_v32, %s5615_s29  ;;  %v2753_v32 = vsel %vm5770_vm6, %v2748_v15, %v2752_v14  ;;  %v592_v44 = vshrl.u32 %v393_v30, 16  ;;  %v585_v47 = vrot.slane %v584_v36, 4  ;;  %v955_v14 = vld [vmem:[%s5670_s22 + $0x4c] sm:$0xf] }
  0xc0   : > { %2259 = vrot.lane.b32.xlu0 %v2165_v41, %s5615_s29  ;;  %v607_v56 = vrot.slane %v605_v40, 4  ;;  %v575_v59 = vrot.slane %v574_v43, 4  ;;  %v1079_v20 = vrot.slane %v955_v14, 5  ;;  %v4941_v36 = vld [vmem:[%s5670_s22 + $0x58] sm:$0xf]  ;;  %v1089_v40 = vrot.slane %v959_v31, 5 }
  0xc1   : > { %v3001_v54 = vpop.permute.xlu1 %3000  ;;  %v594_v60 = vrot.slane %v592_v44, 4  ;;  %v590_v6 = vsel %vm5770_vm6, %v585_v47, %v589_v53  ;;  %v1672_v43 = vshll.u32 %v4941_v36, 16  ;;  %v1676_v44 = vshrl.u32 %v4941_v36, 16  ;;  %v4943_v47 = vld [vmem:[%s5670_s22 + $0x60] sm:$0xf] }
  0xc2   : > { %3094 = vst.msk [vmem:[#allocation2 + $0xc] sm:$0xf] %vm3090_vm14, %v3001_v54  ;;  %v2999_v58 = vpop.permute.xlu0 %2998  ;;  %v395_v54 = vld [vmem:[%s5670_s22 + $0x5c] sm:$0x1]  ;;  %v580_v11 = vsel %vm5770_vm6, %v575_v59, %v6220_v63  ;;  %v1690_v2 = vshll.u32 %v4943_v47, 16 }
  0xc3   : > { %3093 = vst.msk [vmem:[#allocation2 + $0x8] sm:$0xf] %vm3090_vm14, %v2999_v58  ;;  %2451 = vrot.lane.b32.xlu1 %v5043_v50, %s5616_s8  ;;  %v3253_v50 = vsel %vm5672_vm2, %v3251_v33, %v3252_v34  ;;  %v3250_v58 = vsel %vm5672_vm2, %v5166_v35, %v3249_v17  ;;  %v3260_v17 = vsel %vm5672_vm2, %v3258_v7, %v3259_v5  ;;  %v4880_v35 = vrot.slane %v954_v26, 9  ;;  %v4903_v5 = vld [vmem:[%s5670_s22 + $0x58] sm:$0xf] }
  0xc4   : > { %2449 = vrot.lane.b32.xlu0 %v5042_v55, %s5616_s8  ;;  %v6253_v55 = vrot.slane %v601_v39, 5  ;;  %v1088_v39 = vrot.slane %v1086_v27, 4  ;;  %v4992_v31 = vld [vmem:[%s5670_s22 + $0x64] sm:$0xf] }
  0xc5   : > { %v3334_v8 = vpop.permute.xlu1 %3333 }
  0xc6   : > { %3429 = vst.msk [vmem:[#allocation2 + $0x4] sm:$0xf] %vm3427_vm15, %v3334_v8  ;;  %v3332_v13 = vpop.permute.xlu0 %3331  ;;  %v608_v8 = vor.u32 %v607_v56, %v6253_v55  ;;  %v1090_v53 = vsel %vm5672_vm2, %v1088_v39, %v1089_v40  ;;  %v1678_v56 = vrot.slane %v1676_v44, 4 }
  0xc7   : > { %3428 = vst.msk [vmem:[#allocation2] sm:$0xf] %vm3427_vm15, %v3332_v13  ;;  %2455 = vrot.lane.b32.xlu1 %v5045_v61, %s5616_s8  ;;  %v597_v61 = vrot.slane %v595_v45, 5 }
  0xc8   : > { %2453 = vrot.lane.b32.xlu0 %v5044_v9, %s5616_s8  ;;  %v611_v9 = vshll.u32 %v395_v54, 16  ;;  %v609_v19 = vrot.slane %v608_v8, 4 }
  0xc9   : > { %v818_v23 = vpop.permute.xlu1 %817  ;;  %v598_v13 = vor.u32 %v597_v61, %v594_v60  ;;  %v4942_v60 = vld [vmem:[%s5670_s22 + $0x5c] sm:$0x1] }
  0xca   : > { %909 = vst.msk [vmem:[#allocation2 + $0x14] sm:$0xf] %vm903_vm8, %v818_v23  ;;  %v816_v29 = vpop.permute.xlu0 %815  ;;  %v1682_v7 = vshll.u32 %v4942_v60, 16 }
  0xcb   : > { %908 = vst.msk [vmem:[#allocation2 + $0x10] sm:$0xf] %vm903_vm8, %v816_v29  ;;  %3012 = vrot.lane.b32.xlu1 %v2729_v18, %s5617_s13  ;;  %v613_v18 = vrot.slane %v611_v9, 5  ;;  %v599_v23 = vrot.slane %v598_v13, 4  ;;  %v1081_v29 = vrot.slane %v1079_v20, 4 }
  0xcc   : > { %3010 = vrot.lane.b32.xlu0 %v2719_v24, %s5617_s13  ;;  %v956_v24 = vld [vmem:[%s5670_s22 + $0x50] sm:$0x1]  ;;  %v4945_v13 = vld [vmem:[%s5670_s22 + $0x68] sm:$0x1] }
  0xcd   : > { %v3338_v41 = vpop.permute.xlu1 %3337  ;;  %v614_v28 = vsel %vm5770_vm6, %v609_v19, %v613_v18  ;;  %v1082_v30 = vrot.slane %v956_v24, 5  ;;  %v604_v34 = vsel %vm5770_vm6, %v599_v23, %v6253_v55  ;;  %v1674_v55 = vrot.slane %v1672_v43, 5 }
  0xce   : > { %3431 = vst.msk [vmem:[#allocation2 + $0xc] sm:$0xf] %vm3427_vm15, %v3338_v41  ;;  %v3336_v46 = vpop.permute.xlu0 %3335  ;;  %v5505_v48 = vld [vmem:[#allocation2] sm:$0xff]   ;;  %v1684_v18 = vrot.slane %v1682_v7, 5  ;;  %v1706_v21 = vshll.u32 %v4945_v13, 16 }
  0xcf   : > { %3430 = vst.msk [vmem:[#allocation2 + $0x8] sm:$0xf] %vm3427_vm15, %v3336_v46  ;;  %3016 = vrot.lane.b32.xlu1 %v2753_v32, %s5617_s13  ;;  %5357 = vmatprep.mubr.bf16.mxu0 %v5505_v48  ;;  %v957_v32 = vld [vmem:[%s5670_s22 + $0x54] sm:$0xe]  ;;  %v1080_v46 = vsel %vm5672_vm2, %v4880_v35, %v1079_v20  ;;  %v1663_v48 = vshrl.u32 %v4940_v38, 16 }
  0xd0   : > { %3014 = vrot.lane.b32.xlu0 %v2743_v42, %s5617_s13  ;;  %v4881_v41 = vrot.slane %v957_v32, 9  ;;  %v1083_v42 = vsel %vm5672_vm2, %v1081_v29, %v1082_v30  ;;  %v1708_v29 = vrot.slane %v1706_v21, 5  ;;  %v4990_v35 = vld [vmem:[%s5670_s22 + $0x5c] sm:$0x1] }
  0xd1   : > { %v822_v57 = vpop.permute.xlu1 %821  ;;  %v1665_v61 = vrot.slane %v1663_v48, 4 }
  0xd2   : > { %911 = vst.msk [vmem:[#allocation2 + $0x1c] sm:$0xf] %vm903_vm8, %v822_v57  ;;  %v820_v1 = vpop.permute.xlu0 %819  ;;  %v1087_v54 = vsel %vm5672_vm2, %v4881_v41, %v1086_v27  ;;  %v1696_v57 = vshll.u32 %v4944_v51, 16  ;;  %v2174_v41 = vrot.slane %v4990_v35, 5  ;;  %v6393_v35 = vld [vmem:[%s5670_s22 + $0x64] sm:$0xf] }
  0xd3   : > { %910 = vst.msk [vmem:[#allocation2 + $0x18] sm:$0xf] %vm903_vm8, %v820_v1  ;;  %3349 = vrot.lane.b32.xlu1 %v3253_v50, %s5618_s27  ;;  %v1666_v50 = vshll.u32 %v4940_v38, 16  ;;  %v1687_v1 = vshrl.u32 %v4943_v47, 16  ;;  %v2178_v38 = vrot.slane %v4992_v31, 5 }
  0xd4   : > { %3347 = vrot.lane.b32.xlu0 %v3250_v58, %s5618_s27  ;;  %v1700_v58 = vshrl.u32 %v4944_v51, 16  ;;  %v1698_v8 = vrot.slane %v1696_v57, 5  ;;  %v5084_v51 = vld [vmem:[%s5670_s22 + $0x60] sm:$0xf] }
  0xd5   : > { %v1158_v10 = vpop.permute.xlu1 %1157  ;;  %v1668_v62 = vrot.slane %v1666_v50, 5  ;;  %v1689_v14 = vrot.slane %v1687_v1, 4  ;;  %v4991_v50 = vld [vmem:[%s5670_s22 + $0x60] sm:$0xe]  ;;  %v2755_v60 = vshrl.u32 %v5084_v51, 16 }
  0xd6   : > { %1249 = vst.msk [vmem:[#allocation2 + $0x14] sm:$0xf] %vm1243_vm9, %v1158_v10  ;;  %v1156_v15 = vpop.permute.xlu0 %1155  ;;  %v5507_v16 = vld [vmem:[#allocation2 + $0x8] sm:$0xff]   ;;  %v1702_v9 = vrot.slane %v1700_v58, 4 }
  0xd7   : > { %1248 = vst.msk [vmem:[#allocation2 + $0x10] sm:$0xf] %vm1243_vm9, %v1156_v15  ;;  %833 = vrot.lane.b32.xlu1 %v590_v6, %s5613_s25  ;;  %5358 = vmatmul.mubr.bf16.vlgmr.msra.gmra.mxu0 %v5507_v16  ;;  %v1679_v6 = vor.u32 %v1678_v56, %v1674_v55  ;;  %v1669_v12 = vor.u32 %v1668_v62, %v1665_v61  ;;  %v1692_v15 = vrot.slane %v1690_v2, 5  ;;  %v5088_v56 = vld [vmem:[%s5670_s22 + $0x70] sm:$0xf]  ;;  %v2758_v61 = vshll.u32 %v5084_v51, 16 }
  0xd8   : > { %831 = vrot.lane.b32.xlu0 %v580_v11, %s5613_s25  ;;  %v4902_v11 = vld [vmem:[%s5670_s22 + $0x54] sm:$0xf]  ;;  %v1703_v20 = vor.u32 %v1702_v9, %v1698_v8  ;;  %v5087_v62 = vld [vmem:[%s5670_s22 + $0x6c] sm:$0xf]  ;;  %v2757_v13 = vrot.slane %v2755_v60, 4 }
  0xd9   : > { %v1162_v63 = vpop.permute.xlu1 %1161  ;;  %v1680_v19 = vrot.slane %v1679_v6, 4  ;;  %v1670_v23 = vrot.slane %v1669_v12, 4  ;;  %v1693_v24 = vor.u32 %v1692_v15, %v1689_v14  ;;  %v5086_v6 = vld [vmem:[%s5670_s22 + $0x68] sm:$0x1]  ;;  %v2779_v9 = vshrl.u32 %v5087_v62, 16 }
  0xda   : > { %1251 = vst.msk [vmem:[#allocation2 + $0x1c] sm:$0xf] %vm1243_vm9, %v1162_v63  ;;  %v1160_v25 = vpop.permute.xlu0 %1159  ;;  %v2760_v14 = vrot.slane %v2758_v61, 5  ;;  %v324_v60 = vld [vmem:[%s5670_s22 + $0x64] sm:$0xf] }
  0xdb   : > { %1250 = vst.msk [vmem:[#allocation2 + $0x18] sm:$0xf] %vm1243_vm9, %v1160_v25  ;;  %3353 = vrot.lane.b32.xlu1 %v3260_v17, %s5618_s27  ;;  %v4905_v17 = vld [vmem:[%s5670_s22 + $0x64] sm:$0xf]  ;;  %v4989_v25 = vld [vmem:[%s5670_s22 + $0x58] sm:$0xf]  ;;  %v1685_v27 = vsel %vm5770_vm6, %v1680_v19, %v1684_v18 }
  0xdc   : > { %3351 = vrot.lane.b32.xlu0 %v3257_v22, %s5618_s27  ;;  %v4904_v22 = vld [vmem:[%s5670_s22 + $0x60] sm:$0xf]  ;;  %v2171_v30 = vrot.slane %v4989_v25, 5  ;;  %v2761_v25 = vor.u32 %v2760_v14, %v2757_v13  ;;  %357 = vst.msk [vmem:[#allocation2 + $0x44] sm:$0xf] %vm339_vm7, %v324_v60 }
  0xdd   : > { %v1352_v33 = vpop.permute.xlu1 %1351 }
  0xde   : > { %1443 = vst.msk [vmem:[#allocation2 + $0x14] sm:$0xf] %vm1437_vm10, %v1352_v33  ;;  %v1350_v37 = vpop.permute.xlu0 %1349  ;;  %v1675_v33 = vsel %vm5770_vm6, %v1670_v23, %v1674_v55  ;;  %v2173_v40 = vrot.slane %v2171_v30, 4 }
  0xdf   : > { %1442 = vst.msk [vmem:[#allocation2 + $0x10] sm:$0xf] %vm1437_vm10, %v1350_v37  ;;  %837 = vrot.lane.b32.xlu1 %v614_v28, %s5613_s25  ;;  %v1704_v28 = vrot.slane %v1703_v20, 4  ;;  %v4988_v37 = vld [vmem:[%s5670_s22 + $0x54] sm:$0xe] }
  0xe0   : > { %835 = vrot.lane.b32.xlu0 %v604_v34, %s5613_s25  ;;  %v1694_v34 = vrot.slane %v1693_v24, 4  ;;  %v5047_v20 = vld [vmem:[%s5670_s22 + $0x64] sm:$0xf]  ;;  %v5046_v24 = vld [vmem:[%s5670_s22 + $0x60] sm:$0xf] }
  0xe1   : > { %v1356_v45 = vpop.permute.xlu1 %1355  ;;  %v1709_v39 = vsel %vm5770_vm6, %v1704_v28, %v1708_v29  ;;  %v396_v29 = vld [vmem:[%s5670_s22 + $0x60] sm:$0xf] }
  0xe2   : > { %1445 = vst.msk [vmem:[#allocation2 + $0x1c] sm:$0xf] %vm1437_vm10, %v1356_v45  ;;  %v1354_v52 = vpop.permute.xlu0 %1353  ;;  %v1699_v44 = vsel %vm5770_vm6, %v1694_v34, %v1698_v8  ;;  %v5024_v45 = vrot.slane %v4988_v37, 9 }
  0xe3   : > { %1444 = vst.msk [vmem:[#allocation2 + $0x18] sm:$0xf] %vm1437_vm10, %v1354_v52  ;;  %1173 = vrot.lane.b32.xlu1 %v1083_v42, %s5612_s24  ;;  %v4993_v42 = vld [vmem:[%s5670_s22 + $0x68] sm:$0x1]  ;;  %v2180_v52 = vrot.slane %v2178_v38, 4 }
  0xe4   : > { %1171 = vrot.lane.b32.xlu0 %v1080_v46, %s5612_s24  ;;  %v5085_v46 = vld [vmem:[%s5670_s22 + $0x64] sm:$0xf]  ;;  %v2181_v47 = vrot.slane %v4993_v42, 5  ;;  %v2172_v58 = vsel %vm5672_vm2, %v5024_v45, %v2171_v30  ;;  %v5049_v30 = vld [vmem:[%s5670_s22 + $0x70] sm:$0xf]  ;;  %v619_v42 = vshll.u32 %v396_v29, 16 }
  0xe5   : > { %v1913_v59 = vpop.permute.xlu1 %1912  ;;  %v2768_v55 = vshrl.u32 %v5085_v46, 16 }
  0xe6   : > { %2004 = vst.msk [vmem:[#allocation2 + $0x14] sm:$0xf] %vm1998_vm11, %v1913_v59  ;;  %v1911_v3 = vpop.permute.xlu0 %1910  ;;  %v5025_v59 = vrot.slane %v4991_v50, 9  ;;  %v2182_v2 = vsel %vm5672_vm2, %v2180_v52, %v2181_v47  ;;  %v5132_v50 = vld [vmem:[%s5670_s22 + $0x60] sm:$0xe] }
  0xe7   : > { %2003 = vst.msk [vmem:[#allocation2 + $0x10] sm:$0xf] %vm1998_vm11, %v1911_v3  ;;  %1177 = vrot.lane.b32.xlu1 %v1090_v53, %s5612_s24  ;;  %v2175_v53 = vsel %vm5672_vm2, %v2173_v40, %v2174_v41  ;;  %v2788_v3 = vshll.u32 %v5088_v56, 16  ;;  %v2770_v8 = vrot.slane %v2768_v55, 4  ;;  %v2762_v40 = vrot.slane %v2761_v25, 4 }
  0xe8   : > { %1175 = vrot.lane.b32.xlu0 %v1087_v54, %s5612_s24  ;;  %v2764_v54 = vshll.u32 %v5085_v46, 16  ;;  %v2179_v12 = vsel %vm5672_vm2, %v5025_v59, %v2178_v38  ;;  %v616_v41 = vshrl.u32 %v396_v29, 16  ;;  %v5134_v46 = vld [vmem:[%s5670_s22 + $0x68] sm:$0x1]  ;;  %v400_v59 = vld [vmem:[%s5670_s22 + $0x70] sm:$0xf] }
  0xe9   : > { %v1917_v10 = vpop.permute.xlu1 %1916  ;;  %v6378_v19 = vrot.slane %v2788_v3, 5  ;;  %v398_v47 = vld [vmem:[%s5670_s22 + $0x68] sm:$0x1] }
  0xea   : > { %2006 = vst.msk [vmem:[#allocation2 + $0x1c] sm:$0xf] %vm1998_vm11, %v1917_v10  ;;  %v1915_v16 = vpop.permute.xlu0 %1914  ;;  %v6370_v7 = vrot.slane %v2764_v54, 5  ;;  %v2782_v10 = vshll.u32 %v5087_v62, 16  ;;  %v399_v62 = vld [vmem:[%s5670_s22 + $0x6c] sm:$0xf] }
  0xeb   : > { %2005 = vst.msk [vmem:[#allocation2 + $0x18] sm:$0xf] %vm1998_vm11, %v1915_v16  ;;  %1367 = vrot.lane.b32.xlu1 %v4903_v5, %s5611_s23  ;;  %v2792_v5 = vshrl.u32 %v5088_v56, 16  ;;  %v2774_v16 = vshll.u32 %v5086_v6, 16  ;;  %v5168_v6 = vrot.slane %v5132_v50, 9 }
  0xec   : > { %1365 = vrot.lane.b32.xlu0 %v4902_v11, %s5611_s23  ;;  %v2771_v21 = vor.u32 %v2770_v8, %v6370_v7  ;;  %v2767_v56 = vsel %vm5770_vm6, %v2762_v40, %v6370_v7  ;;  %v635_v8 = vshll.u32 %v398_v47, 16  ;;  %v964_v47 = vld [vmem:[%s5670_s22 + $0x70] sm:$0xf] }
  0xed   : > { %v2250_v63 = vpop.permute.xlu1 %2249  ;;  %v2794_v18 = vrot.slane %v2792_v5, 4  ;;  %v2776_v31 = vrot.slane %v2774_v16, 5  ;;  %v3266_v5 = vrot.slane %v5134_v46, 5  ;;  %v643_v16 = vshll.u32 %v399_v62, 16 }
  0xee   : > { %2341 = vst.msk [vmem:[#allocation2 + $0x14] sm:$0xf] %vm2335_vm12, %v2250_v63  ;;  %v2248_v26 = vpop.permute.xlu0 %2247  ;;  %v2781_v63 = vrot.slane %v2779_v9, 4  ;;  %v6425_v9 = vld [vmem:[%s5670_s22 + $0x70] sm:$0xf] }
  0xef   : > { %2340 = vst.msk [vmem:[#allocation2 + $0x10] sm:$0xf] %vm2335_vm12, %v2248_v26  ;;  %1371 = vrot.lane.b32.xlu1 %v4905_v17, %s5611_s23  ;;  %v5089_v17 = vld [vmem:[%s5670_s22 + $0x74] sm:$0x1]  ;;  %v397_v26 = vld [vmem:[%s5670_s22 + $0x64] sm:$0xf] }
  0xf0   : > { %1369 = vrot.lane.b32.xlu0 %v4904_v22, %s5611_s23  ;;  %v2784_v22 = vrot.slane %v2782_v10, 5  ;;  %v2798_v28 = vshll.u32 %v5089_v17, 16  ;;  %v629_v37 = vshrl.u32 %v397_v26, 16  ;;  %v649_v10 = vshll.u32 %v400_v59, 16 }
  0xf1   : > { %v2254_v32 = vpop.permute.xlu1 %2253 }
  0xf2   : > { %2343 = vst.msk [vmem:[#allocation2 + $0x1c] sm:$0xf] %vm2335_vm12, %v2254_v32  ;;  %v2252_v36 = vpop.permute.xlu0 %2251  ;;  %v2795_v32 = vor.u32 %v2794_v18, %v6378_v19  ;;  %v2785_v34 = vor.u32 %v2784_v22, %v2781_v63  ;;  %v631_v54 = vrot.slane %v629_v37, 4  ;;  %v3270_v63 = vrot.slane %v6425_v9, 5  ;;  %v4946_v9 = vld [vmem:[%s5670_s22 + $0x6c] sm:$0xf] }
  0xf3   : > { %2342 = vst.msk [vmem:[#allocation2 + $0x18] sm:$0xf] %vm2335_vm12, %v2252_v36  ;;  %1928 = vrot.lane.b32.xlu1 %v1685_v27, %s5614_s26  ;;  %v625_v36 = vshll.u32 %v397_v26, 16  ;;  %v637_v22 = vrot.slane %v635_v8, 5 }
  0xf4   : > { %1926 = vrot.lane.b32.xlu0 %v1675_v33, %s5614_s26  ;;  %v2772_v33 = vrot.slane %v2771_v21, 4  ;;  %v2796_v45 = vrot.slane %v2795_v32, 4  ;;  %v2786_v52 = vrot.slane %v2785_v34, 4  ;;  %v5137_v21 = vld [vmem:[%s5670_s22 + $0x74] sm:$0x1]  ;;  %v3272_v37 = vrot.slane %v3270_v63, 4 }
  0xf5   : > { %v2444_v43 = vpop.permute.xlu1 %2443  ;;  %v325_v34 = vld [vmem:[%s5670_s22 + $0x6c] sm:$0xf] }
  0xf6   : > { %2535 = vst.msk [vmem:[#allocation2 + $0x14] sm:$0xf] %vm2529_vm13, %v2444_v43  ;;  %v2442_v48 = vpop.permute.xlu0 %2441  ;;  %v2777_v51 = vsel %vm5770_vm6, %v2772_v33, %v2776_v31  ;;  %v2791_v13 = vsel %vm5770_vm6, %v2786_v52, %v6378_v19  ;;  %v326_v31 = vld [vmem:[%s5670_s22 + $0x70] sm:$0xf]  ;;  %v5135_v33 = vld [vmem:[%s5670_s22 + $0x6c] sm:$0xe] }
  0xf7   : > { %2534 = vst.msk [vmem:[#allocation2 + $0x10] sm:$0xf] %vm2529_vm13, %v2442_v48  ;;  %1932 = vrot.lane.b32.xlu1 %v1709_v39, %s5614_s26  ;;  %v5048_v39 = vld [vmem:[%s5670_s22 + $0x6c] sm:$0xf]  ;;  %v3263_v48 = vrot.slane %v6393_v35, 5  ;;  %v3273_v35 = vrot.slane %v5137_v21, 5 }
  0xf8   : > { %1930 = vrot.lane.b32.xlu0 %v1699_v44, %s5614_s26  ;;  %v2800_v44 = vrot.slane %v2798_v28, 5  ;;  %359 = vst.msk [vmem:[#allocation2 + $0x4c] sm:$0xf] %vm339_vm7, %v326_v31  ;;  %358 = vst.msk [vmem:[#allocation2 + $0x48] sm:$0xf] %vm339_vm7, %v325_v34 }
  0xf9   : > { %v2448_v57 = vpop.permute.xlu1 %2447  ;;  %v3265_v3 = vrot.slane %v3263_v48, 4  ;;  %v4950_v21 = vld [vmem:[%s5670_s22 + $0x7c] sm:$0xf] }
  0xfa   : > { %2537 = vst.msk [vmem:[#allocation2 + $0x1c] sm:$0xf] %vm2529_vm13, %v2448_v57  ;;  %v2446_v1 = vpop.permute.xlu0 %2445  ;;  %v618_v57 = vrot.slane %v616_v41, 4 }
  0xfb   : > { %2536 = vst.msk [vmem:[#allocation2 + $0x18] sm:$0xf] %vm2529_vm13, %v2446_v1  ;;  %2265 = vrot.lane.b32.xlu1 %v2175_v53, %s5615_s29  ;;  %v6406_v53 = vrot.slane %v625_v36, 5  ;;  %v323_v1 = vld [vmem:[%s5670_s22 + $0x60] sm:$0xf] }
  0xfc   : > { %2263 = vrot.lane.b32.xlu0 %v2172_v58, %s5615_s29  ;;  %v621_v58 = vrot.slane %v619_v42, 5  ;;  %356 = vst.msk [vmem:[#allocation2 + $0x40] sm:$0xf] %vm339_vm7, %v323_v1  ;;  %v5169_v42 = vrot.slane %v5135_v33, 9  ;;  %v965_v1 = vld [vmem:[%s5670_s22 + $0x74] sm:$0x1] }
  0xfd   : > { %v3005_v11 = vpop.permute.xlu1 %3004  ;;  %v632_v7 = vor.u32 %v631_v54, %v6406_v53 }
  0xfe   : > { %3096 = vst.msk [vmem:[#allocation2 + $0x14] sm:$0xf] %vm3090_vm14, %v3005_v11  ;;  %v3003_v15 = vpop.permute.xlu0 %3002  ;;  %v653_v11 = vshrl.u32 %v400_v59, 16  ;;  %v622_v14 = vor.u32 %v621_v58, %v618_v57  ;;  %v3271_v54 = vsel %vm5672_vm2, %v5169_v42, %v3270_v63  ;;  %v960_v58 = vld [vmem:[%s5670_s22 + $0x60] sm:$0xe]  ;;  %v1100_v59 = vrot.slane %v964_v47, 5 }
  0xff   : > { %3095 = vst.msk [vmem:[#allocation2 + $0x10] sm:$0xf] %vm3090_vm14, %v3003_v15  ;;  %2269 = vrot.lane.b32.xlu1 %v2182_v2, %s5615_s29  ;;  %v2801_v2 = vsel %vm5770_vm6, %v2796_v45, %v2800_v44  ;;  %v640_v15 = vshrl.u32 %v399_v62, 16  ;;  %v633_v19 = vrot.slane %v632_v7, 4  ;;  %v961_v44 = vld [vmem:[%s5670_s22 + $0x64] sm:$0xf] }
 0x100   : > { %2267 = vrot.lane.b32.xlu0 %v2179_v12, %s5615_s29  ;;  %v655_v25 = vrot.slane %v653_v11, 4  ;;  %v623_v28 = vrot.slane %v622_v14, 4  ;;  %v1093_v52 = vrot.slane %v961_v44, 5  ;;  %v4947_v7 = vld [vmem:[%s5670_s22 + $0x70] sm:$0xf]  ;;  %v1103_v11 = vrot.slane %v965_v1, 5 }
 0x101   : > { %v3009_v23 = vpop.permute.xlu1 %3008  ;;  %v642_v29 = vrot.slane %v640_v15, 4  ;;  %v638_v36 = vsel %vm5770_vm6, %v633_v19, %v637_v22  ;;  %v1720_v14 = vshll.u32 %v4947_v7, 16  ;;  %v1724_v15 = vshrl.u32 %v4947_v7, 16  ;;  %v4949_v19 = vld [vmem:[%s5670_s22 + $0x78] sm:$0xf] }
 0x102   : > { %3098 = vst.msk [vmem:[#allocation2 + $0x1c] sm:$0xf] %vm3090_vm14, %v3009_v23  ;;  %v3007_v27 = vpop.permute.xlu0 %3006  ;;  %v401_v23 = vld [vmem:[%s5670_s22 + $0x74] sm:$0x1]  ;;  %v628_v41 = vsel %vm5770_vm6, %v623_v28, %v6406_v53  ;;  %v1738_v33 = vshll.u32 %v4949_v19, 16 }
 0x103   : > { %3097 = vst.msk [vmem:[#allocation2 + $0x18] sm:$0xf] %vm3090_vm14, %v3007_v27  ;;  %2459 = vrot.lane.b32.xlu1 %v5047_v20, %s5616_s8  ;;  %v3267_v20 = vsel %vm5672_vm2, %v3265_v3, %v3266_v5  ;;  %v3264_v27 = vsel %vm5672_vm2, %v5168_v6, %v3263_v48  ;;  %v3274_v48 = vsel %vm5672_vm2, %v3272_v37, %v3273_v35  ;;  %v4882_v6 = vrot.slane %v960_v58, 9  ;;  %v4907_v35 = vld [vmem:[%s5670_s22 + $0x70] sm:$0xf] }
 0x104   : > { %2457 = vrot.lane.b32.xlu0 %v5046_v24, %s5616_s8  ;;  %v6439_v24 = vrot.slane %v649_v10, 5  ;;  %v1102_v10 = vrot.slane %v1100_v59, 4  ;;  %v4998_v1 = vld [vmem:[%s5670_s22 + $0x7c] sm:$0xf] }
 0x105   : > { %v3342_v38 = vpop.permute.xlu1 %3341 }
 0x106   : > { %3433 = vst.msk [vmem:[#allocation2 + $0x14] sm:$0xf] %vm3427_vm15, %v3342_v38  ;;  %v3340_v43 = vpop.permute.xlu0 %3339  ;;  %v656_v38 = vor.u32 %v655_v25, %v6439_v24  ;;  %v1104_v22 = vsel %vm5672_vm2, %v1102_v10, %v1103_v11  ;;  %v1726_v25 = vrot.slane %v1724_v15, 4 }
 0x107   : > { %3432 = vst.msk [vmem:[#allocation2 + $0x10] sm:$0xf] %vm3427_vm15, %v3340_v43  ;;  %2463 = vrot.lane.b32.xlu1 %v5049_v30, %s5616_s8  ;;  %v645_v30 = vrot.slane %v643_v16, 5 }
 0x108   : > { %2461 = vrot.lane.b32.xlu0 %v5048_v39, %s5616_s8  ;;  %v659_v39 = vshll.u32 %v401_v23, 16  ;;  %v657_v50 = vrot.slane %v656_v38, 4 }
 0x109   : > { %v826_v55 = vpop.permute.xlu1 %825  ;;  %v646_v43 = vor.u32 %v645_v30, %v642_v29  ;;  %v4948_v29 = vld [vmem:[%s5670_s22 + $0x74] sm:$0x1] }
 0x10a   : > { %913 = vst.msk [vmem:[#allocation2 + $0x24] sm:$0xf] %vm903_vm8, %v826_v55  ;;  %v824_v61 = vpop.permute.xlu0 %823  ;;  %v1730_v37 = vshll.u32 %v4948_v29, 16 }
 0x10b   : > { %912 = vst.msk [vmem:[#allocation2 + $0x20] sm:$0xf] %vm903_vm8, %v824_v61  ;;  %3020 = vrot.lane.b32.xlu1 %v2777_v51, %s5617_s13  ;;  %v661_v51 = vrot.slane %v659_v39, 5  ;;  %v647_v55 = vrot.slane %v646_v43, 4  ;;  %v1095_v61 = vrot.slane %v1093_v52, 4 }
 0x10c   : > { %3018 = vrot.lane.b32.xlu0 %v2767_v56, %s5617_s13  ;;  %v962_v56 = vld [vmem:[%s5670_s22 + $0x68] sm:$0x1]  ;;  %v4951_v43 = vld [vmem:[%s5670_s22 + $0x80] sm:$0x1] }
 0x10d   : > { %v3346_v12 = vpop.permute.xlu1 %3345  ;;  %v662_v60 = vsel %vm5770_vm6, %v657_v50, %v661_v51  ;;  %v1096_v62 = vrot.slane %v962_v56, 5  ;;  %v652_v5 = vsel %vm5770_vm6, %v647_v55, %v6439_v24  ;;  %v1722_v24 = vrot.slane %v1720_v14, 5 }
 0x10e   : > { %3435 = vst.msk [vmem:[#allocation2 + $0x1c] sm:$0xf] %vm3427_vm15, %v3346_v12  ;;  %v3344_v17 = vpop.permute.xlu0 %3343  ;;  %v5508_v18 = vld [vmem:[#allocation2 + $0x10] sm:$0xff]   ;;  %v1732_v51 = vrot.slane %v1730_v37, 5  ;;  %v1754_v47 = vshll.u32 %v4951_v43, 16 }
 0x10f   : > { %3434 = vst.msk [vmem:[#allocation2 + $0x18] sm:$0xf] %vm3427_vm15, %v3344_v17  ;;  %3024 = vrot.lane.b32.xlu1 %v2801_v2, %s5617_s13  ;;  %5361 = vmatprep.mubr.bf16.mxu0 %v5508_v18  ;;  %v963_v2 = vld [vmem:[%s5670_s22 + $0x6c] sm:$0xe]  ;;  %v1094_v17 = vsel %vm5672_vm2, %v4882_v6, %v1093_v52  ;;  %v1711_v18 = vshrl.u32 %v4946_v9, 16 }
 0x110   : > { %3022 = vrot.lane.b32.xlu0 %v2791_v13, %s5617_s13  ;;  %v4883_v12 = vrot.slane %v963_v2, 9  ;;  %v1097_v13 = vsel %vm5672_vm2, %v1095_v61, %v1096_v62  ;;  %v1756_v61 = vrot.slane %v1754_v47, 5  ;;  %v4996_v6 = vld [vmem:[%s5670_s22 + $0x74] sm:$0x1] }
 0x111   : > { %v830_v26 = vpop.permute.xlu1 %829  ;;  %v1713_v30 = vrot.slane %v1711_v18, 4 }
 0x112   : > { %915 = vst.msk [vmem:[#allocation2 + $0x2c] sm:$0xf] %vm903_vm8, %v830_v26  ;;  %v828_v32 = vpop.permute.xlu0 %827  ;;  %v1101_v23 = vsel %vm5672_vm2, %v4883_v12, %v1100_v59  ;;  %v1744_v26 = vshll.u32 %v4950_v21, 16  ;;  %v2188_v12 = vrot.slane %v4996_v6, 5  ;;  %v5053_v6 = vld [vmem:[%s5670_s22 + $0x88] sm:$0xf] }
 0x113   : > { %914 = vst.msk [vmem:[#allocation2 + $0x28] sm:$0xf] %vm903_vm8, %v828_v32  ;;  %3357 = vrot.lane.b32.xlu1 %v3267_v20, %s5618_s27  ;;  %v1714_v20 = vshll.u32 %v4946_v9, 16  ;;  %v1735_v32 = vshrl.u32 %v4949_v19, 16  ;;  %v2192_v9 = vrot.slane %v4998_v1, 5 }
 0x114   : > { %3355 = vrot.lane.b32.xlu0 %v3264_v27, %s5618_s27  ;;  %v1748_v27 = vshrl.u32 %v4950_v21, 16  ;;  %v1746_v38 = vrot.slane %v1744_v26, 5  ;;  %v5090_v21 = vld [vmem:[%s5670_s22 + $0x78] sm:$0xf] }
 0x115   : > { %v1166_v40 = vpop.permute.xlu1 %1165  ;;  %v1716_v31 = vrot.slane %v1714_v20, 5  ;;  %v1737_v44 = vrot.slane %v1735_v32, 4  ;;  %v4997_v20 = vld [vmem:[%s5670_s22 + $0x78] sm:$0xe]  ;;  %v2803_v29 = vshrl.u32 %v5090_v21, 16 }
 0x116   : > { %1253 = vst.msk [vmem:[#allocation2 + $0x24] sm:$0xf] %vm1243_vm9, %v1166_v40  ;;  %v1164_v45 = vpop.permute.xlu0 %1163  ;;  %v5509_v46 = vld [vmem:[#allocation2 + $0x18] sm:$0xff]   ;;  %v1750_v39 = vrot.slane %v1748_v27, 4 }
 0x117   : > { %1252 = vst.msk [vmem:[#allocation2 + $0x20] sm:$0xf] %vm1243_vm9, %v1164_v45  ;;  %841 = vrot.lane.b32.xlu1 %v638_v36, %s5613_s25  ;;  %5362 = vmatmul.mubr.bf16.gmra.mxu0 %v5509_v46  ;;  %v1727_v36 = vor.u32 %v1726_v25, %v1722_v24  ;;  %v1717_v42 = vor.u32 %v1716_v31, %v1713_v30  ;;  %v1740_v45 = vrot.slane %v1738_v33, 5  ;;  %v5094_v25 = vld [vmem:[%s5670_s22 + $0x88] sm:$0xf]  ;;  %v2806_v30 = vshll.u32 %v5090_v21, 16 }
 0x118   : > { %839 = vrot.lane.b32.xlu0 %v628_v41, %s5613_s25  ;;  %v4906_v41 = vld [vmem:[%s5670_s22 + $0x6c] sm:$0xf]  ;;  %v1751_v52 = vor.u32 %v1750_v39, %v1746_v38  ;;  %v5093_v31 = vld [vmem:[%s5670_s22 + $0x84] sm:$0xf]  ;;  %v2805_v43 = vrot.slane %v2803_v29, 4 }
 0x119   : > { %v1170_v53 = vpop.permute.xlu1 %1169  ;;  %v1728_v50 = vrot.slane %v1727_v36, 4  ;;  %v1718_v55 = vrot.slane %v1717_v42, 4  ;;  %v1741_v56 = vor.u32 %v1740_v45, %v1737_v44  ;;  %v2830_v39 = vshll.u32 %v5093_v31, 16  ;;  %v5092_v42 = vld [vmem:[%s5670_s22 + $0x80] sm:$0x1] }
 0x11a   : > { %1255 = vst.msk [vmem:[#allocation2 + $0x2c] sm:$0xf] %vm1243_vm9, %v1170_v53  ;;  %v1168_v57 = vpop.permute.xlu0 %1167  ;;  %v2808_v44 = vrot.slane %v2806_v30, 5  ;;  %v2822_v47 = vshll.u32 %v5092_v42, 16 }
 0x11b   : > { %1254 = vst.msk [vmem:[#allocation2 + $0x28] sm:$0xf] %vm1243_vm9, %v1168_v57  ;;  %3361 = vrot.lane.b32.xlu1 %v3274_v48, %s5618_s27  ;;  %v4909_v48 = vld [vmem:[%s5670_s22 + $0x7c] sm:$0xf]  ;;  %v4995_v57 = vld [vmem:[%s5670_s22 + $0x70] sm:$0xf]  ;;  %v1733_v59 = vsel %vm5770_vm6, %v1728_v50, %v1732_v51 }
 0x11c   : > { %3359 = vrot.lane.b32.xlu0 %v3271_v54, %s5618_s27  ;;  %v4908_v54 = vld [vmem:[%s5670_s22 + $0x78] sm:$0xf]  ;;  %v2185_v62 = vrot.slane %v4995_v57, 5 }
 0x11d   : > { %v1360_v3 = vpop.permute.xlu1 %1359  ;;  %v5050_v57 = vld [vmem:[%s5670_s22 + $0x78] sm:$0xf] }
 0x11e   : > { %1447 = vst.msk [vmem:[#allocation2 + $0x24] sm:$0xf] %vm1437_vm10, %v1360_v3  ;;  %v1358_v8 = vpop.permute.xlu0 %1357  ;;  %v1723_v3 = vsel %vm5770_vm6, %v1718_v55, %v1722_v24  ;;  %v2187_v11 = vrot.slane %v2185_v62, 4  ;;  %v403_v55 = vld [vmem:[%s5670_s22 + $0x7c] sm:$0xf] }
 0x11f   : > { %1446 = vst.msk [vmem:[#allocation2 + $0x20] sm:$0xf] %vm1437_vm10, %v1358_v8  ;;  %845 = vrot.lane.b32.xlu1 %v662_v60, %s5613_s25  ;;  %v1752_v60 = vrot.slane %v1751_v52, 4  ;;  %v4994_v8 = vld [vmem:[%s5670_s22 + $0x6c] sm:$0xe]  ;;  %v673_v1 = vshll.u32 %v403_v55, 16 }
 0x120   : > { %843 = vrot.lane.b32.xlu0 %v652_v5, %s5613_s25  ;;  %v1742_v5 = vrot.slane %v1741_v56, 4 }
 0x121   : > { %v1364_v16 = vpop.permute.xlu1 %1363  ;;  %v1757_v10 = vsel %vm5770_vm6, %v1752_v60, %v1756_v61  ;;  %v402_v61 = vld [vmem:[%s5670_s22 + $0x78] sm:$0xf] }
 0x122   : > { %1449 = vst.msk [vmem:[#allocation2 + $0x2c] sm:$0xf] %vm1437_vm10, %v1364_v16  ;;  %v1362_v63 = vpop.permute.xlu0 %1361  ;;  %v1747_v15 = vsel %vm5770_vm6, %v1742_v5, %v1746_v38  ;;  %v5026_v16 = vrot.slane %v4994_v8, 9  ;;  %v2827_v38 = vshrl.u32 %v5093_v31, 16  ;;  %v408_v5 = vld [vmem:[%s5670_s22 + $0x90] sm:$0xf] }
 0x123   : > { %1448 = vst.msk [vmem:[#allocation2 + $0x28] sm:$0xf] %vm1437_vm10, %v1362_v63  ;;  %1181 = vrot.lane.b32.xlu1 %v1097_v13, %s5612_s24  ;;  %v4999_v13 = vld [vmem:[%s5670_s22 + $0x80] sm:$0x1]  ;;  %v2194_v63 = vrot.slane %v2192_v9, 4  ;;  %v715_v21 = vshll.u32 %v408_v5, 16 }
 0x124   : > { %1179 = vrot.lane.b32.xlu0 %v1094_v17, %s5612_s24  ;;  %v5091_v17 = vld [vmem:[%s5670_s22 + $0x7c] sm:$0xf]  ;;  %v2195_v19 = vrot.slane %v4999_v13, 5  ;;  %v2186_v27 = vsel %vm5672_vm2, %v5026_v16, %v2185_v62  ;;  %v5138_v31 = vld [vmem:[%s5670_s22 + $0x78] sm:$0xe] }
 0x125   : > { %v1921_v28 = vpop.permute.xlu1 %1920  ;;  %v2816_v24 = vshrl.u32 %v5091_v17, 16  ;;  %v6582_v13 = vld [vmem:[%s5670_s22 + $0x7c] sm:$0xf] }
 0x126   : > { %2008 = vst.msk [vmem:[#allocation2 + $0x24] sm:$0xf] %vm1998_vm11, %v1921_v28  ;;  %v1919_v34 = vpop.permute.xlu0 %1918  ;;  %v5027_v28 = vrot.slane %v4997_v20, 9  ;;  %v2196_v33 = vsel %vm5672_vm2, %v2194_v63, %v2195_v19  ;;  %v712_v20 = vshrl.u32 %v408_v5, 16 }
 0x127   : > { %2007 = vst.msk [vmem:[#allocation2 + $0x20] sm:$0xf] %vm1998_vm11, %v1919_v34  ;;  %1185 = vrot.lane.b32.xlu1 %v1104_v22, %s5612_s24  ;;  %v2189_v22 = vsel %vm5672_vm2, %v2187_v11, %v2188_v12  ;;  %v2836_v34 = vshll.u32 %v5094_v25, 16  ;;  %v2818_v37 = vrot.slane %v2816_v24, 4 }
 0x128   : > { %1183 = vrot.lane.b32.xlu0 %v1101_v23, %s5612_s24  ;;  %v2812_v23 = vshll.u32 %v5091_v17, 16 }
 0x129   : > { %v1925_v40 = vpop.permute.xlu1 %1924  ;;  %v6565_v50 = vrot.slane %v2836_v34, 5  ;;  %v328_v34 = vld [vmem:[%s5670_s22 + $0x7c] sm:$0xf] }
 0x12a   : > { %2010 = vst.msk [vmem:[#allocation2 + $0x2c] sm:$0xf] %vm1998_vm11, %v1925_v40  ;;  %v1923_v46 = vpop.permute.xlu0 %1922  ;;  %v6555_v36 = vrot.slane %v2812_v23, 5 }
 0x12b   : > { %2009 = vst.msk [vmem:[#allocation2 + $0x28] sm:$0xf] %vm1998_vm11, %v1923_v46  ;;  %1375 = vrot.lane.b32.xlu1 %v4907_v35, %s5611_s23  ;;  %v2840_v35 = vshrl.u32 %v5094_v25, 16  ;;  %v5051_v46 = vld [vmem:[%s5670_s22 + $0x7c] sm:$0xf] }
 0x12c   : > { %1373 = vrot.lane.b32.xlu0 %v4906_v41, %s5611_s23  ;;  %v2193_v41 = vsel %vm5672_vm2, %v5027_v28, %v2192_v9  ;;  %v2819_v52 = vor.u32 %v2818_v37, %v6555_v36  ;;  %v2824_v9 = vrot.slane %v2822_v47, 5  ;;  %v404_v28 = vld [vmem:[%s5670_s22 + $0x80] sm:$0x1]  ;;  %361 = vst.msk [vmem:[#allocation2 + $0x54] sm:$0xf] %vm339_vm7, %v328_v34 }
 0x12d   : > { %v2258_v53 = vpop.permute.xlu1 %2257  ;;  %v2842_v51 = vrot.slane %v2840_v35, 4  ;;  %v683_v42 = vshll.u32 %v404_v28, 16 }
 0x12e   : > { %2345 = vst.msk [vmem:[#allocation2 + $0x24] sm:$0xf] %vm2335_vm12, %v2258_v53  ;;  %v2256_v58 = vpop.permute.xlu0 %2255  ;;  %v2829_v53 = vrot.slane %v2827_v38, 4  ;;  %v2820_v8 = vrot.slane %v2819_v52, 4 }
 0x12f   : > { %2344 = vst.msk [vmem:[#allocation2 + $0x20] sm:$0xf] %vm2335_vm12, %v2256_v58  ;;  %1379 = vrot.lane.b32.xlu1 %v4909_v48, %s5611_s23  ;;  %v5095_v48 = vld [vmem:[%s5670_s22 + $0x8c] sm:$0x1]  ;;  %v2809_v58 = vor.u32 %v2808_v44, %v2805_v43  ;;  %v2843_v62 = vor.u32 %v2842_v51, %v6565_v50  ;;  %v410_v43 = vld [vmem:[%s5670_s22 + $0x98] sm:$0x1] }
 0x130   : > { %1377 = vrot.lane.b32.xlu0 %v4908_v54, %s5611_s23  ;;  %v2832_v54 = vrot.slane %v2830_v39, 5  ;;  %v2846_v60 = vshll.u32 %v5095_v48, 16  ;;  %v2825_v24 = vsel %vm5770_vm6, %v2820_v8, %v2824_v9  ;;  %v714_v39 = vrot.slane %v712_v20, 4  ;;  %v406_v51 = vld [vmem:[%s5670_s22 + $0x88] sm:$0xf] }
 0x131   : > { %v2262_v2 = vpop.permute.xlu1 %2261  ;;  %v2810_v12 = vrot.slane %v2809_v58, 4  ;;  %v2844_v63 = vrot.slane %v2843_v62, 4  ;;  %v5170_v48 = vrot.slane %v5138_v31, 9  ;;  %v685_v62 = vrot.slane %v683_v42, 5  ;;  %v5143_v20 = vld [vmem:[%s5670_s22 + $0x8c] sm:$0x1] }
 0x132   : > { %2347 = vst.msk [vmem:[#allocation2 + $0x2c] sm:$0xf] %vm2335_vm12, %v2262_v2  ;;  %v2260_v7 = vpop.permute.xlu0 %2259  ;;  %v677_v2 = vshrl.u32 %v403_v55, 16  ;;  %v2848_v19 = vrot.slane %v2846_v60, 5  ;;  %v332_v55 = vld [vmem:[%s5670_s22 + $0x94] sm:$0xf] }
 0x133   : > { %2346 = vst.msk [vmem:[#allocation2 + $0x28] sm:$0xf] %vm2335_vm12, %v2260_v7  ;;  %1936 = vrot.lane.b32.xlu1 %v1733_v59, %s5614_s26  ;;  %v5052_v7 = vld [vmem:[%s5670_s22 + $0x84] sm:$0xf]  ;;  %v2815_v30 = vsel %vm5770_vm6, %v2810_v12, %v6555_v36 }
 0x134   : > { %1934 = vrot.lane.b32.xlu0 %v1723_v3, %s5614_s26  ;;  %v409_v3 = vld [vmem:[%s5670_s22 + $0x94] sm:$0xf]  ;;  %v679_v23 = vrot.slane %v677_v2, 4  ;;  %v2849_v44 = vsel %vm5770_vm6, %v2844_v63, %v2848_v19  ;;  %365 = vst.msk [vmem:[#allocation2 + $0x64] sm:$0xf] %vm339_vm7, %v332_v55  ;;  %v697_v2 = vshll.u32 %v406_v51, 16 }
 0x135   : > { %v2452_v14 = vpop.permute.xlu1 %2451  ;;  %v721_v17 = vshll.u32 %v409_v3, 16 }
 0x136   : > { %2539 = vst.msk [vmem:[#allocation2 + $0x24] sm:$0xf] %vm2529_vm13, %v2452_v14  ;;  %v2450_v18 = vpop.permute.xlu0 %2449  ;;  %v664_v14 = vshrl.u32 %v402_v61, 16  ;;  %v6644_v63 = vrot.slane %v697_v2, 5 }
 0x137   : > { %2538 = vst.msk [vmem:[#allocation2 + $0x20] sm:$0xf] %vm2529_vm13, %v2450_v18  ;;  %1940 = vrot.lane.b32.xlu1 %v1757_v10, %s5614_s26  ;;  %v2833_v10 = vor.u32 %v2832_v54, %v2829_v53  ;;  %v725_v18 = vshrl.u32 %v409_v3, 16  ;;  %v6601_v37 = vrot.slane %v721_v17, 5  ;;  %v405_v54 = vld [vmem:[%s5670_s22 + $0x84] sm:$0xf] }
 0x138   : > { %1938 = vrot.lane.b32.xlu0 %v1747_v15, %s5614_s26  ;;  %v667_v15 = vshll.u32 %v402_v61, 16  ;;  %v331_v61 = vld [vmem:[%s5670_s22 + $0x90] sm:$0xf]  ;;  %v701_v3 = vshrl.u32 %v406_v51, 16  ;;  %v411_v17 = vld [vmem:[%s5670_s22 + $0x9c] sm:$0xf] }
 0x139   : > { %v2456_v26 = vpop.permute.xlu1 %2455  ;;  %v2834_v25 = vrot.slane %v2833_v10, 4  ;;  %v727_v38 = vrot.slane %v725_v18, 4  ;;  %364 = vst.msk [vmem:[#allocation2 + $0x60] sm:$0xf] %vm339_vm7, %v331_v61  ;;  %v739_v31 = vshll.u32 %v411_v17, 16 }
 0x13a   : > { %2541 = vst.msk [vmem:[#allocation2 + $0x2c] sm:$0xf] %vm2529_vm13, %v2456_v26  ;;  %v2454_v32 = vpop.permute.xlu0 %2453  ;;  %v5140_v26 = vld [vmem:[%s5670_s22 + $0x80] sm:$0x1]  ;;  %v703_v19 = vrot.slane %v701_v3, 4 }
 0x13b   : > { %2540 = vst.msk [vmem:[#allocation2 + $0x28] sm:$0xf] %vm2529_vm13, %v2454_v32  ;;  %2273 = vrot.lane.b32.xlu1 %v2189_v22, %s5615_s29  ;;  %v6587_v22 = vrot.slane %v673_v1, 5  ;;  %v666_v32 = vrot.slane %v664_v14, 4  ;;  %v2839_v47 = vsel %vm5770_vm6, %v2834_v25, %v6565_v50  ;;  %v728_v58 = vor.u32 %v727_v38, %v6601_v37  ;;  %v6626_v1 = vld [vmem:[%s5670_s22 + $0x88] sm:$0xf] }
 0x13c   : > { %2271 = vrot.lane.b32.xlu0 %v2186_v27, %s5615_s29  ;;  %v3277_v27 = vrot.slane %v6582_v13, 5 }
 0x13d   : > { %v3013_v40 = vpop.permute.xlu1 %3012  ;;  %v680_v36 = vor.u32 %v679_v23, %v6587_v22  ;;  %v729_v13 = vrot.slane %v728_v58, 4  ;;  %v407_v23 = vld [vmem:[%s5670_s22 + $0x8c] sm:$0x1] }
 0x13e   : > { %3100 = vst.msk [vmem:[#allocation2 + $0x24] sm:$0xf] %vm3090_vm14, %v3013_v40  ;;  %v3011_v45 = vpop.permute.xlu0 %3010  ;;  %v717_v40 = vrot.slane %v715_v21, 5  ;;  %v3278_v9 = vsel %vm5672_vm2, %v5170_v48, %v3277_v27  ;;  %v5141_v21 = vld [vmem:[%s5670_s22 + $0x84] sm:$0xe] }
 0x13f   : > { %3099 = vst.msk [vmem:[#allocation2 + $0x20] sm:$0xf] %vm3090_vm14, %v3011_v45  ;;  %2277 = vrot.lane.b32.xlu1 %v2196_v33, %s5615_s29  ;;  %v669_v33 = vrot.slane %v667_v15, 5  ;;  %v3279_v45 = vrot.slane %v3277_v27, 4  ;;  %v681_v50 = vrot.slane %v680_v36, 4  ;;  %v707_v36 = vshll.u32 %v407_v23, 16 }
 0x140   : > { %2275 = vrot.lane.b32.xlu0 %v2193_v41, %s5615_s29  ;;  %v327_v41 = vld [vmem:[%s5670_s22 + $0x78] sm:$0xf]  ;;  %v718_v60 = vor.u32 %v717_v40, %v714_v39  ;;  %v5171_v40 = vrot.slane %v5141_v21, 9  ;;  %v413_v48 = vld [vmem:[%s5670_s22 + $0xa4] sm:$0x1] }
 0x141   : > { %v3017_v56 = vpop.permute.xlu1 %3016  ;;  %360 = vst.msk [vmem:[#allocation2 + $0x50] sm:$0xf] %vm339_vm7, %v327_v41  ;;  %v670_v53 = vor.u32 %v669_v33, %v666_v32  ;;  %v686_v18 = vsel %vm5770_vm6, %v681_v50, %v685_v62  ;;  %v330_v32 = vld [vmem:[%s5670_s22 + $0x88] sm:$0xf]  ;;  %v704_v41 = vor.u32 %v703_v19, %v6644_v63  ;;  %v755_v58 = vshll.u32 %v413_v48, 16 }
 0x142   : > { %3102 = vst.msk [vmem:[#allocation2 + $0x2c] sm:$0xf] %vm3090_vm14, %v3017_v56  ;;  %v3015_v59 = vpop.permute.xlu0 %3014  ;;  %v719_v15 = vrot.slane %v718_v60, 4  ;;  %v967_v62 = vld [vmem:[%s5670_s22 + $0x7c] sm:$0xf] }
 0x143   : > { %3101 = vst.msk [vmem:[#allocation2 + $0x28] sm:$0xf] %vm3090_vm14, %v3015_v59  ;;  %2467 = vrot.lane.b32.xlu1 %v5051_v46, %s5616_s8  ;;  %v3280_v46 = vrot.slane %v5140_v26, 5  ;;  %v731_v59 = vshll.u32 %v410_v43, 16  ;;  %v671_v10 = vrot.slane %v670_v53, 4 }
 0x144   : > { %2465 = vrot.lane.b32.xlu0 %v5050_v57, %s5616_s8  ;;  %363 = vst.msk [vmem:[#allocation2 + $0x5c] sm:$0xf] %vm339_vm7, %v330_v32  ;;  %v334_v53 = vld [vmem:[%s5670_s22 + $0xa0] sm:$0xf]  ;;  %v970_v19 = vld [vmem:[%s5670_s22 + $0x88] sm:$0xf] }
 0x145   : > { %v3350_v11 = vpop.permute.xlu1 %3349  ;;  %v3281_v5 = vsel %vm5672_vm2, %v3279_v45, %v3280_v46  ;;  %v733_v14 = vrot.slane %v731_v59, 5  ;;  %v724_v45 = vsel %vm5770_vm6, %v719_v15, %v6601_v37  ;;  %367 = vst.msk [vmem:[#allocation2 + $0x6c] sm:$0xf] %vm339_vm7, %v334_v53  ;;  %v705_v37 = vrot.slane %v704_v41, 4  ;;  %v971_v32 = vld [vmem:[%s5670_s22 + $0x8c] sm:$0x1] }
 0x146   : > { %3437 = vst.msk [vmem:[#allocation2 + $0x24] sm:$0xf] %vm3427_vm15, %v3350_v11  ;;  %v3348_v16 = vpop.permute.xlu0 %3347  ;;  %v412_v11 = vld [vmem:[%s5670_s22 + $0xa0] sm:$0xf] }
 0x147   : > { %3436 = vst.msk [vmem:[#allocation2 + $0x20] sm:$0xf] %vm3427_vm15, %v3348_v16  ;;  %2471 = vrot.lane.b32.xlu1 %v5053_v6, %s5616_s8  ;;  %v688_v6 = vshrl.u32 %v405_v54, 16  ;;  %v3284_v16 = vrot.slane %v6626_v1, 5  ;;  %v745_v26 = vshll.u32 %v412_v11, 16  ;;  %v749_v27 = vshrl.u32 %v412_v11, 16 }
 0x148   : > { %2469 = vrot.lane.b32.xlu0 %v5052_v7, %s5616_s8  ;;  %v691_v7 = vshll.u32 %v405_v54, 16  ;;  %v734_v38 = vsel %vm5770_vm6, %v729_v13, %v733_v14  ;;  %v333_v54 = vld [vmem:[%s5670_s22 + $0x9c] sm:$0xf]  ;;  %v973_v11 = vld [vmem:[%s5670_s22 + $0x94] sm:$0xf] }
 0x149   : > { %v834_v29 = vpop.permute.xlu1 %833  ;;  %v3286_v39 = vrot.slane %v3284_v16, 4  ;;  %v747_v42 = vrot.slane %v745_v26, 5  ;;  %v751_v43 = vrot.slane %v749_v27, 4  ;;  %366 = vst.msk [vmem:[#allocation2 + $0x68] sm:$0xf] %vm339_vm7, %v333_v54  ;;  %v3285_v60 = vsel %vm5672_vm2, %v5171_v40, %v3284_v16 }
 0x14a   : > { %917 = vst.msk [vmem:[#allocation2 + $0x34] sm:$0xf] %vm903_vm8, %v834_v29  ;;  %v832_v35 = vpop.permute.xlu0 %831  ;;  %v693_v25 = vrot.slane %v691_v7, 5  ;;  %v676_v29 = vsel %vm5770_vm6, %v671_v10, %v6587_v22  ;;  %v3287_v22 = vrot.slane %v5143_v20, 5  ;;  %v968_v10 = vld [vmem:[%s5670_s22 + $0x80] sm:$0x1] }
 0x14b   : > { %916 = vst.msk [vmem:[#allocation2 + $0x30] sm:$0xf] %vm903_vm8, %v832_v35  ;;  %3028 = vrot.lane.b32.xlu1 %v2825_v24, %s5617_s13  ;;  %v690_v24 = vrot.slane %v688_v6, 4  ;;  %v329_v35 = vld [vmem:[%s5670_s22 + $0x84] sm:$0xf]  ;;  %v1107_v6 = vrot.slane %v967_v62, 5 }
 0x14c   : > { %3026 = vrot.lane.b32.xlu0 %v2815_v30, %s5617_s13  ;;  %v736_v30 = vshrl.u32 %v411_v17, 16  ;;  %362 = vst.msk [vmem:[#allocation2 + $0x58] sm:$0xf] %vm339_vm7, %v329_v35  ;;  %v3288_v55 = vsel %vm5672_vm2, %v3286_v39, %v3287_v22  ;;  %v966_v13 = vld [vmem:[%s5670_s22 + $0x78] sm:$0xe]  ;;  %v1110_v16 = vrot.slane %v968_v10, 5 }
 0x14d   : > { %v3354_v52 = vpop.permute.xlu1 %3353  ;;  %v694_v46 = vor.u32 %v693_v25, %v690_v24  ;;  %v1109_v15 = vrot.slane %v1107_v6, 4  ;;  %v1121_v17 = vrot.slane %v973_v11, 5  ;;  %v4884_v21 = vrot.slane %v966_v13, 9  ;;  %v972_v24 = vld [vmem:[%s5670_s22 + $0x90] sm:$0xe] }
 0x14e   : > { %3439 = vst.msk [vmem:[#allocation2 + $0x2c] sm:$0xf] %vm3427_vm15, %v3354_v52  ;;  %v3352_v56 = vpop.permute.xlu0 %3351  ;;  %v5510_v57 = vld [vmem:[#allocation2 + $0x20] sm:$0xff]   ;;  %v738_v51 = vrot.slane %v736_v30, 4  ;;  %v741_v52 = vrot.slane %v739_v31, 5  ;;  %v4886_v31 = vrot.slane %v972_v24, 9 }
 0x14f   : > { %3438 = vst.msk [vmem:[#allocation2 + $0x28] sm:$0xf] %vm3427_vm15, %v3352_v56  ;;  %3032 = vrot.lane.b32.xlu1 %v2849_v44, %s5617_s13  ;;  %5365 = vmatprep.mubr.bf16.mxu0 %v5510_v57  ;;  %v709_v56 = vrot.slane %v707_v36, 5  ;;  %v752_v57 = vor.u32 %v751_v43, %v747_v42  ;;  %v695_v61 = vrot.slane %v694_v46, 4  ;;  %v1111_v25 = vsel %vm5672_vm2, %v1109_v15, %v1110_v16  ;;  %v969_v35 = vld [vmem:[%s5670_s22 + $0x84] sm:$0xe] }
 0x150   : > { %3030 = vrot.lane.b32.xlu0 %v2839_v47, %s5617_s13  ;;  %v742_v50 = vor.u32 %v741_v52, %v738_v51  ;;  %v1123_v26 = vrot.slane %v1121_v17, 4  ;;  %v1108_v30 = vsel %vm5672_vm2, %v4884_v21, %v1107_v6  ;;  %v1117_v22 = vrot.slane %v971_v32, 5  ;;  %v977_v43 = vld [vmem:[%s5670_s22 + $0xa4] sm:$0x1]  ;;  %v4958_v6 = vld [vmem:[%s5670_s22 + $0x9c] sm:$0xf] }
 0x151   : > { %v838_v8 = vpop.permute.xlu1 %837  ;;  %v710_v2 = vsel %vm5770_vm6, %v705_v37, %v709_v56  ;;  %v753_v3 = vrot.slane %v752_v57, 4  ;;  %v1122_v36 = vsel %vm5672_vm2, %v4886_v31, %v1121_v17  ;;  %v1131_v51 = vrot.slane %v977_v43, 5  ;;  %v4952_v56 = vld [vmem:[%s5670_s22 + $0x84] sm:$0xf]  ;;  %v4954_v10 = vld [vmem:[%s5670_s22 + $0x8c] sm:$0x1] }
 0x152   : > { %919 = vst.msk [vmem:[#allocation2 + $0x3c] sm:$0xf] %vm903_vm8, %v838_v8  ;;  %v836_v12 = vpop.permute.xlu0 %835  ;;  %v700_v8 = vsel %vm5770_vm6, %v695_v61, %v6644_v63  ;;  %v974_v63 = vld [vmem:[%s5670_s22 + $0x98] sm:$0x1]  ;;  %v1762_v62 = vshll.u32 %v4952_v56, 16  ;;  %v1807_v16 = vshrl.u32 %v4958_v6, 16 }
 0x153   : > { %918 = vst.msk [vmem:[#allocation2 + $0x38] sm:$0xf] %vm903_vm8, %v836_v12  ;;  %3365 = vrot.lane.b32.xlu1 %v3281_v5, %s5618_s27  ;;  %v757_v5 = vrot.slane %v755_v58, 5  ;;  %v1124_v27 = vrot.slane %v974_v63, 5  ;;  %v4915_v15 = vld [vmem:[%s5670_s22 + $0xa0] sm:$0xf] }
 0x154   : > { %3363 = vrot.lane.b32.xlu0 %v3278_v9, %s5618_s27  ;;  %v743_v9 = vrot.slane %v742_v50, 4  ;;  %v1759_v50 = vshrl.u32 %v4952_v56, 16  ;;  %v1810_v17 = vshll.u32 %v4958_v6, 16  ;;  %v4956_v21 = vld [vmem:[%s5670_s22 + $0x94] sm:$0xf] }
 0x155   : > { %v1174_v28 = vpop.permute.xlu1 %1173  ;;  %v758_v14 = vsel %vm5770_vm6, %v753_v3, %v757_v5  ;;  %v4910_v5 = vld [vmem:[%s5670_s22 + $0x84] sm:$0xf]  ;;  %v4955_v24 = vld [vmem:[%s5670_s22 + $0x90] sm:$0xf]  ;;  %v1792_v32 = vshll.u32 %v4956_v21, 16 }
 0x156   : > { %1257 = vst.msk [vmem:[#allocation2 + $0x34] sm:$0xf] %vm1243_vm9, %v1174_v28  ;;  %v1172_v33 = vpop.permute.xlu0 %1171  ;;  %v5511_v34 = vld [vmem:[#allocation2 + $0x28] sm:$0xff]   ;;  %v748_v20 = vsel %vm5770_vm6, %v743_v9, %v747_v42  ;;  %v1114_v28 = vrot.slane %v970_v19, 5  ;;  %v4885_v42 = vrot.slane %v969_v35, 9  ;;  %v1761_v11 = vrot.slane %v1759_v50, 4 }
 0x157   : > { %1256 = vst.msk [vmem:[#allocation2 + $0x30] sm:$0xf] %vm1243_vm9, %v1172_v33  ;;  %849 = vrot.lane.b32.xlu1 %v686_v18, %s5613_s25  ;;  %5366 = vmatmul.mubr.bf16.gmra.mxu0 %v5511_v34  ;;  %v976_v33 = vld [vmem:[%s5670_s22 + $0xa0] sm:$0xf]  ;;  %v1812_v31 = vrot.slane %v1810_v17, 5 }
 0x158   : > { %847 = vrot.lane.b32.xlu0 %v676_v29, %s5613_s25  ;;  %v1116_v39 = vrot.slane %v1114_v28, 4  ;;  %v1128_v40 = vrot.slane %v976_v33, 5  ;;  %v1796_v33 = vshrl.u32 %v4956_v21, 16 }
 0x159   : > { %v1178_v44 = vpop.permute.xlu1 %1177 }
 0x15a   : > { %1259 = vst.msk [vmem:[#allocation2 + $0x3c] sm:$0xf] %vm1243_vm9, %v1178_v44  ;;  %v1176_v47 = vpop.permute.xlu0 %1175  ;;  %v1118_v46 = vsel %vm5672_vm2, %v1116_v39, %v1117_v22  ;;  %v1130_v48 = vrot.slane %v1128_v40, 4  ;;  %v1783_v39 = vshrl.u32 %v4955_v24, 16  ;;  %v1786_v22 = vshll.u32 %v4955_v24, 16 }
 0x15b   : > { %1258 = vst.msk [vmem:[#allocation2 + $0x38] sm:$0xf] %vm1243_vm9, %v1176_v47  ;;  %857 = vrot.lane.b32.xlu1 %v734_v38, %s5613_s25  ;;  %v1125_v38 = vsel %vm5672_vm2, %v1123_v26, %v1124_v27  ;;  %v1115_v47 = vsel %vm5672_vm2, %v4885_v42, %v1114_v28  ;;  %v4960_v27 = vld [vmem:[%s5670_s22 + $0xa4] sm:$0x1]  ;;  %v4961_v42 = vld [vmem:[%s5670_s22 + $0xa8] sm:$0xf] }
 0x15c   : > { %855 = vrot.lane.b32.xlu0 %v724_v45, %s5613_s25  ;;  %v975_v45 = vld [vmem:[%s5670_s22 + $0x9c] sm:$0xe]  ;;  %v1132_v37 = vsel %vm5672_vm2, %v1130_v48, %v1131_v51  ;;  %v4917_v48 = vld [vmem:[%s5670_s22 + $0xac] sm:$0xf]  ;;  %v4916_v51 = vld [vmem:[%s5670_s22 + $0xa8] sm:$0xf] }
 0x15d   : > { %v1368_v59 = vpop.permute.xlu1 %1367  ;;  %v4887_v53 = vrot.slane %v975_v45, 9  ;;  %v1785_v56 = vrot.slane %v1783_v39, 4 }
 0x15e   : > { %1451 = vst.msk [vmem:[#allocation2 + $0x34] sm:$0xf] %vm1437_vm10, %v1368_v59  ;;  %v1366_v1 = vpop.permute.xlu0 %1365 }
 0x15f   : > { %1450 = vst.msk [vmem:[#allocation2 + $0x30] sm:$0xf] %vm1437_vm10, %v1366_v1  ;;  %3369 = vrot.lane.b32.xlu1 %v3288_v55, %s5618_s27  ;;  %v4953_v55 = vld [vmem:[%s5670_s22 + $0x88] sm:$0xf]  ;;  %v1129_v58 = vsel %vm5672_vm2, %v4887_v53, %v1128_v40  ;;  %v6779_v53 = vrot.slane %v1792_v32, 5 }
 0x160   : > { %3367 = vrot.lane.b32.xlu0 %v3285_v60, %s5618_s27  ;;  %v1768_v60 = vshll.u32 %v4953_v55, 16  ;;  %v1772_v61 = vshrl.u32 %v4953_v55, 16  ;;  %v4911_v1 = vld [vmem:[%s5670_s22 + $0x88] sm:$0xf] }
 0x161   : > { %v1372_v7 = vpop.permute.xlu1 %1371 }
 0x162   : > { %1453 = vst.msk [vmem:[#allocation2 + $0x3c] sm:$0xf] %vm1437_vm10, %v1372_v7  ;;  %v1370_v12 = vpop.permute.xlu0 %1369  ;;  %v1774_v9 = vrot.slane %v1772_v61, 4 }
 0x163   : > { %1452 = vst.msk [vmem:[#allocation2 + $0x38] sm:$0xf] %vm1437_vm10, %v1370_v12  ;;  %853 = vrot.lane.b32.xlu1 %v710_v2, %s5613_s25  ;;  %v4959_v2 = vld [vmem:[%s5670_s22 + $0xa0] sm:$0xf]  ;;  %v1764_v12 = vrot.slane %v1762_v62, 5 }
 0x164   : > { %851 = vrot.lane.b32.xlu0 %v700_v8, %s5613_s25  ;;  %v6750_v8 = vrot.slane %v1768_v60, 5  ;;  %v1816_v13 = vshll.u32 %v4959_v2, 16 }
 0x165   : > { %v1929_v18 = vpop.permute.xlu1 %1928  ;;  %v1765_v26 = vor.u32 %v1764_v12, %v1761_v11 }
 0x166   : > { %2012 = vst.msk [vmem:[#allocation2 + $0x34] sm:$0xf] %vm1998_vm11, %v1929_v18  ;;  %v1927_v23 = vpop.permute.xlu0 %1926  ;;  %v1775_v19 = vor.u32 %v1774_v9, %v6750_v8  ;;  %v6766_v28 = vrot.slane %v1816_v13, 5 }
 0x167   : > { %2011 = vst.msk [vmem:[#allocation2 + $0x30] sm:$0xf] %vm1998_vm11, %v1927_v23  ;;  %861 = vrot.lane.b32.xlu1 %v758_v14, %s5613_s25  ;;  %v1820_v14 = vshrl.u32 %v4959_v2, 16  ;;  %v1778_v23 = vshll.u32 %v4954_v10, 16  ;;  %v1766_v43 = vrot.slane %v1765_v26, 4 }
 0x168   : > { %859 = vrot.lane.b32.xlu0 %v748_v20, %s5613_s25  ;;  %v4914_v20 = vld [vmem:[%s5670_s22 + $0x9c] sm:$0xf] }
 0x169   : > { %v1933_v29 = vpop.permute.xlu1 %1932  ;;  %v1771_v50 = vsel %vm5770_vm6, %v1766_v43, %v6750_v8 }
 0x16a   : > { %2014 = vst.msk [vmem:[#allocation2 + $0x3c] sm:$0xf] %vm1998_vm11, %v1933_v29  ;;  %v1931_v34 = vpop.permute.xlu0 %1930  ;;  %v1822_v29 = vrot.slane %v1820_v14, 4 }
 0x16b   : > { %2013 = vst.msk [vmem:[#allocation2 + $0x38] sm:$0xf] %vm1998_vm11, %v1931_v34  ;;  %1189 = vrot.lane.b32.xlu1 %v1111_v25, %s5612_s24  ;;  %v4913_v25 = vld [vmem:[%s5670_s22 + $0x94] sm:$0xf]  ;;  %v4962_v34 = vld [vmem:[%s5670_s22 + $0xac] sm:$0xf] }
 0x16c   : > { %1187 = vrot.lane.b32.xlu0 %v1108_v30, %s5612_s24  ;;  %v1809_v30 = vrot.slane %v1807_v16, 4  ;;  %v1840_v45 = vshll.u32 %v4962_v34, 16 }
 0x16d   : > { %v2266_v41 = vpop.permute.xlu1 %2265 }
 0x16e   : > { %2349 = vst.msk [vmem:[#allocation2 + $0x34] sm:$0xf] %vm2335_vm12, %v2266_v41  ;;  %v2264_v44 = vpop.permute.xlu0 %2263  ;;  %v1776_v41 = vrot.slane %v1775_v19, 4  ;;  %v6790_v62 = vrot.slane %v1840_v45, 5  ;;  %v5004_v45 = vld [vmem:[%s5670_s22 + $0x94] sm:$0xf] }
 0x16f   : > { %2348 = vst.msk [vmem:[#allocation2 + $0x30] sm:$0xf] %vm2335_vm12, %v2264_v44  ;;  %1197 = vrot.lane.b32.xlu1 %v1125_v38, %s5612_s24  ;;  %v4912_v38 = vld [vmem:[%s5670_s22 + $0x90] sm:$0xf]  ;;  %v1826_v44 = vshll.u32 %v4960_v27, 16 }
 0x170   : > { %1195 = vrot.lane.b32.xlu0 %v1122_v36, %s5612_s24  ;;  %v1780_v36 = vrot.slane %v1778_v23, 5  ;;  %v5001_v23 = vld [vmem:[%s5670_s22 + $0x88] sm:$0xf] }
 0x171   : > { %v2270_v52 = vpop.permute.xlu1 %2269 }
 0x172   : > { %2351 = vst.msk [vmem:[#allocation2 + $0x3c] sm:$0xf] %vm2335_vm12, %v2270_v52  ;;  %v2268_v54 = vpop.permute.xlu0 %2267  ;;  %v1823_v52 = vor.u32 %v1822_v29, %v6766_v28  ;;  %v1781_v61 = vsel %vm5770_vm6, %v1776_v41, %v1780_v36  ;;  %v5002_v29 = vld [vmem:[%s5670_s22 + $0x8c] sm:$0x1] }
 0x173   : > { %2350 = vst.msk [vmem:[#allocation2 + $0x38] sm:$0xf] %vm2335_vm12, %v2268_v54  ;;  %1193 = vrot.lane.b32.xlu1 %v1118_v46, %s5612_s24  ;;  %v1844_v46 = vshrl.u32 %v4962_v34, 16  ;;  %v1798_v54 = vrot.slane %v1796_v33, 4  ;;  %v5000_v34 = vld [vmem:[%s5670_s22 + $0x84] sm:$0xe] }
 0x174   : > { %1191 = vrot.lane.b32.xlu0 %v1115_v47, %s5612_s24  ;;  %v1813_v47 = vor.u32 %v1812_v31, %v1809_v30  ;;  %v1824_v2 = vrot.slane %v1823_v52, 4  ;;  %v2199_v30 = vrot.slane %v5001_v23, 5  ;;  %v5028_v41 = vrot.slane %v5000_v34, 9  ;;  %v5098_v34 = vld [vmem:[%s5670_s22 + $0x98] sm:$0x1] }
 0x175   : > { %v2460_v57 = vpop.permute.xlu1 %2459 }
 0x176   : > { %2543 = vst.msk [vmem:[#allocation2 + $0x34] sm:$0xf] %vm2529_vm13, %v2460_v57  ;;  %v2458_v59 = vpop.permute.xlu0 %2457  ;;  %v1788_v57 = vrot.slane %v1786_v22, 5  ;;  %v1814_v10 = vrot.slane %v1813_v47, 4  ;;  %v2201_v22 = vrot.slane %v2199_v30, 4 }
 0x177   : > { %2542 = vst.msk [vmem:[#allocation2 + $0x30] sm:$0xf] %vm2529_vm13, %v2458_v59  ;;  %1201 = vrot.lane.b32.xlu1 %v1132_v37, %s5612_s24  ;;  %v4957_v37 = vld [vmem:[%s5670_s22 + $0x98] sm:$0x1]  ;;  %v1834_v59 = vshll.u32 %v4961_v42, 16 }
 0x178   : > { %1199 = vrot.lane.b32.xlu0 %v1129_v58, %s5612_s24  ;;  %v1831_v58 = vshrl.u32 %v4961_v42, 16  ;;  %v1802_v6 = vshll.u32 %v4957_v37, 16  ;;  %v1789_v11 = vor.u32 %v1788_v57, %v1785_v56  ;;  %v1819_v21 = vsel %vm5770_vm6, %v1814_v10, %v6766_v28  ;;  %v5005_v57 = vld [vmem:[%s5670_s22 + $0x98] sm:$0x1] }
 0x179   : > { %v2464_v3 = vpop.permute.xlu1 %2463  ;;  %v1836_v13 = vrot.slane %v1834_v59, 5  ;;  %v2200_v37 = vsel %vm5672_vm2, %v5028_v41, %v2199_v30  ;;  %v5102_v30 = vld [vmem:[%s5670_s22 + $0xa8] sm:$0xf] }
 0x17a   : > { %2545 = vst.msk [vmem:[#allocation2 + $0x3c] sm:$0xf] %vm2529_vm13, %v2464_v3  ;;  %v2462_v7 = vpop.permute.xlu0 %2461  ;;  %v1828_v3 = vrot.slane %v1826_v44, 5  ;;  %v1833_v12 = vrot.slane %v1831_v58, 4  ;;  %v5008_v44 = vld [vmem:[%s5670_s22 + $0xa4] sm:$0x1] }
 0x17b   : > { %2544 = vst.msk [vmem:[#allocation2 + $0x38] sm:$0xf] %vm2529_vm13, %v2462_v7  ;;  %1383 = vrot.lane.b32.xlu1 %v4911_v1, %s5611_s23  ;;  %v1846_v1 = vrot.slane %v1844_v46, 4  ;;  %v4963_v7 = vld [vmem:[%s5670_s22 + $0xb0] sm:$0x1]  ;;  %v2899_v41 = vshrl.u32 %v5102_v30, 16 }
 0x17c   : > { %1381 = vrot.lane.b32.xlu0 %v4910_v5, %s5611_s23  ;;  %v1799_v5 = vor.u32 %v1798_v54, %v6779_v53  ;;  %v1829_v16 = vsel %vm5770_vm6, %v1824_v2, %v1828_v3  ;;  %v1837_v19 = vor.u32 %v1836_v13, %v1833_v12  ;;  %v2206_v54 = vrot.slane %v5004_v45, 5  ;;  %v5010_v58 = vld [vmem:[%s5670_s22 + $0xac] sm:$0xf] }
 0x17d   : > { %v3021_v18 = vpop.permute.xlu1 %3020  ;;  %v1847_v14 = vor.u32 %v1846_v1, %v6790_v62  ;;  %v2220_v1 = vrot.slane %v5010_v58, 5 }
 0x17e   : > { %3104 = vst.msk [vmem:[#allocation2 + $0x34] sm:$0xf] %vm3090_vm14, %v3021_v18  ;;  %v3019_v63 = vpop.permute.xlu0 %3018  ;;  %v1800_v17 = vrot.slane %v1799_v5, 4  ;;  %v1804_v18 = vrot.slane %v1802_v6, 5  ;;  %v1838_v33 = vrot.slane %v1837_v19, 4 }
 0x17f   : > { %3103 = vst.msk [vmem:[#allocation2 + $0x30] sm:$0xf] %vm3090_vm14, %v3019_v63  ;;  %1391 = vrot.lane.b32.xlu1 %v4915_v15, %s5611_s23  ;;  %v1850_v15 = vshll.u32 %v4963_v7, 16  ;;  %v1790_v63 = vrot.slane %v1789_v11, 4  ;;  %v1848_v26 = vrot.slane %v1847_v14, 4  ;;  %v2222_v11 = vrot.slane %v2220_v1, 4 }
 0x180   : > { %1389 = vrot.lane.b32.xlu0 %v4914_v20, %s5611_s23  ;;  %v1805_v28 = vsel %vm5770_vm6, %v1800_v17, %v1804_v18  ;;  %v1843_v43 = vsel %vm5770_vm6, %v1838_v33, %v6790_v62  ;;  %v2209_v62 = vrot.slane %v5005_v57, 5  ;;  %v5011_v6 = vld [vmem:[%s5670_s22 + $0xb0] sm:$0x1] }
 0x181   : > { %v3025_v35 = vpop.permute.xlu1 %3024  ;;  %v1852_v27 = vrot.slane %v1850_v15, 5  ;;  %v1795_v32 = vsel %vm5770_vm6, %v1790_v63, %v6779_v53  ;;  %v2216_v53 = vrot.slane %v5008_v44, 5  ;;  %v2223_v12 = vrot.slane %v5011_v6, 5  ;;  %v5096_v18 = vld [vmem:[%s5670_s22 + $0x90] sm:$0xf] }
 0x182   : > { %3106 = vst.msk [vmem:[#allocation2 + $0x3c] sm:$0xf] %vm3090_vm14, %v3025_v35  ;;  %v3023_v40 = vpop.permute.xlu0 %3022  ;;  %v5007_v35 = vld [vmem:[%s5670_s22 + $0xa0] sm:$0xf] }
 0x183   : > { %3105 = vst.msk [vmem:[#allocation2 + $0x38] sm:$0xf] %vm3090_vm14, %v3023_v40  ;;  %1387 = vrot.lane.b32.xlu1 %v4913_v25, %s5611_s23  ;;  %v1853_v39 = vsel %vm5770_vm6, %v1848_v26, %v1852_v27  ;;  %v2202_v40 = vrot.slane %v5002_v29, 5  ;;  %v2213_v36 = vrot.slane %v5007_v35, 5  ;;  %v2224_v17 = vsel %vm5672_vm2, %v2222_v11, %v2223_v12  ;;  %v5055_v26 = vld [vmem:[%s5670_s22 + $0x94] sm:$0xf] }
 0x184   : > { %1385 = vrot.lane.b32.xlu0 %v4912_v38, %s5611_s23  ;;  %v5103_v27 = vld [vmem:[%s5670_s22 + $0xac] sm:$0xf]  ;;  %v5054_v29 = vld [vmem:[%s5670_s22 + $0x90] sm:$0xf]  ;;  %v5100_v44 = vld [vmem:[%s5670_s22 + $0xa0] sm:$0xf] }
 0x185   : > { %v3358_v55 = vpop.permute.xlu1 %3357  ;;  %v2203_v52 = vsel %vm5672_vm2, %v2201_v22, %v2202_v40  ;;  %v2215_v47 = vrot.slane %v2213_v36, 4  ;;  %v2912_v22 = vshrl.u32 %v5103_v27, 16  ;;  %v5059_v40 = vld [vmem:[%s5670_s22 + $0xac] sm:$0xf]  ;;  %v2884_v57 = vshll.u32 %v5100_v44, 16 }
 0x186   : > { %3441 = vst.msk [vmem:[#allocation2 + $0x34] sm:$0xf] %vm3427_vm15, %v3358_v55  ;;  %v3356_v60 = vpop.permute.xlu0 %3355  ;;  %v2888_v58 = vshrl.u32 %v5100_v44, 16  ;;  %v5061_v11 = vld [vmem:[%s5670_s22 + $0xb8] sm:$0xf] }
 0x187   : > { %3440 = vst.msk [vmem:[#allocation2 + $0x30] sm:$0xf] %vm3427_vm15, %v3356_v60  ;;  %1395 = vrot.lane.b32.xlu1 %v4917_v48, %s5611_s23  ;;  %v5003_v60 = vld [vmem:[%s5670_s22 + $0x90] sm:$0xe]  ;;  %v5060_v12 = vld [vmem:[%s5670_s22 + $0xb4] sm:$0xf] }
 0x188   : > { %1393 = vrot.lane.b32.xlu0 %v4916_v51, %s5611_s23  ;;  %v5006_v51 = vld [vmem:[%s5670_s22 + $0x9c] sm:$0xe]  ;;  %v5029_v5 = vrot.slane %v5003_v60, 9  ;;  %v415_v44 = vld [vmem:[%s5670_s22 + $0xac] sm:$0xf] }
 0x189   : > { %v842_v9 = vpop.permute.xlu1 %841  ;;  %v5030_v56 = vrot.slane %v5006_v51, 9  ;;  %v5099_v51 = vld [vmem:[%s5670_s22 + $0x9c] sm:$0xf] }
 0x18a   : > { %921 = vst.msk [vmem:[#allocation2 + $0x44] sm:$0xf] %vm903_vm8, %v842_v9  ;;  %v840_v8 = vpop.permute.xlu0 %839  ;;  %v5009_v9 = vld [vmem:[%s5670_s22 + $0xa8] sm:$0xe] }
 0x18b   : > { %920 = vst.msk [vmem:[#allocation2 + $0x40] sm:$0xf] %vm903_vm8, %v840_v8  ;;  %1944 = vrot.lane.b32.xlu1 %v1781_v61, %s5614_s26  ;;  %v2217_v61 = vsel %vm5672_vm2, %v2215_v47, %v2216_v53  ;;  %v2214_v3 = vsel %vm5672_vm2, %v5030_v56, %v2213_v36  ;;  %v2207_v8 = vsel %vm5672_vm2, %v5029_v5, %v2206_v54  ;;  %v5031_v14 = vrot.slane %v5009_v9, 9  ;;  %v5104_v53 = vld [vmem:[%s5670_s22 + $0xb0] sm:$0x1] }
 0x18c   : > { %1942 = vrot.lane.b32.xlu0 %v1771_v50, %s5614_s26  ;;  %v2208_v50 = vrot.slane %v2206_v54, 4  ;;  %v2902_v36 = vshll.u32 %v5102_v30, 16  ;;  %v5105_v5 = vld [vmem:[%s5670_s22 + $0xb4] sm:$0xf] }
 0x18d   : > { %v3362_v20 = vpop.permute.xlu1 %3361 }
 0x18e   : > { %3443 = vst.msk [vmem:[#allocation2 + $0x3c] sm:$0xf] %vm3427_vm15, %v3362_v20  ;;  %v3360_v24 = vpop.permute.xlu0 %3359  ;;  %v5512_v25 = vld [vmem:[#allocation2 + $0x30] sm:$0xff]   ;;  %v2210_v10 = vsel %vm5672_vm2, %v2208_v50, %v2209_v62  ;;  %v2904_v56 = vrot.slane %v2902_v36, 5  ;;  %v2875_v50 = vshrl.u32 %v5099_v51, 16  ;;  %v2878_v62 = vshll.u32 %v5099_v51, 16 }
 0x18f   : > { %3442 = vst.msk [vmem:[#allocation2 + $0x38] sm:$0xf] %vm3427_vm15, %v3360_v24  ;;  %1952 = vrot.lane.b32.xlu1 %v1829_v16, %s5614_s26  ;;  %5369 = vmatprep.mubr.bf16.mxu0 %v5512_v25  ;;  %v5097_v16 = vld [vmem:[%s5670_s22 + $0x94] sm:$0xf]  ;;  %v2851_v24 = vshrl.u32 %v5096_v18, 16  ;;  %v2854_v25 = vshll.u32 %v5096_v18, 16 }
 0x190   : > { %1950 = vrot.lane.b32.xlu0 %v1819_v21, %s5614_s26  ;;  %v2221_v21 = vsel %vm5672_vm2, %v5031_v14, %v2220_v1  ;;  %v2860_v19 = vshll.u32 %v5097_v16, 16  ;;  %v2864_v23 = vshrl.u32 %v5097_v16, 16  ;;  %v6907_v14 = vrot.slane %v2884_v57, 5 }
 0x191   : > { %v846_v31 = vpop.permute.xlu1 %845  ;;  %v2853_v35 = vrot.slane %v2851_v24, 4  ;;  %v2877_v18 = vrot.slane %v2875_v50, 4  ;;  %v773_v57 = vshrl.u32 %v415_v44, 16 }
 0x192   : > { %923 = vst.msk [vmem:[#allocation2 + $0x4c] sm:$0xf] %vm903_vm8, %v846_v31  ;;  %v844_v38 = vpop.permute.xlu0 %843  ;;  %v2866_v33 = vrot.slane %v2864_v23, 4 }
 0x193   : > { %922 = vst.msk [vmem:[#allocation2 + $0x48] sm:$0xf] %vm903_vm8, %v844_v38  ;;  %1948 = vrot.lane.b32.xlu1 %v1805_v28, %s5614_s26  ;;  %v2856_v38 = vrot.slane %v2854_v25, 5  ;;  %v5107_v25 = vld [vmem:[%s5670_s22 + $0xbc] sm:$0x1] }
 0x194   : > { %1946 = vrot.lane.b32.xlu0 %v1795_v32, %s5614_s26  ;;  %v6878_v32 = vrot.slane %v2860_v19, 5 }
 0x195   : > { %v1182_v42 = vpop.permute.xlu1 %1181  ;;  %v2857_v47 = vor.u32 %v2856_v38, %v2853_v35 }
 0x196   : > { %1261 = vst.msk [vmem:[#allocation2 + $0x44] sm:$0xf] %vm1243_vm9, %v1182_v42  ;;  %v1180_v46 = vpop.permute.xlu0 %1179  ;;  %v5513_v48 = vld [vmem:[#allocation2 + $0x38] sm:$0xff]  }
 0x197   : > { %1260 = vst.msk [vmem:[#allocation2 + $0x40] sm:$0xf] %vm1243_vm9, %v1180_v46  ;;  %1956 = vrot.lane.b32.xlu1 %v1853_v39, %s5614_s26  ;;  %5370 = vmatmul.mubr.bf16.gmra.mxu0 %v5513_v48  ;;  %v2908_v39 = vshll.u32 %v5103_v27, 16  ;;  %v2867_v46 = vor.u32 %v2866_v33, %v6878_v32  ;;  %v2870_v48 = vshll.u32 %v5098_v34, 16  ;;  %v2858_v6 = vrot.slane %v2857_v47, 4 }
 0x198   : > { %1954 = vrot.lane.b32.xlu0 %v1843_v43, %s5614_s26  ;;  %v5058_v43 = vld [vmem:[%s5670_s22 + $0xa8] sm:$0xf] }
 0x199   : > { %v1186_v55 = vpop.permute.xlu1 %1185  ;;  %v6894_v54 = vrot.slane %v2908_v39, 5  ;;  %v2863_v24 = vsel %vm5770_vm6, %v2858_v6, %v6878_v32 }
 0x19a   : > { %1263 = vst.msk [vmem:[#allocation2 + $0x4c] sm:$0xf] %vm1243_vm9, %v1186_v55  ;;  %v1184_v59 = vpop.permute.xlu0 %1183  ;;  %v2914_v55 = vrot.slane %v2912_v22, 4  ;;  %v2942_v22 = vshll.u32 %v5107_v25, 16 }
 0x19b   : > { %1262 = vst.msk [vmem:[#allocation2 + $0x48] sm:$0xf] %vm1243_vm9, %v1184_v59  ;;  %2281 = vrot.lane.b32.xlu1 %v2203_v52, %s5615_s29  ;;  %v5057_v52 = vld [vmem:[%s5670_s22 + $0xa0] sm:$0xf]  ;;  %v5106_v59 = vld [vmem:[%s5670_s22 + $0xb8] sm:$0xf] }
 0x19c   : > { %2279 = vrot.lane.b32.xlu0 %v2200_v37, %s5615_s29  ;;  %v2901_v37 = vrot.slane %v2899_v41, 4  ;;  %v2932_v9 = vshll.u32 %v5106_v59, 16 }
 0x19d   : > { %v1376_v2 = vpop.permute.xlu1 %1375 }
 0x19e   : > { %1455 = vst.msk [vmem:[#allocation2 + $0x44] sm:$0xf] %vm1437_vm10, %v1376_v2  ;;  %v1374_v7 = vpop.permute.xlu0 %1373  ;;  %v2868_v2 = vrot.slane %v2867_v46, 4 }
 0x19f   : > { %1454 = vst.msk [vmem:[#allocation2 + $0x40] sm:$0xf] %vm1437_vm10, %v1374_v7  ;;  %2289 = vrot.lane.b32.xlu1 %v2217_v61, %s5615_s29  ;;  %v5056_v61 = vld [vmem:[%s5670_s22 + $0x9c] sm:$0xf]  ;;  %v2918_v7 = vshll.u32 %v5104_v53, 16  ;;  %v2944_v53 = vrot.slane %v2942_v22, 5 }
 0x1a0   : > { %2287 = vrot.lane.b32.xlu0 %v2214_v3, %s5615_s29  ;;  %v2872_v3 = vrot.slane %v2870_v48, 5 }
 0x1a1   : > { %v1380_v13 = vpop.permute.xlu1 %1379 }
 0x1a2   : > { %1457 = vst.msk [vmem:[#allocation2 + $0x4c] sm:$0xf] %vm1437_vm10, %v1380_v13  ;;  %v1378_v15 = vpop.permute.xlu0 %1377  ;;  %v2915_v13 = vor.u32 %v2914_v55, %v6894_v54  ;;  %v2873_v23 = vsel %vm5770_vm6, %v2868_v2, %v2872_v3  ;;  %v5144_v3 = vld [vmem:[%s5670_s22 + $0x90] sm:$0xe] }
 0x1a3   : > { %1456 = vst.msk [vmem:[#allocation2 + $0x48] sm:$0xf] %vm1437_vm10, %v1378_v15  ;;  %2285 = vrot.lane.b32.xlu1 %v2210_v10, %s5615_s29  ;;  %v2936_v10 = vshrl.u32 %v5106_v59, 16  ;;  %v2890_v15 = vrot.slane %v2888_v58, 4 }
 0x1a4   : > { %2283 = vrot.lane.b32.xlu0 %v2207_v8, %s5615_s29  ;;  %v2905_v8 = vor.u32 %v2904_v56, %v2901_v37  ;;  %v769_v56 = vshll.u32 %v415_v44, 16 }
 0x1a5   : > { %v1937_v20 = vpop.permute.xlu1 %1936  ;;  %v2938_v27 = vrot.slane %v2936_v10, 4  ;;  %v2891_v30 = vor.u32 %v2890_v15, %v6907_v14 }
 0x1a6   : > { %2016 = vst.msk [vmem:[#allocation2 + $0x44] sm:$0xf] %vm1998_vm11, %v1937_v20  ;;  %v1935_v63 = vpop.permute.xlu0 %1934  ;;  %v2880_v20 = vrot.slane %v2878_v62, 5  ;;  %v2906_v34 = vrot.slane %v2905_v8, 4  ;;  %v5146_v62 = vld [vmem:[%s5670_s22 + $0x98] sm:$0x1] }
 0x1a7   : > { %2015 = vst.msk [vmem:[#allocation2 + $0x40] sm:$0xf] %vm1998_vm11, %v1935_v63  ;;  %2293 = vrot.lane.b32.xlu1 %v2224_v17, %s5615_s29  ;;  %v5101_v17 = vld [vmem:[%s5670_s22 + $0xa4] sm:$0x1]  ;;  %v2926_v63 = vshll.u32 %v5105_v5, 16  ;;  %v2892_v36 = vrot.slane %v2891_v30, 4 }
 0x1a8   : > { %2291 = vrot.lane.b32.xlu0 %v2221_v21, %s5615_s29  ;;  %v2923_v21 = vshrl.u32 %v5105_v5, 16  ;;  %v2881_v35 = vor.u32 %v2880_v20, %v2877_v18  ;;  %v2911_v46 = vsel %vm5770_vm6, %v2906_v34, %v6894_v54  ;;  %v3294_v10 = vrot.slane %v5146_v62, 5  ;;  %v336_v18 = vld [vmem:[%s5670_s22 + $0xac] sm:$0xf] }
 0x1a9   : > { %v1941_v28 = vpop.permute.xlu1 %1940  ;;  %v2928_v39 = vrot.slane %v2926_v63, 5  ;;  %369 = vst.msk [vmem:[#allocation2 + $0x74] sm:$0xf] %vm339_vm7, %v336_v18  ;;  %v335_v63 = vld [vmem:[%s5670_s22 + $0xa8] sm:$0xf] }
 0x1aa   : > { %2018 = vst.msk [vmem:[#allocation2 + $0x4c] sm:$0xf] %vm1998_vm11, %v1941_v28  ;;  %v1939_v31 = vpop.permute.xlu0 %1938  ;;  %v2916_v28 = vrot.slane %v2915_v13, 4  ;;  %v2925_v38 = vrot.slane %v2923_v21, 4  ;;  %v2882_v48 = vrot.slane %v2881_v35, 4 }
 0x1ab   : > { %2017 = vst.msk [vmem:[#allocation2 + $0x48] sm:$0xf] %vm1998_vm11, %v1939_v31  ;;  %2475 = vrot.lane.b32.xlu1 %v5055_v26, %s5616_s8  ;;  %v6919_v26 = vrot.slane %v2932_v9, 5  ;;  %v2894_v31 = vshll.u32 %v5101_v17, 16  ;;  %v775_v9 = vrot.slane %v773_v57, 4 }
 0x1ac   : > { %2473 = vrot.lane.b32.xlu0 %v5054_v29, %s5616_s8  ;;  %v2920_v29 = vrot.slane %v2918_v7, 5  ;;  %v2929_v51 = vor.u32 %v2928_v39, %v2925_v38  ;;  %v6956_v7 = vrot.slane %v769_v56, 5  ;;  %v5152_v17 = vld [vmem:[%s5670_s22 + $0xb0] sm:$0x1]  ;;  %v5150_v21 = vld [vmem:[%s5670_s22 + $0xa8] sm:$0xe] }
 0x1ad   : > { %v2274_v42 = vpop.permute.xlu1 %2273  ;;  %368 = vst.msk [vmem:[#allocation2 + $0x70] sm:$0xf] %vm339_vm7, %v335_v63  ;;  %v417_v35 = vld [vmem:[%s5670_s22 + $0xb4] sm:$0xf]  ;;  %v5155_v57 = vld [vmem:[%s5670_s22 + $0xbc] sm:$0x1] }
 0x1ae   : > { %2353 = vst.msk [vmem:[#allocation2 + $0x44] sm:$0xf] %vm2335_vm12, %v2274_v42  ;;  %v2272_v45 = vpop.permute.xlu0 %2271  ;;  %v2921_v41 = vsel %vm5770_vm6, %v2916_v28, %v2920_v29  ;;  %v2896_v42 = vrot.slane %v2894_v31, 5  ;;  %v2930_v50 = vrot.slane %v2929_v51, 4  ;;  %v6977_v28 = vld [vmem:[%s5670_s22 + $0xa0] sm:$0xf] }
 0x1af   : > { %2352 = vst.msk [vmem:[#allocation2 + $0x40] sm:$0xf] %vm2335_vm12, %v2272_v45  ;;  %2483 = vrot.lane.b32.xlu1 %v5059_v40, %s5616_s8  ;;  %v2939_v40 = vor.u32 %v2938_v27, %v6919_v26  ;;  %v5174_v31 = vrot.slane %v5150_v21, 9  ;;  %v3298_v22 = vrot.slane %v6977_v28, 5  ;;  %v787_v51 = vshll.u32 %v417_v35, 16 }
 0x1b0   : > { %2481 = vrot.lane.b32.xlu0 %v5058_v43, %s5616_s8  ;;  %v6931_v43 = vld [vmem:[%s5670_s22 + $0x94] sm:$0xf]  ;;  %v2897_v54 = vsel %vm5770_vm6, %v2892_v36, %v2896_v42  ;;  %v2935_v15 = vsel %vm5770_vm6, %v2930_v50, %v6919_v26  ;;  %v3308_v26 = vrot.slane %v5152_v17, 5  ;;  %v5147_v36 = vld [vmem:[%s5670_s22 + $0x9c] sm:$0xe] }
 0x1b1   : > { %v2278_v60 = vpop.permute.xlu1 %2277  ;;  %v2940_v55 = vrot.slane %v2939_v40, 4  ;;  %v3291_v37 = vrot.slane %v6931_v43, 5  ;;  %v5173_v56 = vrot.slane %v5147_v36, 9  ;;  %v419_v50 = vld [vmem:[%s5670_s22 + $0xbc] sm:$0x1] }
 0x1b2   : > { %2355 = vst.msk [vmem:[#allocation2 + $0x4c] sm:$0xf] %vm2335_vm12, %v2278_v60  ;;  %v2276_v1 = vpop.permute.xlu0 %2275 }
 0x1b3   : > { %2354 = vst.msk [vmem:[#allocation2 + $0x48] sm:$0xf] %vm2335_vm12, %v2276_v1  ;;  %2479 = vrot.lane.b32.xlu1 %v5057_v52, %s5616_s8  ;;  %v414_v52 = vld [vmem:[%s5670_s22 + $0xa8] sm:$0xf]  ;;  %v5151_v1 = vld [vmem:[%s5670_s22 + $0xac] sm:$0xf]  ;;  %v2945_v5 = vsel %vm5770_vm6, %v2940_v55, %v2944_v53 }
 0x1b4   : > { %2477 = vrot.lane.b32.xlu0 %v5056_v61, %s5616_s8  ;;  %v760_v58 = vshrl.u32 %v414_v52, 16  ;;  %v763_v59 = vshll.u32 %v414_v52, 16  ;;  %v2887_v61 = vsel %vm5770_vm6, %v2882_v48, %v6907_v14  ;;  %v3293_v6 = vrot.slane %v3291_v37, 4 }
 0x1b5   : > { %v2468_v16 = vpop.permute.xlu1 %2467  ;;  %v784_v48 = vshrl.u32 %v417_v35, 16  ;;  %v3300_v55 = vrot.slane %v3298_v22, 4 }
 0x1b6   : > { %2547 = vst.msk [vmem:[#allocation2 + $0x44] sm:$0xf] %vm2529_vm13, %v2468_v16  ;;  %v2466_v19 = vpop.permute.xlu0 %2465  ;;  %v762_v13 = vrot.slane %v760_v58, 4  ;;  %v765_v8 = vrot.slane %v763_v59, 5  ;;  %v5172_v16 = vrot.slane %v5144_v3, 9 }
 0x1b7   : > { %2546 = vst.msk [vmem:[#allocation2 + $0x40] sm:$0xf] %vm2529_vm13, %v2466_v19  ;;  %2487 = vrot.lane.b32.xlu1 %v5061_v11, %s5616_s8  ;;  %v3305_v11 = vrot.slane %v5151_v1, 5  ;;  %v776_v19 = vor.u32 %v775_v9, %v6956_v7  ;;  %v786_v62 = vrot.slane %v784_v48, 4  ;;  %v789_v1 = vrot.slane %v787_v51, 5 }
 0x1b8   : > { %2485 = vrot.lane.b32.xlu0 %v5060_v12, %s5616_s8  ;;  %v416_v12 = vld [vmem:[%s5670_s22 + $0xb0] sm:$0x1]  ;;  %v766_v27 = vor.u32 %v765_v8, %v762_v13  ;;  %v3292_v30 = vsel %vm5672_vm2, %v5172_v16, %v3291_v37  ;;  %v3299_v8 = vsel %vm5672_vm2, %v5173_v56, %v3298_v22  ;;  %v979_v16 = vld [vmem:[%s5670_s22 + $0xac] sm:$0xf] }
 0x1b9   : > { %v2472_v33 = vpop.permute.xlu1 %2471  ;;  %v3307_v25 = vrot.slane %v3305_v11, 4  ;;  %v777_v38 = vrot.slane %v776_v19, 4  ;;  %v1135_v63 = vrot.slane %v979_v16, 5  ;;  %v982_v19 = vld [vmem:[%s5670_s22 + $0xb8] sm:$0xf] }
 0x1ba   : > { %2549 = vst.msk [vmem:[#allocation2 + $0x4c] sm:$0xf] %vm2529_vm13, %v2472_v33  ;;  %v2470_v32 = vpop.permute.xlu0 %2469  ;;  %v418_v33 = vld [vmem:[%s5670_s22 + $0xb8] sm:$0xf]  ;;  %v4969_v16 = vld [vmem:[%s5670_s22 + $0xc8] sm:$0x1] }
 0x1bb   : > { %2548 = vst.msk [vmem:[#allocation2 + $0x48] sm:$0xf] %vm2529_vm13, %v2470_v32  ;;  %3036 = vrot.lane.b32.xlu1 %v2873_v23, %s5617_s13  ;;  %v779_v23 = vshll.u32 %v416_v12, 16  ;;  %v5149_v32 = vld [vmem:[%s5670_s22 + $0xa4] sm:$0x1]  ;;  %v3309_v40 = vsel %vm5672_vm2, %v3307_v25, %v3308_v26  ;;  %v793_v42 = vshll.u32 %v418_v33, 16 }
 0x1bc   : > { %3034 = vrot.lane.b32.xlu0 %v2863_v24, %s5617_s13  ;;  %v3295_v24 = vsel %vm5672_vm2, %v3293_v6, %v3294_v10  ;;  %v797_v43 = vshrl.u32 %v418_v33, 16  ;;  %v3301_v37 = vrot.slane %v5149_v32, 5  ;;  %v337_v6 = vld [vmem:[%s5670_s22 + $0xb4] sm:$0xf]  ;;  %v3315_v10 = vrot.slane %v5155_v57, 5 }
 0x1bd   : > { %v3029_v45 = vpop.permute.xlu1 %3028  ;;  %v781_v39 = vrot.slane %v779_v23, 5  ;;  %v7002_v58 = vrot.slane %v793_v42, 5  ;;  %370 = vst.msk [vmem:[#allocation2 + $0x78] sm:$0xf] %vm339_vm7, %v337_v6  ;;  %v803_v12 = vshll.u32 %v419_v50, 16  ;;  %v5619_v23 = vmov 0.0  }
 0x1be   : > { %3108 = vst.msk [vmem:[#allocation2 + $0x44] sm:$0xf] %vm3090_vm14, %v3029_v45  ;;  %v3027_v47 = vpop.permute.xlu0 %3026  ;;  %v3306_v45 = vsel %vm5672_vm2, %v5174_v31, %v3305_v11  ;;  %v799_v59 = vrot.slane %v797_v43, 4  ;;  %v3302_v9 = vsel %vm5672_vm2, %v3300_v55, %v3301_v37  ;;  %5389 = vmatprep.subr.mxu1 %v5619_v23  ;;  %v1142_v31 = vrot.slane %v982_v19, 5  ;;  %v4964_v42 = vld [vmem:[%s5670_s22 + $0xb4] sm:$0xf] }
 0x1bf   : > { %3107 = vst.msk [vmem:[#allocation2 + $0x40] sm:$0xf] %vm3090_vm14, %v3027_v47  ;;  %3044 = vrot.lane.b32.xlu1 %v2921_v41, %s5617_s13  ;;  %v767_v41 = vrot.slane %v766_v27, 4  ;;  %v782_v53 = vsel %vm5770_vm6, %v777_v38, %v781_v39  ;;  %v805_v21 = vrot.slane %v803_v12, 5  ;;  %v980_v27 = vld [vmem:[%s5670_s22 + $0xb0] sm:$0x1] }
 0x1c0   : > { %3042 = vrot.lane.b32.xlu0 %v2911_v46, %s5617_s13  ;;  %v5154_v46 = vld [vmem:[%s5670_s22 + $0xb8] sm:$0xf]  ;;  %v800_v11 = vor.u32 %v799_v59, %v7002_v58  ;;  %v1138_v35 = vrot.slane %v980_v27, 5  ;;  %v983_v38 = vld [vmem:[%s5670_s22 + $0xbc] sm:$0x1]  ;;  %v1144_v43 = vrot.slane %v1142_v31, 4 }
 0x1c1   : > { %v3033_v60 = vpop.permute.xlu1 %3032  ;;  %v981_v39 = vld [vmem:[%s5670_s22 + $0xb4] sm:$0xe]  ;;  %v1858_v55 = vshll.u32 %v4964_v42, 16  ;;  %v4968_v37 = vld [vmem:[%s5670_s22 + $0xc4] sm:$0xf] }
 0x1c2   : > { %3110 = vst.msk [vmem:[#allocation2 + $0x4c] sm:$0xf] %vm3090_vm14, %v3033_v60  ;;  %v3031_v2 = vpop.permute.xlu0 %3030  ;;  %v4967_v57 = vld [vmem:[%s5670_s22 + $0xc0] sm:$0xf]  ;;  %v1892_v50 = vshrl.u32 %v4968_v37, 16 }
 0x1c3   : > { %3109 = vst.msk [vmem:[#allocation2 + $0x48] sm:$0xf] %vm3090_vm14, %v3031_v2  ;;  %3040 = vrot.lane.b32.xlu1 %v2897_v54, %s5617_s13  ;;  %v3312_v54 = vrot.slane %v5154_v46, 5  ;;  %v338_v2 = vld [vmem:[%s5670_s22 + $0xb8] sm:$0xf]  ;;  %v1882_v6 = vshll.u32 %v4967_v57, 16 }
 0x1c4   : > { %3038 = vrot.lane.b32.xlu0 %v2887_v61, %s5617_s13  ;;  %v772_v61 = vsel %vm5770_vm6, %v767_v41, %v6956_v7  ;;  %371 = vst.msk [vmem:[#allocation2 + $0x7c] sm:$0xf] %vm339_vm7, %v338_v2  ;;  %v4965_v41 = vld [vmem:[%s5670_s22 + $0xb8] sm:$0xf]  ;;  %v4920_v27 = vld [vmem:[%s5670_s22 + $0xc0] sm:$0xf] }
 0x1c5   : > { %v3366_v14 = vpop.permute.xlu1 %3365  ;;  %v3314_v7 = vrot.slane %v3312_v54, 4  ;;  %v1864_v48 = vshll.u32 %v4965_v41, 16  ;;  %v1868_v51 = vshrl.u32 %v4965_v41, 16  ;;  %v5014_v41 = vld [vmem:[%s5670_s22 + $0xbc] sm:$0x1] }
 0x1c6   : > { %3445 = vst.msk [vmem:[#allocation2 + $0x44] sm:$0xf] %vm3427_vm15, %v3366_v14  ;;  %v3364_v20 = vpop.permute.xlu0 %3363 }
 0x1c7   : > { %3444 = vst.msk [vmem:[#allocation2 + $0x40] sm:$0xf] %vm3427_vm15, %v3364_v20  ;;  %3048 = vrot.lane.b32.xlu1 %v2945_v5, %s5617_s13  ;;  %v5153_v5 = vld [vmem:[%s5670_s22 + $0xb4] sm:$0xe]  ;;  %v3316_v18 = vsel %vm5672_vm2, %v3314_v7, %v3315_v10  ;;  %v801_v20 = vrot.slane %v800_v11, 4  ;;  %v1866_v59 = vrot.slane %v1864_v48, 5 }
 0x1c8   : > { %3046 = vrot.lane.b32.xlu0 %v2935_v15, %s5617_s13  ;;  %v5175_v14 = vrot.slane %v5153_v5, 9  ;;  %v790_v15 = vor.u32 %v789_v1, %v786_v62  ;;  %v4966_v1 = vld [vmem:[%s5670_s22 + $0xbc] sm:$0x1]  ;;  %v1879_v5 = vshrl.u32 %v4967_v57, 16  ;;  %v4919_v7 = vld [vmem:[%s5670_s22 + $0xb8] sm:$0xf] }
 0x1c9   : > { %v850_v29 = vpop.permute.xlu1 %849  ;;  %v806_v33 = vsel %vm5770_vm6, %v801_v20, %v805_v21  ;;  %v1874_v11 = vshll.u32 %v4966_v1, 16  ;;  %v4921_v21 = vld [vmem:[%s5670_s22 + $0xc4] sm:$0xf]  ;;  %v5017_v48 = vld [vmem:[%s5670_s22 + $0xc8] sm:$0x1] }
 0x1ca   : > { %925 = vst.msk [vmem:[#allocation2 + $0x54] sm:$0xf] %vm903_vm8, %v850_v29  ;;  %v848_v34 = vpop.permute.xlu0 %847  ;;  %v3313_v25 = vsel %vm5672_vm2, %v5175_v14, %v3312_v54  ;;  %v791_v26 = vrot.slane %v790_v15, 4  ;;  %v4918_v14 = vld [vmem:[%s5670_s22 + $0xb4] sm:$0xf] }
 0x1cb   : > { %924 = vst.msk [vmem:[#allocation2 + $0x50] sm:$0xf] %vm903_vm8, %v848_v34  ;;  %3373 = vrot.lane.b32.xlu1 %v3295_v24, %s5618_s27  ;;  %v1137_v34 = vrot.slane %v1135_v63, 4  ;;  %v1876_v19 = vrot.slane %v1874_v11, 5 }
 0x1cc   : > { %3371 = vrot.lane.b32.xlu0 %v3292_v30, %s5618_s27  ;;  %v978_v30 = vld [vmem:[%s5670_s22 + $0xa8] sm:$0xe]  ;;  %v796_v22 = vsel %vm5770_vm6, %v791_v26, %v7002_v58 }
 0x1cd   : > { %v858_v44 = vpop.permute.xlu1 %857  ;;  %v1139_v46 = vsel %vm5672_vm2, %v1137_v34, %v1138_v35 }
 0x1ce   : > { %929 = vst.msk [vmem:[#allocation2 + $0x64] sm:$0xf] %vm903_vm8, %v858_v44  ;;  %v856_v52 = vpop.permute.xlu0 %855  ;;  %v5514_v47 = vld [vmem:[#allocation2 + $0x40] sm:$0xff]   ;;  %v1145_v44 = vrot.slane %v983_v38, 5 }
 0x1cf   : > { %928 = vst.msk [vmem:[#allocation2 + $0x60] sm:$0xf] %vm903_vm8, %v856_v52  ;;  %3381 = vrot.lane.b32.xlu1 %v3309_v40, %s5618_s27  ;;  %5373 = vmatprep.mubr.bf16.mxu0 %v5514_v47  ;;  %v4888_v40 = vrot.slane %v978_v30, 9  ;;  %v5013_v30 = vld [vmem:[%s5670_s22 + $0xb8] sm:$0xf] }
 0x1d0   : > { %3379 = vrot.lane.b32.xlu0 %v3306_v45, %s5618_s27  ;;  %v4889_v45 = vrot.slane %v981_v39, 9  ;;  %v1146_v54 = vsel %vm5672_vm2, %v1144_v43, %v1145_v44  ;;  %v2227_v38 = vrot.slane %v5013_v30, 5  ;;  %v5016_v39 = vld [vmem:[%s5670_s22 + $0xc4] sm:$0xf] }
 0x1d1   : > { %v3370_v60 = vpop.permute.xlu1 %3369  ;;  %v1136_v47 = vsel %vm5672_vm2, %v4888_v40, %v1135_v63  ;;  %v2234_v43 = vrot.slane %v5016_v39, 5 }
 0x1d2   : > { %3447 = vst.msk [vmem:[#allocation2 + $0x4c] sm:$0xf] %vm3427_vm15, %v3370_v60  ;;  %v3368_v3 = vpop.permute.xlu0 %3367  ;;  %v1143_v58 = vsel %vm5672_vm2, %v4889_v45, %v1142_v31  ;;  %v1870_v60 = vrot.slane %v1868_v51, 4  ;;  %v2229_v45 = vrot.slane %v2227_v38, 4  ;;  %v5015_v51 = vld [vmem:[%s5670_s22 + $0xc0] sm:$0xe] }
 0x1d3   : > { %3446 = vst.msk [vmem:[#allocation2 + $0x48] sm:$0xf] %vm3427_vm15, %v3368_v3  ;;  %865 = vrot.lane.b32.xlu1 %v782_v53, %s5613_s25  ;;  %v1855_v53 = vshrl.u32 %v4964_v42, 16  ;;  %v1860_v3 = vrot.slane %v1858_v55, 5  ;;  %v5012_v42 = vld [vmem:[%s5670_s22 + $0xb4] sm:$0xe] }
 0x1d4   : > { %863 = vrot.lane.b32.xlu0 %v772_v61, %s5613_s25  ;;  %v1888_v61 = vshll.u32 %v4968_v37, 16  ;;  %v1871_v10 = vor.u32 %v1870_v60, %v1866_v59  ;;  %v5109_v55 = vld [vmem:[%s5670_s22 + $0xc4] sm:$0xf]  ;;  %v2236_v57 = vrot.slane %v2234_v43, 4 }
 0x1d5   : > { %v854_v13 = vpop.permute.xlu1 %853  ;;  %v1857_v2 = vrot.slane %v1855_v53, 4  ;;  %v5032_v53 = vrot.slane %v5012_v42, 9  ;;  %v2956_v60 = vshll.u32 %v5109_v55, 16  ;;  %v5157_v42 = vld [vmem:[%s5670_s22 + $0xc4] sm:$0xf] }
 0x1d6   : > { %927 = vst.msk [vmem:[#allocation2 + $0x5c] sm:$0xf] %vm903_vm8, %v854_v13  ;;  %v852_v17 = vpop.permute.xlu0 %851  ;;  %v1890_v12 = vrot.slane %v1888_v61, 5  ;;  %v1894_v13 = vrot.slane %v1892_v50, 4  ;;  %v1872_v63 = vrot.slane %v1871_v10, 4  ;;  %v2960_v61 = vshrl.u32 %v5109_v55, 16 }
 0x1d7   : > { %926 = vst.msk [vmem:[#allocation2 + $0x58] sm:$0xf] %vm903_vm8, %v852_v17  ;;  %3377 = vrot.lane.b32.xlu1 %v3302_v9, %s5618_s27  ;;  %v1861_v15 = vor.u32 %v1860_v3, %v1857_v2  ;;  %v1881_v17 = vrot.slane %v1879_v5, 4  ;;  %v5112_v3 = vld [vmem:[%s5670_s22 + $0xd0] sm:$0xf]  ;;  %v2958_v10 = vrot.slane %v2956_v60, 5 }
 0x1d8   : > { %3375 = vrot.lane.b32.xlu0 %v3299_v8, %s5618_s27  ;;  %v2962_v11 = vrot.slane %v2960_v61, 4  ;;  %v5160_v55 = vld [vmem:[%s5670_s22 + $0xd0] sm:$0xf] }
 0x1d9   : > { %v862_v24 = vpop.permute.xlu1 %861 }
 0x1da   : > { %931 = vst.msk [vmem:[#allocation2 + $0x6c] sm:$0xf] %vm903_vm8, %v862_v24  ;;  %v860_v28 = vpop.permute.xlu0 %859  ;;  %v5515_v29 = vld [vmem:[#allocation2 + $0x48] sm:$0xff]   ;;  %v1895_v24 = vor.u32 %v1894_v13, %v1890_v12  ;;  %v2984_v13 = vshrl.u32 %v5112_v3, 16 }
 0x1db   : > { %930 = vst.msk [vmem:[#allocation2 + $0x68] sm:$0xf] %vm903_vm8, %v860_v28  ;;  %3385 = vrot.lane.b32.xlu1 %v3316_v18, %s5618_s27  ;;  %5374 = vmatmul.mubr.bf16.gmra.mxu0 %v5515_v29  ;;  %v1884_v18 = vrot.slane %v1882_v6, 5  ;;  %v1862_v28 = vrot.slane %v1861_v15, 4  ;;  %v5111_v6 = vld [vmem:[%s5670_s22 + $0xcc] sm:$0xf] }
 0x1dc   : > { %3383 = vrot.lane.b32.xlu0 %v3313_v25, %s5618_s27  ;;  %v1898_v25 = vshll.u32 %v4969_v16, 16  ;;  %v1896_v34 = vrot.slane %v1895_v24, 4 }
 0x1dd   : > { %v1190_v32 = vpop.permute.xlu1 %1189  ;;  %v1885_v29 = vor.u32 %v1884_v18, %v1881_v17  ;;  %v2971_v17 = vshrl.u32 %v5111_v6, 16  ;;  %v2974_v18 = vshll.u32 %v5111_v6, 16 }
 0x1de   : > { %1265 = vst.msk [vmem:[#allocation2 + $0x54] sm:$0xf] %vm1243_vm9, %v1190_v32  ;;  %v1188_v36 = vpop.permute.xlu0 %1187  ;;  %v1900_v35 = vrot.slane %v1898_v25, 5  ;;  %v2986_v25 = vrot.slane %v2984_v13, 4 }
 0x1df   : > { %1264 = vst.msk [vmem:[#allocation2 + $0x50] sm:$0xf] %vm1243_vm9, %v1188_v36  ;;  %869 = vrot.lane.b32.xlu1 %v806_v33, %s5613_s25  ;;  %v1877_v33 = vsel %vm5770_vm6, %v1872_v63, %v1876_v19  ;;  %v1886_v40 = vrot.slane %v1885_v29, 4  ;;  %v2963_v63 = vor.u32 %v2962_v11, %v2958_v10  ;;  %v5113_v29 = vld [vmem:[%s5670_s22 + $0xd4] sm:$0x1]  ;;  %v2973_v30 = vrot.slane %v2971_v17, 4 }
 0x1e0   : > { %867 = vrot.lane.b32.xlu0 %v796_v22, %s5613_s25  ;;  %v1867_v22 = vsel %vm5770_vm6, %v1862_v28, %v1866_v59  ;;  %v1901_v44 = vsel %vm5770_vm6, %v1896_v34, %v1900_v35  ;;  %v5065_v34 = vld [vmem:[%s5670_s22 + $0xd0] sm:$0xf] }
 0x1e1   : > { %v1198_v52 = vpop.permute.xlu1 %1197  ;;  %v2964_v35 = vrot.slane %v2963_v63, 4 }
 0x1e2   : > { %1269 = vst.msk [vmem:[#allocation2 + $0x64] sm:$0xf] %vm1243_vm9, %v1198_v52  ;;  %v1196_v56 = vpop.permute.xlu0 %1195 }
 0x1e3   : > { %1268 = vst.msk [vmem:[#allocation2 + $0x60] sm:$0xf] %vm1243_vm9, %v1196_v56  ;;  %1205 = vrot.lane.b32.xlu1 %v1139_v46, %s5612_s24  ;;  %v2230_v46 = vrot.slane %v5014_v41, 5  ;;  %v5108_v56 = vld [vmem:[%s5670_s22 + $0xc0] sm:$0xf] }
 0x1e4   : > { %1203 = vrot.lane.b32.xlu0 %v1136_v47, %s5612_s24  ;;  %v1891_v47 = vsel %vm5770_vm6, %v1886_v40, %v1890_v12  ;;  %v2947_v1 = vshrl.u32 %v5108_v56, 16  ;;  %v2950_v2 = vshll.u32 %v5108_v56, 16  ;;  %v2980_v12 = vshll.u32 %v5112_v3, 16  ;;  %v5064_v40 = vld [vmem:[%s5670_s22 + $0xcc] sm:$0xf] }
 0x1e5   : > { %v1194_v62 = vpop.permute.xlu1 %1193  ;;  %v2231_v59 = vsel %vm5672_vm2, %v2229_v45, %v2230_v46  ;;  %v5156_v56 = vld [vmem:[%s5670_s22 + $0xc0] sm:$0xe] }
 0x1e6   : > { %1267 = vst.msk [vmem:[#allocation2 + $0x5c] sm:$0xf] %vm1243_vm9, %v1194_v62  ;;  %v1192_v9 = vpop.permute.xlu0 %1191  ;;  %v2228_v62 = vsel %vm5672_vm2, %v5032_v53, %v2227_v38  ;;  %v2949_v15 = vrot.slane %v2947_v1, 4  ;;  %v2952_v16 = vrot.slane %v2950_v2, 5  ;;  %v2982_v24 = vrot.slane %v2980_v12, 5 }
 0x1e7   : > { %1266 = vst.msk [vmem:[#allocation2 + $0x58] sm:$0xf] %vm1243_vm9, %v1192_v9  ;;  %1209 = vrot.lane.b32.xlu1 %v1146_v54, %s5612_s24  ;;  %v2237_v54 = vrot.slane %v5017_v48, 5  ;;  %v3319_v48 = vrot.slane %v5157_v42, 5  ;;  %v5158_v53 = vld [vmem:[%s5670_s22 + $0xc8] sm:$0x1] }
 0x1e8   : > { %1207 = vrot.lane.b32.xlu0 %v1143_v58, %s5612_s24  ;;  %v5033_v58 = vrot.slane %v5015_v51, 9  ;;  %v2953_v28 = vor.u32 %v2952_v16, %v2949_v15  ;;  %v2987_v39 = vor.u32 %v2986_v25, %v2982_v24  ;;  %v5159_v2 = vld [vmem:[%s5670_s22 + $0xcc] sm:$0xe] }
 0x1e9   : > { %v1202_v8 = vpop.permute.xlu1 %1201  ;;  %v2238_v9 = vsel %vm5672_vm2, %v2236_v57, %v2237_v54  ;;  %v3321_v54 = vrot.slane %v3319_v48, 4 }
 0x1ea   : > { %1271 = vst.msk [vmem:[#allocation2 + $0x6c] sm:$0xf] %vm1243_vm9, %v1202_v8  ;;  %v1200_v20 = vpop.permute.xlu0 %1199  ;;  %v2954_v41 = vrot.slane %v2953_v28, 4  ;;  %v2988_v45 = vrot.slane %v2987_v39, 4 }
 0x1eb   : > { %1270 = vst.msk [vmem:[#allocation2 + $0x68] sm:$0xf] %vm1243_vm9, %v1200_v20  ;;  %1399 = vrot.lane.b32.xlu1 %v4919_v7, %s5611_s23  ;;  %v2235_v7 = vsel %vm5672_vm2, %v5033_v58, %v2234_v43  ;;  %v3322_v58 = vrot.slane %v5158_v53, 5 }
 0x1ec   : > { %1397 = vrot.lane.b32.xlu0 %v4918_v14, %s5611_s23  ;;  %v5110_v14 = vld [vmem:[%s5670_s22 + $0xc8] sm:$0x1] }
 0x1ed   : > { %v1384_v26 = vpop.permute.xlu1 %1383  ;;  %v2966_v19 = vshll.u32 %v5110_v14, 16  ;;  %v3323_v3 = vsel %vm5672_vm2, %v3321_v54, %v3322_v58 }
 0x1ee   : > { %1459 = vst.msk [vmem:[#allocation2 + $0x54] sm:$0xf] %vm1437_vm10, %v1384_v26  ;;  %v1382_v31 = vpop.permute.xlu0 %1381 }
 0x1ef   : > { %1458 = vst.msk [vmem:[#allocation2 + $0x50] sm:$0xf] %vm1437_vm10, %v1382_v31  ;;  %1403 = vrot.lane.b32.xlu1 %v4921_v21, %s5611_s23  ;;  %v5063_v21 = vld [vmem:[%s5670_s22 + $0xc4] sm:$0xf]  ;;  %v2976_v31 = vrot.slane %v2974_v18, 5  ;;  %v2968_v38 = vrot.slane %v2966_v19, 5 }
 0x1f0   : > { %1401 = vrot.lane.b32.xlu0 %v4920_v27, %s5611_s23  ;;  %v5062_v27 = vld [vmem:[%s5670_s22 + $0xc0] sm:$0xf] }
 0x1f1   : > { %v1392_v32 = vpop.permute.xlu1 %1391 }
 0x1f2   : > { %1463 = vst.msk [vmem:[#allocation2 + $0x64] sm:$0xf] %vm1437_vm10, %v1392_v32  ;;  %v1390_v36 = vpop.permute.xlu0 %1389  ;;  %v2990_v32 = vshll.u32 %v5113_v29, 16 }
 0x1f3   : > { %1462 = vst.msk [vmem:[#allocation2 + $0x60] sm:$0xf] %vm1437_vm10, %v1390_v36  ;;  %1960 = vrot.lane.b32.xlu1 %v1877_v33, %s5614_s26  ;;  %v2977_v36 = vor.u32 %v2976_v31, %v2973_v30 }
 0x1f4   : > { %1958 = vrot.lane.b32.xlu0 %v1867_v22, %s5614_s26  ;;  %v2992_v46 = vrot.slane %v2990_v32, 5 }
 0x1f5   : > { %v1388_v52 = vpop.permute.xlu1 %1387 }
 0x1f6   : > { %1461 = vst.msk [vmem:[#allocation2 + $0x5c] sm:$0xf] %vm1437_vm10, %v1388_v52  ;;  %v1386_v37 = vpop.permute.xlu0 %1385  ;;  %v2959_v52 = vsel %vm5770_vm6, %v2954_v41, %v2958_v10  ;;  %v2993_v57 = vsel %vm5770_vm6, %v2988_v45, %v2992_v46 }
 0x1f7   : > { %1460 = vst.msk [vmem:[#allocation2 + $0x58] sm:$0xf] %vm1437_vm10, %v1386_v37  ;;  %1964 = vrot.lane.b32.xlu1 %v1901_v44, %s5614_s26  ;;  %v2969_v44 = vsel %vm5770_vm6, %v2964_v35, %v2968_v38 }
 0x1f8   : > { %1962 = vrot.lane.b32.xlu0 %v1891_v47, %s5614_s26  ;;  %v2978_v47 = vrot.slane %v2977_v36, 4  ;;  %s5462_s26 = smul.u32 80, %s7583_s15 }
 0x1f9   : > { %v1396_v50 = vpop.permute.xlu1 %1395 }
 0x1fa   : > { %1465 = vst.msk [vmem:[#allocation2 + $0x6c] sm:$0xf] %vm1437_vm10, %v1396_v50  ;;  %v1394_v5 = vpop.permute.xlu0 %1393  ;;  %v2983_v61 = vsel %vm5770_vm6, %v2978_v47, %v2982_v24  ;;  %v5176_v50 = vrot.slane %v5156_v56, 9  ;;  %s7390_s6 = scalar_lea.vmem %s7569_s4, %s5462_s26 }
 0x1fb   : > { %1464 = vst.msk [vmem:[#allocation2 + $0x68] sm:$0xf] %vm1437_vm10, %v1394_v5  ;;  %2297 = vrot.lane.b32.xlu1 %v2231_v59, %s5615_s29  ;;  %v3326_v59 = vrot.slane %v5160_v55, 5  ;;  %250 = vst [vmem:[%s7390_s6] sm:$0xf] %v5610_v4 }
 0x1fc   : > { %2295 = vrot.lane.b32.xlu0 %v2228_v62, %s5615_s29  ;;  %v5161_v62 = vld [vmem:[%s5670_s22 + $0xd4] sm:$0x1]  ;;  %v3320_v49 = vsel %vm5672_vm2, %v5176_v50, %v3319_v48  ;;  %251 = vst [vmem:[%s7390_s6 + $0x4] sm:$0x1] %v5610_v4  ;;  %252 = vst [vmem:[%s7390_s6 + $0x8] sm:$0xf] %v5610_v4 }
 0x1fd   : > { %v1945_v8 = vpop.permute.xlu1 %1944  ;;  %v3328_v5 = vrot.slane %v3326_v59, 4  ;;  %v3329_v6 = vrot.slane %v5161_v62, 5  ;;  %253 = vst [vmem:[%s7390_s6 + $0xc] sm:$0x1] %v5610_v4  ;;  %268 = vst [vmem:[%s7390_s6 + $0x48] sm:$0xf] %v5610_v4 }
 0x1fe   : > { %2020 = vst.msk [vmem:[#allocation2 + $0x54] sm:$0xf] %vm1998_vm11, %v1945_v8  ;;  %v1943_v20 = vpop.permute.xlu0 %1942  ;;  %269 = vst [vmem:[%s7390_s6 + $0x4c] sm:$0x1] %v5610_v4 }
 0x1ff   : > { %2019 = vst.msk [vmem:[#allocation2 + $0x50] sm:$0xf] %vm1998_vm11, %v1943_v20  ;;  %2301 = vrot.lane.b32.xlu1 %v2238_v9, %s5615_s29  ;;  %v3330_v11 = vsel %vm5672_vm2, %v3328_v5, %v3329_v6  ;;  %v5359_v20 = vpop.f32.mrf.mxu0  ;;  %254 = vst [vmem:[%s7390_s6 + $0x10] sm:$0xf] %v5610_v4 }
 0x200   : > { %2299 = vrot.lane.b32.xlu0 %v2235_v7, %s5615_s29  ;;  %v5177_v7 = vrot.slane %v5159_v2, 9  ;;  %255 = vst [vmem:[%s7390_s6 + $0x14] sm:$0x1] %v5610_v4  ;;  %256 = vst [vmem:[%s7390_s6 + $0x18] sm:$0xf] %v5610_v4 }
 0x201   : > { %v1953_v26 = vpop.permute.xlu1 %1952  ;;  %v3693_v19 = vpop.f32.mrf.mxu0  ;;  %257 = vst [vmem:[%s7390_s6 + $0x1c] sm:$0x1] %v5610_v4  ;;  %258 = vst [vmem:[%s7390_s6 + $0x20] sm:$0xf] %v5610_v4 }
 0x202   : > { %2024 = vst.msk [vmem:[#allocation2 + $0x64] sm:$0xf] %vm1998_vm11, %v1953_v26  ;;  %v1951_v33 = vpop.permute.xlu0 %1950  ;;  %v3327_v13 = vsel %vm5672_vm2, %v5177_v7, %v3326_v59  ;;  %259 = vst [vmem:[%s7390_s6 + $0x24] sm:$0x1] %v5610_v4 }
 0x203   : > { %2023 = vst.msk [vmem:[#allocation2 + $0x60] sm:$0xf] %vm1998_vm11, %v1951_v33  ;;  %2491 = vrot.lane.b32.xlu1 %v5063_v21, %s5616_s8  ;;  %v5360_v26 = vpop.f32.mrf.mxu0  ;;  %v7194_v33 = vld [vmem:[%s7567_s2] ss:$0 sm:$0xff]  ;;  %260 = vst [vmem:[%s7390_s6 + $0x28] sm:$0xf] %v5610_v4 }
 0x204   : > { %2489 = vrot.lane.b32.xlu0 %v5062_v27, %s5616_s8  ;;  %v7201_v35 = vadd.f32 %v7194_v33, %v3693_v19  ;;  %v7204_v39 = vadd.f32 %v5360_v26, %v7194_v33  ;;  %261 = vst [vmem:[%s7390_s6 + $0x2c] sm:$0x1] %v5610_v4  ;;  %262 = vst [vmem:[%s7390_s6 + $0x30] sm:$0xf] %v5610_v4 }
 0x205   : > { %v1949_v22 = vpop.permute.xlu1 %1948  ;;  %v3696_v29 = vpop.f32.mrf.mxu0  ;;  %263 = vst [vmem:[%s7390_s6 + $0x34] sm:$0x1] %v5610_v4  ;;  %264 = vst [vmem:[%s7390_s6 + $0x38] sm:$0xf] %v5610_v4 }
 0x206   : > { %2022 = vst.msk [vmem:[#allocation2 + $0x5c] sm:$0xf] %vm1998_vm11, %v1949_v22  ;;  %v1947_v43 = vpop.permute.xlu0 %1946  ;;  %v7209_v22 = vadd.f32 %v5359_v20, %v7194_v33  ;;  %v3852_v41 = vmin.f32 %v7201_v35, 0.0  ;;  %v3855_v42 = vmin.f32 %v7204_v39, 0.0  ;;  %vm3820_vm1 = vcmp.gt.f32.partialorder %v7201_v35, 0.0 }
 0x207   : > { %2021 = vst.msk [vmem:[#allocation2 + $0x58] sm:$0xf] %vm1998_vm11, %v1947_v43  ;;  %2495 = vrot.lane.b32.xlu1 %v5065_v34, %s5616_s8  ;;  %v7198_v34 = vadd.f32 %v7194_v33, %v3696_v29  ;;  %vm3823_vm2 = vcmp.gt.f32.partialorder %v7204_v39, 0.0  ;;  %265 = vst [vmem:[%s7390_s6 + $0x3c] sm:$0x1] %v5610_v4 }
 0x208   : > { %2493 = vrot.lane.b32.xlu0 %v5064_v40, %s5616_s8  ;;  %v3884_v46 = vmul.f32 1.442695, %v3852_v41  ;;  %vm3822_vm3 = vcmp.gt.f32.partialorder %v7209_v22, 0.0  ;;  %266 = vst [vmem:[%s7390_s6 + $0x40] sm:$0xf] %v5610_v4 }
 0x209   : > { %v1957_v51 = vpop.permute.xlu1 %1956  ;;  %v3853_v40 = vmin.f32 %v7198_v34, 0.0  ;;  %vm3821_vm0 = vcmp.gt.f32.partialorder %v7198_v34, 0.0  ;;  %267 = vst [vmem:[%s7390_s6 + $0x44] sm:$0x1] %v5610_v4 }
 0x20a   : > { %2026 = vst.msk [vmem:[#allocation2 + $0x6c] sm:$0xf] %vm1998_vm11, %v1957_v51  ;;  %v1955_v37 = vpop.permute.xlu0 %1954  ;;  %v3890_v51 = vmul.f32 1.442695, %v3855_v42 }
 0x20b   : > { %2025 = vst.msk [vmem:[#allocation2 + $0x68] sm:$0xf] %vm1998_vm11, %v1955_v37  ;;  %3052 = vrot.lane.b32.xlu1 %v2969_v44, %s5617_s13  ;;  %v3854_v44 = vmin.f32 %v7209_v22, 0.0  ;;  %v3886_v45 = vmul.f32 1.442695, %v3853_v40 }
 0x20c   : > { %3050 = vrot.lane.b32.xlu0 %v2959_v52, %s5617_s13 }
 0x20d   : > { %v2282_v60 = vpop.permute.xlu1 %2281  ;;  %v3888_v47 = vmul.f32 1.442695, %v3854_v44  ;;  %5522 = vpow2.f32 %v3886_v45 }
 0x20e   : > { %2357 = vst.msk [vmem:[#allocation2 + $0x54] sm:$0xf] %vm2335_vm12, %v2282_v60  ;;  %v2280_v1 = vpop.permute.xlu0 %2279  ;;  %5524 = vpow2.f32 %v3884_v46 }
 0x20f   : > { %2356 = vst.msk [vmem:[#allocation2 + $0x50] sm:$0xf] %vm2335_vm12, %v2280_v1  ;;  %3056 = vrot.lane.b32.xlu1 %v2993_v57, %s5617_s13  ;;  %5526 = vpow2.f32 %v3890_v51 }
 0x210   : > { %3054 = vrot.lane.b32.xlu0 %v2983_v61, %s5617_s13  ;;  %5528 = vpow2.f32 %v3888_v47 }
 0x211   : > { %v2290_v9 = vpop.permute.xlu1 %2289 }
 0x212   : > { %2361 = vst.msk [vmem:[#allocation2 + $0x64] sm:$0xf] %vm2335_vm12, %v2290_v9  ;;  %v2288_v10 = vpop.permute.xlu0 %2287 }
 0x213   : > { %2360 = vst.msk [vmem:[#allocation2 + $0x60] sm:$0xf] %vm2335_vm12, %v2288_v10  ;;  %3389 = vrot.lane.b32.xlu1 %v3323_v3, %s5618_s27 }
 0x214   : > { %3387 = vrot.lane.b32.xlu0 %v3320_v49, %s5618_s27 }
 0x215   : > { %v2286_v12 = vpop.permute.xlu1 %2285 }
 0x216   : > { %2359 = vst.msk [vmem:[#allocation2 + $0x5c] sm:$0xf] %vm2335_vm12, %v2286_v12  ;;  %v2284_v8 = vpop.permute.xlu0 %2283  ;;  %v7233_v12 = vpop.f32.mrf.mxu0 }
 0x217   : > { %2358 = vst.msk [vmem:[#allocation2 + $0x58] sm:$0xf] %vm2335_vm12, %v2284_v8  ;;  %3393 = vrot.lane.b32.xlu1 %v3330_v11, %s5618_s27 }
 0x218   : > { %3391 = vrot.lane.b32.xlu0 %v3327_v13, %s5618_s27  ;;  %v3709_v20 = vpop.f32.mrf.mxu0 }
 0x219   : > { %v2294_v14 = vpop.permute.xlu1 %2293 }
 0x21a   : > { %2363 = vst.msk [vmem:[#allocation2 + $0x6c] sm:$0xf] %vm2335_vm12, %v2294_v14  ;;  %v2292_v15 = vpop.permute.xlu0 %2291  ;;  %v5523_v60 = vpop.eup %5522 }
 0x21b   : > { %2362 = vst.msk [vmem:[#allocation2 + $0x68] sm:$0xf] %vm2335_vm12, %v2292_v15  ;;  %v5525_v50 = vpop.eup %5524  ;;  %v5204_v2 = vadd.f32 -1.0, %v5523_v60  ;;  %v5364_v19 = vpop.f32.mrf.mxu0 }
 0x21c   : > { %v5527_v1 = vpop.eup %5526  ;;  %v5203_v6 = vadd.f32 -1.0, %v5525_v50  ;;  %v7266_v47 = vadd.f32 %v5364_v19, %v7194_v33 }
 0x21d   : > { %v2476_v16 = vpop.permute.xlu1 %2475  ;;  %v5529_v3 = vpop.eup %5528  ;;  %v5206_v9 = vadd.f32 -1.0, %v5527_v1  ;;  %v3981_v11 = vsel %vm3821_vm0, %v7198_v34, %v5204_v2 }
 0x21e   : > { %2551 = vst.msk [vmem:[#allocation2 + $0x54] sm:$0xf] %vm2529_vm13, %v2476_v16  ;;  %v2474_v0 = vpop.permute.xlu0 %2473  ;;  %v5205_v10 = vadd.f32 -1.0, %v5529_v3  ;;  %v3980_v8 = vsel %vm3820_vm1, %v7201_v35, %v5203_v6  ;;  %v3712_v26 = vpop.f32.mrf.mxu0  ;;  %v3859_v60 = vmin.f32 %v7266_v47, 0.0  ;;  %vm3827_vm7 = vcmp.gt.f32.partialorder %v7266_v47, 0.0 }
 0x21f   : > { %2550 = vst.msk [vmem:[#allocation2 + $0x50] sm:$0xf] %vm2529_vm13, %v2474_v0  ;;  %v3983_v14 = vsel %vm3823_vm2, %v7204_v39, %v5206_v9  ;;  %v7260_v46 = vadd.f32 %v7194_v33, %v3712_v26 }
 0x220   : > { %v4014_v0 = vadd.f32 %v3983_v14, %v3981_v11  ;;  %v5367_v29 = vpop.f32.mrf.mxu0 }
 0x221   : > { %v2484_v17 = vpop.permute.xlu1 %2483  ;;  %v7289_v1 = vadd.f32 %v5367_v29, %v7194_v33  ;;  %vm3825_vm5 = vcmp.gt.f32.partialorder %v7260_v46, 0.0 }
 0x222   : > { %2555 = vst.msk [vmem:[#allocation2 + $0x64] sm:$0xf] %vm2529_vm13, %v2484_v17  ;;  %v2482_v18 = vpop.permute.xlu0 %2481  ;;  %v3982_v17 = vsel %vm3822_vm3, %v7209_v22, %v5205_v10  ;;  %v3725_v34 = vpop.f32.mrf.mxu0  ;;  %v3898_v10 = vmul.f32 1.442695, %v3859_v60 }
 0x223   : > { %2554 = vst.msk [vmem:[#allocation2 + $0x60] sm:$0xf] %vm2529_vm13, %v2482_v18  ;;  %v4013_v18 = vadd.f32 %v3982_v17, %v3980_v8  ;;  %v3862_v14 = vmin.f32 %v7289_v1, 0.0 }
 0x224   : > { %v5368_v39 = vpop.f32.mrf.mxu0 }
 0x225   : > { %v2480_v21 = vpop.permute.xlu1 %2479 }
 0x226   : > { %2553 = vst.msk [vmem:[#allocation2 + $0x5c] sm:$0xf] %vm2529_vm13, %v2480_v21  ;;  %v2478_v63 = vpop.permute.xlu0 %2477  ;;  %v3728_v40 = vpop.f32.mrf.mxu0 }
 0x227   : > { %2552 = vst.msk [vmem:[#allocation2 + $0x58] sm:$0xf] %vm2529_vm13, %v2478_v63 }
 0x229   : > { %v2488_v24 = vpop.permute.xlu1 %2487 }
 0x22a   : > { %2557 = vst.msk [vmem:[#allocation2 + $0x6c] sm:$0xf] %vm2529_vm13, %v2488_v24  ;;  %v2486_v25 = vpop.permute.xlu0 %2485 }
 0x22b   : > { %2556 = vst.msk [vmem:[#allocation2 + $0x68] sm:$0xf] %vm2529_vm13, %v2486_v25 }
 0x22d   : > { %v3037_v27 = vpop.permute.xlu1 %3036 }
 0x22e   : > { %3112 = vst.msk [vmem:[#allocation2 + $0x54] sm:$0xf] %vm3090_vm14, %v3037_v27  ;;  %v3035_v28 = vpop.permute.xlu0 %3034 }
 0x22f   : > { %3111 = vst.msk [vmem:[#allocation2 + $0x50] sm:$0xf] %vm3090_vm14, %v3035_v28 }
 0x231   : > { %v3045_v30 = vpop.permute.xlu1 %3044 }
 0x232   : > { %3116 = vst.msk [vmem:[#allocation2 + $0x64] sm:$0xf] %vm3090_vm14, %v3045_v30  ;;  %v3043_v31 = vpop.permute.xlu0 %3042 }
 0x233   : > { %3115 = vst.msk [vmem:[#allocation2 + $0x60] sm:$0xf] %vm3090_vm14, %v3043_v31 }
 0x235   : > { %v3041_v38 = vpop.permute.xlu1 %3040 }
 0x236   : > { %3114 = vst.msk [vmem:[#allocation2 + $0x5c] sm:$0xf] %vm3090_vm14, %v3041_v38  ;;  %v3039_v32 = vpop.permute.xlu0 %3038 }
 0x237   : > { %3113 = vst.msk [vmem:[#allocation2 + $0x58] sm:$0xf] %vm3090_vm14, %v3039_v32 }
 0x239   : > { %v3049_v36 = vpop.permute.xlu1 %3048 }
 0x23a   : > { %3118 = vst.msk [vmem:[#allocation2 + $0x6c] sm:$0xf] %vm3090_vm14, %v3049_v36  ;;  %v3047_v43 = vpop.permute.xlu0 %3046 }
 0x23b   : > { %3117 = vst.msk [vmem:[#allocation2 + $0x68] sm:$0xf] %vm3090_vm14, %v3047_v43 }
 0x23d   : > { %v3374_v48 = vpop.permute.xlu1 %3373 }
 0x23e   : > { %3449 = vst.msk [vmem:[#allocation2 + $0x54] sm:$0xf] %vm3427_vm15, %v3374_v48  ;;  %v3372_v52 = vpop.permute.xlu0 %3371  ;;  %v7263_v48 = vadd.f32 %v7194_v33, %v3709_v20 }
 0x23f   : > { %3448 = vst.msk [vmem:[#allocation2 + $0x50] sm:$0xf] %vm3427_vm15, %v3372_v52 }
 0x240   : > { %vm3824_vm6 = vcmp.gt.f32.partialorder %v7263_v48, 0.0 }
 0x241   : > { %v3382_v53 = vpop.permute.xlu1 %3381 }
 0x242   : > { %3453 = vst.msk [vmem:[#allocation2 + $0x64] sm:$0xf] %vm3427_vm15, %v3382_v53  ;;  %v3380_v55 = vpop.permute.xlu0 %3379 }
 0x243   : > { %3452 = vst.msk [vmem:[#allocation2 + $0x60] sm:$0xf] %vm3427_vm15, %v3380_v55  ;;  %v7271_v55 = vadd.f32 %v7233_v12, %v7194_v33 }
 0x245   : > { %v866_v37 = vpop.permute.xlu1 %865 }
 0x246   : > { %933 = vst.msk [vmem:[#allocation2 + $0x74] sm:$0xf] %vm903_vm8, %v866_v37  ;;  %v864_v56 = vpop.permute.xlu0 %863  ;;  %v5516_v57 = vld [vmem:[#allocation2 + $0x50] sm:$0xff]   ;;  %v3857_v37 = vmin.f32 %v7260_v46, 0.0 }
 0x247   : > { %932 = vst.msk [vmem:[#allocation2 + $0x70] sm:$0xf] %vm903_vm8, %v864_v56  ;;  %5377 = vmatprep.mubr.bf16.mxu0 %v5516_v57  ;;  %v7276_v56 = vadd.f32 %v7194_v33, %v3728_v40  ;;  %v3856_v57 = vmin.f32 %v7263_v48, 0.0 }
 0x248   : > { %v3894_v2 = vmul.f32 1.442695, %v3857_v37 }
 0x249   : > { %v3378_v54 = vpop.permute.xlu1 %3377  ;;  %v3861_v3 = vmin.f32 %v7276_v56, 0.0  ;;  %v3892_v6 = vmul.f32 1.442695, %v3856_v57 }
 0x24a   : > { %3451 = vst.msk [vmem:[#allocation2 + $0x5c] sm:$0xf] %vm3427_vm15, %v3378_v54  ;;  %v3376_v58 = vpop.permute.xlu0 %3375  ;;  %v5517_v59 = vld [vmem:[#allocation2 + $0x60] sm:$0xff]   ;;  %v7280_v54 = vadd.f32 %v7194_v33, %v3725_v34  ;;  %5530 = vpow2.f32 %v3894_v2 }
 0x24b   : > { %3450 = vst.msk [vmem:[#allocation2 + $0x58] sm:$0xf] %vm3427_vm15, %v3376_v58  ;;  %5381 = vmatprep.mubr.bf16.mxu1 %v5517_v59  ;;  %5532 = vpow2.f32 %v3892_v6 }
 0x24c   : > { %v3860_v9 = vmin.f32 %v7280_v54, 0.0  ;;  %5534 = vpow2.f32 %v3898_v10 }
 0x24d   : > { %v3386_v61 = vpop.permute.xlu1 %3385 }
 0x24e   : > { %3455 = vst.msk [vmem:[#allocation2 + $0x6c] sm:$0xf] %vm3427_vm15, %v3386_v61  ;;  %v3384_v62 = vpop.permute.xlu0 %3383  ;;  %v7284_v61 = vadd.f32 %v5368_v39, %v7194_v33  ;;  %v3900_v17 = vmul.f32 1.442695, %v3860_v9 }
 0x24f   : > { %3454 = vst.msk [vmem:[#allocation2 + $0x68] sm:$0xf] %vm3427_vm15, %v3384_v62  ;;  %v3858_v62 = vmin.f32 %v7271_v55, 0.0 }
 0x250   : > { %v3863_v11 = vmin.f32 %v7284_v61, 0.0 }
 0x251   : > { %v870_v5 = vpop.permute.xlu1 %869  ;;  %v3896_v8 = vmul.f32 1.442695, %v3858_v62 }
 0x252   : > { %935 = vst.msk [vmem:[#allocation2 + $0x7c] sm:$0xf] %vm903_vm8, %v870_v5  ;;  %v868_v49 = vpop.permute.xlu0 %867  ;;  %v5518_v7 = vld [vmem:[#allocation2 + $0x58] sm:$0xff]  }
 0x253   : > { %934 = vst.msk [vmem:[#allocation2 + $0x78] sm:$0xf] %vm903_vm8, %v868_v49  ;;  %5378 = vmatmul.mubr.bf16.gmra.mxu0 %v5518_v7  ;;  %5536 = vpow2.f32 %v3896_v8  ;;  %vm4029_vm8 = vcmask 130048  }
 0x255   : > { %v1206_v13 = vpop.permute.xlu1 %1205 }
 0x256   : > { %1273 = vst.msk [vmem:[#allocation2 + $0x74] sm:$0xf] %vm1243_vm9, %v1206_v13  ;;  %v1204_v15 = vpop.permute.xlu0 %1203  ;;  %v5519_v16 = vld [vmem:[#allocation2 + $0x68] sm:$0xff]  }
 0x257   : > { %1272 = vst.msk [vmem:[#allocation2 + $0x70] sm:$0xf] %vm1243_vm9, %v1204_v15  ;;  %5382 = vmatmul.mubr.bf16.vlgmr.msra.gmra.mxu1 %v5519_v16  ;;  %v5371_v41 = vpop.f32.mrf.mxu0  ;;  %v3902_v15 = vmul.f32 1.442695, %v3861_v3 }
 0x258   : > { %5390 = vmatpush3.msra.mxu1 %v4014_v0  ;;  %v7308_v16 = vadd.f32 %v5371_v41, %v7194_v33 }
 0x259   : > { %v1210_v21 = vpop.permute.xlu1 %1209  ;;  %5391 = vmatprep.subr.mxu1 %v5619_v23  ;;  %v3741_v43 = vpop.f32.mrf.mxu0  ;;  %5538 = vpow2.f32 %v3902_v15 }
 0x25a   : > { %1275 = vst.msk [vmem:[#allocation2 + $0x7c] sm:$0xf] %vm1243_vm9, %v1210_v21  ;;  %v1208_v63 = vpop.permute.xlu0 %1207  ;;  %5392 = vmatpush3.msra.mxu1 %v4013_v18  ;;  %v7298_v49 = vadd.f32 %v7194_v33, %v3741_v43  ;;  %v3906_v21 = vmul.f32 1.442695, %v3863_v11  ;;  %5540 = vpow2.f32 %v3900_v17  ;;  %vm3834_vm1 = vcmp.gt.f32.partialorder %v7308_v16, 0.0 }
 0x25b   : > { %1274 = vst.msk [vmem:[#allocation2 + $0x78] sm:$0xf] %vm1243_vm9, %v1208_v63  ;;  %5396 = vmatprep.subr.mxu1 %v5619_v23  ;;  %v5372_v51 = vpop.f32.mrf.mxu0  ;;  %vm3826_vm9 = vcmp.gt.f32.partialorder %v7271_v55, 0.0 }
 0x25c   : > { %v7302_v12 = vadd.f32 %v5372_v51, %v7194_v33  ;;  %v3864_v18 = vmin.f32 %v7298_v49, 0.0  ;;  %5542 = vpow2.f32 %v3906_v21 }
 0x25d   : > { %v1400_v24 = vpop.permute.xlu1 %1399  ;;  %v3744_v58 = vpop.f32.mrf.mxu0 }
 0x25e   : > { %1467 = vst.msk [vmem:[#allocation2 + $0x74] sm:$0xf] %vm1437_vm10, %v1400_v24  ;;  %v1398_v25 = vpop.permute.xlu0 %1397  ;;  %v7294_v5 = vadd.f32 %v7194_v33, %v3744_v58  ;;  %v3867_v63 = vmin.f32 %v7302_v12, 0.0  ;;  %v3904_v24 = vmul.f32 1.442695, %v3862_v14  ;;  %v7327_v58 = vld [vmem:[%s7568_s3] sm:$0xff] }
 0x25f   : > { %1466 = vst.msk [vmem:[#allocation2 + $0x70] sm:$0xf] %vm1437_vm10, %v1398_v25  ;;  %v3866_v25 = vmin.f32 %v7308_v16, 0.0  ;;  %vm3835_vm0 = vcmp.gt.f32.partialorder %v7302_v12, 0.0 }
 0x260   : > { %v3865_v0 = vmin.f32 %v7294_v5, 0.0  ;;  %v3914_v29 = vmul.f32 1.442695, %v3867_v63  ;;  %5544 = vpow2.f32 %v3904_v24 }
 0x261   : > { %v1404_v27 = vpop.permute.xlu1 %1403 }
 0x262   : > { %1469 = vst.msk [vmem:[#allocation2 + $0x7c] sm:$0xf] %vm1437_vm10, %v1404_v27  ;;  %v1402_v28 = vpop.permute.xlu0 %1401  ;;  %v3910_v26 = vmul.f32 1.442695, %v3865_v0  ;;  %v3908_v27 = vmul.f32 1.442695, %v3864_v18 }
 0x263   : > { %1468 = vst.msk [vmem:[#allocation2 + $0x78] sm:$0xf] %vm1437_vm10, %v1402_v28  ;;  %vm3829_vm10 = vcmp.gt.f32.partialorder %v7276_v56, 0.0 }
 0x264   : > { %5546 = vpow2.f32 %v3910_v26 }
 0x265   : > { %v1961_v30 = vpop.permute.xlu1 %1960  ;;  %5548 = vpow2.f32 %v3908_v27 }
 0x266   : > { %2028 = vst.msk [vmem:[#allocation2 + $0x74] sm:$0xf] %vm1998_vm11, %v1961_v30  ;;  %v1959_v31 = vpop.permute.xlu0 %1958  ;;  %5550 = vpow2.f32 %v3914_v29 }
 0x267   : > { %2027 = vst.msk [vmem:[#allocation2 + $0x70] sm:$0xf] %vm1998_vm11, %v1959_v31  ;;  %v3912_v31 = vmul.f32 1.442695, %v3866_v25 }
 0x269   : > { %v1965_v35 = vpop.permute.xlu1 %1964  ;;  %5552 = vpow2.f32 %v3912_v31 }
 0x26a   : > { %2030 = vst.msk [vmem:[#allocation2 + $0x7c] sm:$0xf] %vm1998_vm11, %v1965_v35  ;;  %v1963_v38 = vpop.permute.xlu0 %1962  ;;  %v5531_v35 = vpop.eup %5530 }
 0x26b   : > { %2029 = vst.msk [vmem:[#allocation2 + $0x78] sm:$0xf] %vm1998_vm11, %v1963_v38  ;;  %v5533_v38 = vpop.eup %5532  ;;  %v5208_v40 = vadd.f32 -1.0, %v5531_v35  ;;  %vm3828_vm11 = vcmp.gt.f32.partialorder %v7280_v54, 0.0 }
 0x26d   : > { %v2298_v32 = vpop.permute.xlu1 %2297 }
 0x26e   : > { %2365 = vst.msk [vmem:[#allocation2 + $0x74] sm:$0xf] %vm2335_vm12, %v2298_v32  ;;  %v2296_v22 = vpop.permute.xlu0 %2295  ;;  %v5535_v32 = vpop.eup %5534 }
 0x26f   : > { %2364 = vst.msk [vmem:[#allocation2 + $0x70] sm:$0xf] %vm2335_vm12, %v2296_v22  ;;  %v5537_v22 = vpop.eup %5536  ;;  %v5210_v43 = vadd.f32 -1.0, %v5535_v32 }
 0x270   : > { %v5539_v41 = vpop.eup %5538  ;;  %v5209_v51 = vadd.f32 -1.0, %v5537_v22 }
 0x271   : > { %v2302_v36 = vpop.permute.xlu1 %2301 }
 0x272   : > { %2367 = vst.msk [vmem:[#allocation2 + $0x7c] sm:$0xf] %vm2335_vm12, %v2302_v36  ;;  %v2300_v42 = vpop.permute.xlu0 %2299  ;;  %v5541_v36 = vpop.eup %5540  ;;  %v3986_v6 = vsel %vm3826_vm9, %v7271_v55, %v5209_v51 }
 0x273   : > { %2366 = vst.msk [vmem:[#allocation2 + $0x78] sm:$0xf] %vm2335_vm12, %v2300_v42  ;;  %v5207_v42 = vadd.f32 -1.0, %v5533_v38  ;;  %v5211_v57 = vadd.f32 -1.0, %v5541_v36  ;;  %vm3831_vm12 = vcmp.gt.f32.partialorder %v7284_v61, 0.0 }
 0x275   : > { %v2492_v44 = vpop.permute.xlu1 %2491  ;;  %v3984_v60 = vsel %vm3824_vm6, %v7263_v48, %v5207_v42  ;;  %v3988_v11 = vsel %vm3828_vm11, %v7280_v54, %v5211_v57 }
 0x276   : > { %2559 = vst.msk [vmem:[#allocation2 + $0x74] sm:$0xf] %vm2529_vm13, %v2492_v44  ;;  %v2490_v45 = vpop.permute.xlu0 %2489  ;;  %v5543_v44 = vpop.eup %5542 }
 0x277   : > { %2558 = vst.msk [vmem:[#allocation2 + $0x70] sm:$0xf] %vm2529_vm13, %v2490_v45  ;;  %v5545_v45 = vpop.eup %5544  ;;  %v5214_v62 = vadd.f32 -1.0, %v5543_v44 }
 0x278   : > { %v5547_v37 = vpop.eup %5546  ;;  %v5213_v3 = vadd.f32 -1.0, %v5545_v45 }
 0x279   : > { %v2496_v52 = vpop.permute.xlu1 %2495  ;;  %v3991_v55 = vsel %vm3831_vm12, %v7284_v61, %v5214_v62 }
 0x27a   : > { %2561 = vst.msk [vmem:[#allocation2 + $0x7c] sm:$0xf] %vm2529_vm13, %v2496_v52  ;;  %v2494_v53 = vpop.permute.xlu0 %2493  ;;  %v3985_v52 = vsel %vm3825_vm5, %v7260_v46, %v5208_v40 }
 0x27b   : > { %2560 = vst.msk [vmem:[#allocation2 + $0x78] sm:$0xf] %vm2529_vm13, %v2494_v53  ;;  %v5212_v53 = vadd.f32 -1.0, %v5539_v41  ;;  %vm3830_vm13 = vcmp.gt.f32.partialorder %v7289_v1, 0.0 }
 0x27c   : > { %v3990_v54 = vsel %vm3830_vm13, %v7289_v1, %v5213_v3 }
 0x27d   : > { %v3053_v59 = vpop.permute.xlu1 %3052  ;;  %v3989_v9 = vsel %vm3829_vm10, %v7276_v56, %v5212_v53  ;;  %v4017_v17 = vadd.f32 %v3990_v54, %v3988_v11 }
 0x27e   : > { %3120 = vst.msk [vmem:[#allocation2 + $0x74] sm:$0xf] %vm3090_vm14, %v3053_v59  ;;  %v3051_v50 = vpop.permute.xlu0 %3050  ;;  %v5549_v59 = vpop.eup %5548  ;;  %v4018_v15 = vadd.f32 %v3991_v55, %v3989_v9 }
 0x27f   : > { %3119 = vst.msk [vmem:[#allocation2 + $0x70] sm:$0xf] %vm3090_vm14, %v3051_v50  ;;  %v3987_v50 = vsel %vm3827_vm7, %v7266_v47, %v5210_v43  ;;  %v5551_v46 = vpop.eup %5550  ;;  %v4015_v47 = vadd.f32 %v3986_v6, %v3984_v60  ;;  %v5215_v56 = vadd.f32 -1.0, %v5549_v59 }
 0x280   : > { %v4016_v2 = vadd.f32 %v3987_v50, %v3985_v52  ;;  %v5553_v48 = vpop.eup %5552  ;;  %v5218_v8 = vadd.f32 -1.0, %v5551_v46 }
 0x281   : > { %v3057_v7 = vpop.permute.xlu1 %3056  ;;  %v5217_v18 = vadd.f32 -1.0, %v5553_v48 }
 0x282   : > { %3122 = vst.msk [vmem:[#allocation2 + $0x7c] sm:$0xf] %vm3090_vm14, %v3057_v7  ;;  %v3055_v13 = vpop.permute.xlu0 %3054  ;;  %v5216_v7 = vadd.f32 -1.0, %v5547_v37 }
 0x283   : > { %3121 = vst.msk [vmem:[#allocation2 + $0x78] sm:$0xf] %vm3090_vm14, %v3055_v13  ;;  %vm3833_vm14 = vcmp.gt.f32.partialorder %v7294_v5, 0.0 }
 0x285   : > { %v3390_v20 = vpop.permute.xlu1 %3389 }
 0x286   : > { %3457 = vst.msk [vmem:[#allocation2 + $0x74] sm:$0xf] %vm3427_vm15, %v3390_v20  ;;  %v3388_v19 = vpop.permute.xlu0 %3387  ;;  %v3993_v20 = vsel %vm3833_vm14, %v7294_v5, %v5216_v7 }
 0x287   : > { %3456 = vst.msk [vmem:[#allocation2 + $0x70] sm:$0xf] %vm3427_vm15, %v3388_v19  ;;  %v3995_v19 = vsel %vm3835_vm0, %v7302_v12, %v5218_v8  ;;  %vm4707_vm0 = vsmask.f32 7938 }
 0x288   : > { %v4020_v25 = vadd.f32 %v3995_v19, %v3993_v20 }
 0x289   : > { %v3394_v28 = vpop.permute.xlu1 %3393 }
 0x28a   : > { %3459 = vst.msk [vmem:[#allocation2 + $0x7c] sm:$0xf] %vm3427_vm15, %v3394_v28  ;;  %v3392_v30 = vpop.permute.xlu0 %3391  ;;  %v3994_v28 = vsel %vm3834_vm1, %v7308_v16, %v5217_v18  ;;  %vm4712_vm1 = vcmask 1040384  }
 0x28b   : > { %3458 = vst.msk [vmem:[#allocation2 + $0x78] sm:$0xf] %vm3427_vm15, %v3392_v30  ;;  %vm3832_vm15 = vcmp.gt.f32.partialorder %v7298_v49, 0.0 }
 0x28c   : > { %v3992_v5 = vsel %vm3832_vm15, %v7298_v49, %v5215_v56 }
 0x28d   : > { %v4019_v49 = vadd.f32 %v3994_v28, %v3992_v5 }
 0x28e   : > { %v5520_v34 = vld [vmem:[#allocation2 + $0x70] sm:$0xff]  }
 0x28f   : > { %5385 = vmatprep.mubr.bf16.mxu1 %v5520_v34 }
 0x292   : > { %v5521_v39 = vld [vmem:[#allocation2 + $0x78] sm:$0xff]  }
 0x293   : > { %5386 = vmatmul.mubr.bf16.gmra.mxu1 %v5521_v39 }
 0x294   : > { %5393 = vmatprep.mubr.msk.f32.mxu1 %vm5620_vm4, %v5619_v23 }
 0x29b   : > { %v5375_v10 = vpop.f32.mrf.mxu0  ;;  %5394 = vmatmul.mubr.msk.f32.vlgmr.msra.gmra.mxu1 %vm4029_vm8, %v7327_v58 }
 0x29c   : > { %v7341_v13 = vadd.f32 %v5375_v10, %v7194_v33  ;;  %5397 = vmatpush3.msra.mxu1 %v4016_v2  ;;  %5400 = vmatprep.mubr.msk.f32.mxu1 %vm5620_vm4, %v5619_v23 }
 0x29d   : > { %5398 = vmatprep.subr.mxu1 %v5619_v23  ;;  %v3757_v14 = vpop.f32.mrf.mxu0 }
 0x29e   : > { %v3758_v0 = vadd.f32 %v7194_v33, %v3757_v14  ;;  %5399 = vmatpush3.msra.mxu1 %v4015_v47  ;;  %v3870_v21 = vmin.f32 %v7341_v13, 0.0  ;;  %vm3838_vm6 = vcmp.gt.f32.partialorder %v7341_v13, 0.0 }
 0x29f   : > { %5403 = vmatprep.subr.mxu1 %v5619_v23  ;;  %v5376_v61 = vpop.f32.mrf.mxu0  ;;  %5401 = vmatmul.mubr.msk.f32.vlgmr.msra.gmra.mxu1 %vm4029_vm8, %v7327_v58 }
 0x2a0   : > { %v3868_v1 = vmin.f32 %v3758_v0, 0.0  ;;  %v3769_v63 = vadd.f32 %v5376_v61, %v7194_v33  ;;  %5404 = vmatpush3.msra.mxu1 %v4018_v15  ;;  %5407 = vmatprep.mubr.msk.f32.mxu1 %vm5620_vm4, %v5619_v23  ;;  %v3920_v29 = vmul.f32 1.442695, %v3870_v21  ;;  %vm3836_vm2 = vcmp.gt.f32.partialorder %v3758_v0, 0.0 }
 0x2a1   : > { %5405 = vmatprep.subr.mxu1 %v5619_v23  ;;  %v3760_v24 = vpop.f32.mrf.mxu0 }
 0x2a2   : > { %v3916_v26 = vmul.f32 1.442695, %v3868_v1  ;;  %v3871_v27 = vmin.f32 %v3769_v63, 0.0  ;;  %5406 = vmatpush3.msra.mxu1 %v4017_v17  ;;  %v3761_v30 = vadd.f32 %v7194_v33, %v3760_v24  ;;  %vm3839_vm3 = vcmp.gt.f32.partialorder %v3769_v63, 0.0 }
 0x2a3   : > { %5410 = vmatprep.subr.mxu1 %v5619_v23  ;;  %5408 = vmatmul.mubr.msk.f32.vlgmr.msra.gmra.mxu1 %vm4029_vm8, %v7327_v58 }
 0x2a4   : > { %v3922_v12 = vmul.f32 1.442695, %v3871_v27  ;;  %5411 = vmatpush3.msra.mxu1 %v4020_v25  ;;  %5414 = vmatprep.mubr.msk.f32.mxu1 %vm5620_vm4, %v5619_v23  ;;  %5554 = vpow2.f32 %v3916_v26  ;;  %v3869_v31 = vmin.f32 %v3761_v30, 0.0  ;;  %vm3837_vm5 = vcmp.gt.f32.partialorder %v3761_v30, 0.0 }
 0x2a5   : > { %5412 = vmatprep.subr.mxu1 %v5619_v23 }
 0x2a6   : > { %5556 = vpow2.f32 %v3922_v12  ;;  %5413 = vmatpush3.msra.mxu1 %v4019_v49  ;;  %v3918_v16 = vmul.f32 1.442695, %v3869_v31 }
 0x2a7   : > { %5558 = vpow2.f32 %v3920_v29  ;;  %5417 = vmatprep.subr.mxu1 %v5619_v23  ;;  %5415 = vmatmul.mubr.msk.f32.vlgmr.msra.gmra.mxu1 %vm4029_vm8, %v7327_v58 }
 0x2a8   : > { %5421 = vmatprep.mubr.msk.f32.mxu1 %vm5620_vm4, %v5619_v23  ;;  %5560 = vpow2.f32 %v3918_v16 }
 0x2b1   : > { %v5555_v34 = vpop.eup %5554 }
 0x2b2   : > { %v5219_v39 = vadd.f32 -1.0, %v5555_v34 }
 0x2b3   : > { %v5557_v35 = vpop.eup %5556 }
 0x2b4   : > { %v5559_v38 = vpop.eup %5558  ;;  %v5222_v32 = vadd.f32 -1.0, %v5557_v35  ;;  %v3996_v36 = vsel %vm3836_vm2, %v3758_v0, %v5219_v39  ;;  %vm4713_vm2 = vsmask.f32 256 }
 0x2b5   : > { %v5561_v22 = vpop.eup %5560  ;;  %v5221_v40 = vadd.f32 -1.0, %v5559_v38 }
 0x2b6   : > { %v5220_v41 = vadd.f32 -1.0, %v5561_v22  ;;  %v3999_v42 = vsel %vm3839_vm3, %v3769_v63, %v5222_v32 }
 0x2b7   : > { %v3998_v45 = vsel %vm3838_vm6, %v7341_v13, %v5221_v40 }
 0x2b8   : > { %v3997_v43 = vsel %vm3837_vm5, %v3761_v30, %v5220_v41  ;;  %v4021_v51 = vadd.f32 %v3998_v45, %v3996_v36  ;;  %vm7478_vm5 = vmand %vm4712_vm1, %vm4713_vm2 }
 0x2b9   : > { %v4022_v44 = vadd.f32 %v3999_v42, %v3997_v43 }
 0x2bb   : > { %5418 = vmatpush3.msra.mxu1 %v4022_v44 }
 0x2bc   : > { %5419 = vmatprep.subr.mxu1 %v5619_v23 }
 0x2bd   : > { %5420 = vmatpush3.msra.mxu1 %v4021_v51 }
 0x2be   : > { %5424 = vmatprep.subr.mxu1 %v5619_v23  ;;  %5422 = vmatmul.mubr.msk.f32.vlgmr.msra.gmra.mxu1 %vm4029_vm8, %v7327_v58 }
 0x2bf   : > { %5428 = vmatprep.mubr.msk.f32.mxu1 %vm5620_vm4, %v5619_v23 }
 0x313   : > { %v5379_v52 = vpop.f32.mrf.mxu0 }
 0x314   : > { %v3782_v53 = vadd.f32 %v5379_v52, %v7194_v33 }
 0x315   : > { %v3773_v37 = vpop.f32.mrf.mxu0 }
 0x316   : > { %v3774_v57 = vadd.f32 %v7194_v33, %v3773_v37  ;;  %v3874_v59 = vmin.f32 %v3782_v53, 0.0  ;;  %vm3842_vm11 = vcmp.gt.f32.partialorder %v3782_v53, 0.0 }
 0x317   : > { %v5380_v60 = vpop.f32.mrf.mxu0  ;;  %v5383_v50 = vpop.f32.mrf.mxu1 }
 0x318   : > { %v3872_v62 = vmin.f32 %v3774_v57, 0.0  ;;  %v3785_v46 = vadd.f32 %v5380_v60, %v7194_v33  ;;  %v7436_v2 = vadd.f32 %v5383_v50, %v7194_v33  ;;  %v3928_v4 = vmul.f32 1.442695, %v3874_v59 }
 0x319   : > { %v3776_v3 = vpop.f32.mrf.mxu0  ;;  %v3789_v6 = vpop.f32.mrf.mxu1  ;;  %vm3840_vm7 = vcmp.gt.f32.partialorder %v3774_v57, 0.0 }
 0x31a   : > { %v3924_v9 = vmul.f32 1.442695, %v3872_v62  ;;  %v3875_v7 = vmin.f32 %v3785_v46, 0.0  ;;  %v3878_v10 = vmin.f32 %v7436_v2, 0.0  ;;  %v3777_v48 = vadd.f32 %v7194_v33, %v3776_v3 }
 0x31b   : > { %v3790_v47 = vadd.f32 %v7194_v33, %v3789_v6  ;;  %v5384_v11 = vpop.f32.mrf.mxu1  ;;  %vm3843_vm9 = vcmp.gt.f32.partialorder %v3785_v46, 0.0  ;;  %vm3846_vm15 = vcmp.gt.f32.partialorder %v7436_v2, 0.0 }
 0x31c   : > { %5562 = vpow2.f32 %v3924_v9  ;;  %v3930_v13 = vmul.f32 1.442695, %v3875_v7  ;;  %v3801_v55 = vadd.f32 %v5384_v11, %v7194_v33  ;;  %v3936_v56 = vmul.f32 1.442695, %v3878_v10 }
 0x31d   : > { %v3873_v8 = vmin.f32 %v3777_v48, 0.0  ;;  %v3792_v14 = vpop.f32.mrf.mxu1  ;;  %v3876_v54 = vmin.f32 %v3790_v47, 0.0  ;;  %vm3841_vm10 = vcmp.gt.f32.partialorder %v3777_v48, 0.0  ;;  %vm3844_vm12 = vcmp.gt.f32.partialorder %v3790_v47, 0.0 }
 0x31e   : > { %5564 = vpow2.f32 %v3930_v13  ;;  %v3879_v15 = vmin.f32 %v3801_v55, 0.0  ;;  %v3793_v17 = vadd.f32 %v7194_v33, %v3792_v14  ;;  %vm3847_vm13 = vcmp.gt.f32.partialorder %v3801_v55, 0.0  ;;  %v5251_v14 = vld [vmem:[%s7390_s6 + $0x8] sm:$0xf] }
 0x31f   : > { %5566 = vpow2.f32 %v3928_v4  ;;  %v3926_v0 = vmul.f32 1.442695, %v3873_v8  ;;  %v3932_v18 = vmul.f32 1.442695, %v3876_v54 }
 0x320   : > { %5568 = vpow2.f32 %v3936_v56  ;;  %v3938_v20 = vmul.f32 1.442695, %v3879_v15  ;;  %v3877_v21 = vmin.f32 %v3793_v17, 0.0  ;;  %vm3845_vm14 = vcmp.gt.f32.partialorder %v3793_v17, 0.0  ;;  %v5253_v15 = vld [vmem:[%s7390_s6 + $0xc] sm:$0x1] }
 0x321   : > { %5570 = vpow2.f32 %v3926_v0 }
 0x322   : > { %5572 = vpow2.f32 %v3932_v18  ;;  %v3934_v61 = vmul.f32 1.442695, %v3877_v21 }
 0x323   : > { %5574 = vpow2.f32 %v3938_v20 }
 0x324   : > { %5576 = vpow2.f32 %v3934_v61 }
 0x329   : > { %v5563_v1 = vpop.eup %5562 }
 0x32a   : > { %v5223_v19 = vadd.f32 -1.0, %v5563_v1 }
 0x32b   : > { %v5565_v63 = vpop.eup %5564 }
 0x32c   : > { %v5567_v5 = vpop.eup %5566  ;;  %v5226_v25 = vadd.f32 -1.0, %v5565_v63  ;;  %v4000_v49 = vsel %vm3840_vm7, %v3774_v57, %v5223_v19 }
 0x32d   : > { %v5569_v24 = vpop.eup %5568  ;;  %v5225_v28 = vadd.f32 -1.0, %v5567_v5 }
 0x32e   : > { %v5571_v26 = vpop.eup %5570  ;;  %v4003_v12 = vsel %vm3843_vm9, %v3785_v46, %v5226_v25  ;;  %v5229_v32 = vadd.f32 -1.0, %v5569_v24  ;;  %v5255_v24 = vld [vmem:[%s7390_s6 + $0x10] sm:$0xf]  ;;  %v5257_v25 = vld [vmem:[%s7390_s6 + $0x14] sm:$0x1] }
 0x32f   : > { %v5573_v27 = vpop.eup %5572  ;;  %v5224_v29 = vadd.f32 -1.0, %v5571_v26  ;;  %v4002_v39 = vsel %vm3842_vm11, %v3782_v53, %v5225_v28 }
 0x330   : > { %v5575_v30 = vpop.eup %5574  ;;  %v5227_v16 = vadd.f32 -1.0, %v5573_v27  ;;  %v4023_v40 = vadd.f32 %v4002_v39, %v4000_v49  ;;  %v4006_v44 = vsel %vm3846_vm15, %v7436_v2, %v5229_v32 }
 0x331   : > { %v4001_v31 = vsel %vm3841_vm10, %v3777_v48, %v5224_v29  ;;  %v5230_v34 = vadd.f32 -1.0, %v5575_v30  ;;  %v5577_v35 = vpop.eup %5576 }
 0x332   : > { %v4024_v38 = vadd.f32 %v4003_v12, %v4001_v31  ;;  %v5228_v22 = vadd.f32 -1.0, %v5577_v35  ;;  %v4004_v41 = vsel %vm3844_vm12, %v3790_v47, %v5227_v16  ;;  %v5259_v35 = vld [vmem:[%s7390_s6 + $0x18] sm:$0xf] }
 0x333   : > { %v4007_v36 = vsel %vm3847_vm13, %v3801_v55, %v5230_v34  ;;  %v4025_v45 = vadd.f32 %v4006_v44, %v4004_v41 }
 0x334   : > { %5425 = vmatpush3.msra.mxu1 %v4024_v38  ;;  %v4005_v42 = vsel %vm3845_vm14, %v3793_v17, %v5228_v22  ;;  %v5261_v38 = vld [vmem:[%s7390_s6 + $0x1c] sm:$0x1] }
 0x335   : > { %5426 = vmatprep.subr.mxu1 %v5619_v23  ;;  %v4026_v43 = vadd.f32 %v4007_v36, %v4005_v42 }
 0x336   : > { %5427 = vmatpush3.msra.mxu1 %v4023_v40 }
 0x337   : > { %5431 = vmatprep.subr.mxu1 %v5619_v23  ;;  %5429 = vmatmul.mubr.msk.f32.vlgmr.msra.gmra.mxu1 %vm4029_vm8, %v7327_v58 }
 0x338   : > { %5432 = vmatpush3.msra.mxu1 %v4026_v43  ;;  %5435 = vmatprep.mubr.msk.f32.mxu1 %vm5620_vm4, %v5619_v23 }
 0x339   : > { %5433 = vmatprep.subr.mxu1 %v5619_v23 }
 0x33a   : > { %5434 = vmatpush3.msra.mxu1 %v4025_v45 }
 0x33b   : > { %5436 = vmatmul.mubr.msk.f32.vlgmr.msra.gmra.mxu1 %vm4029_vm8, %v7327_v58  ;;  %5438 = vmatprep.subr.mxu1 %v5619_v23 }
 0x33c   : > { %5442 = vmatprep.mubr.msk.f32.mxu1 %vm5620_vm4, %v5619_v23  ;;  %vm4706_vm4 = vcmask 1043456  }
 0x33d   : > { %vm7473_vm3 = vmand %vm4706_vm4, %vm4707_vm0 }
 0x353   : > { %v5387_v51 = vpop.f32.mrf.mxu1 }
 0x354   : > { %v7458_v52 = vadd.f32 %v5387_v51, %v7194_v33 }
 0x355   : > { %v3805_v53 = vpop.f32.mrf.mxu1 }
 0x356   : > { %v7461_v37 = vadd.f32 %v7194_v33, %v3805_v53  ;;  %v3882_v57 = vmin.f32 %v7458_v52, 0.0  ;;  %vm3850_vm10 = vcmp.gt.f32.partialorder %v7458_v52, 0.0 }
 0x357   : > { %v5388_v59 = vpop.f32.mrf.mxu1 }
 0x358   : > { %v3880_v60 = vmin.f32 %v7461_v37, 0.0  ;;  %v7466_v50 = vadd.f32 %v5388_v59, %v7194_v33  ;;  %v3944_v3 = vmul.f32 1.442695, %v3882_v57  ;;  %vm3848_vm6 = vcmp.gt.f32.partialorder %v7461_v37, 0.0 }
 0x359   : > { %v3808_v62 = vpop.f32.mrf.mxu1 }
 0x35a   : > { %v3940_v46 = vmul.f32 1.442695, %v3880_v60  ;;  %v3883_v2 = vmin.f32 %v7466_v50, 0.0  ;;  %v7470_v6 = vadd.f32 %v7194_v33, %v3808_v62  ;;  %v5263_v60 = vld [vmem:[%s7390_s6 + $0x20] sm:$0xf]  ;;  %vm3851_vm7 = vcmp.gt.f32.partialorder %v7466_v50, 0.0 }
 0x35b   : > { %v4099_v9 = vpop.f32.mrf.mxu1  ;;  %v5265_v62 = vld [vmem:[%s7390_s6 + $0x24] sm:$0x1] }
 0x35c   : > { %5578 = vpow2.f32 %v3940_v46  ;;  %v3946_v7 = vmul.f32 1.442695, %v3883_v2  ;;  %v5285_v4 = vpack.c.bf16 %v4099_v9, %v4099_v9  ;;  %v3881_v10 = vmin.f32 %v7470_v6, 0.0 }
 0x35d   : > { %v5395_v48 = vpop.f32.mrf.mxu1  ;;  %vm3849_vm9 = vcmp.gt.f32.partialorder %v7470_v6, 0.0 }
 0x35e   : > { %5580 = vpow2.f32 %v3946_v7  ;;  %v4626_v47 = vshrl.u32 %v5285_v4, 16  ;;  %v4629_v11 = vshll.u32 %v5285_v4, 16  ;;  %v3942_v13 = vmul.f32 1.442695, %v3881_v10 }
 0x35f   : > { %5582 = vpow2.f32 %v3944_v3  ;;  %v4169_v33 = vpop.f32.mrf.mxu1 }
 0x360   : > { %v4628_v55 = vrot.slane %v4626_v47, 7  ;;  %v5286_v8 = vpack.c.bf16 %v4169_v33, %v4169_v33  ;;  %5584 = vpow2.f32 %v3942_v13 }
 0x361   : > { %v5402_v0 = vpop.f32.mrf.mxu1 }
 0x362   : > { %v4631_v17 = vor.u32 %v4629_v11, %v4628_v55  ;;  %v4632_v18 = vrot.slane %v4628_v55, 4  ;;  %v4634_v20 = vshrl.u32 %v5286_v8, 16  ;;  %v4637_v21 = vshll.u32 %v5286_v8, 16  ;;  %v5269_v0 = vld [vmem:[%s7390_s6 + $0x2c] sm:$0x1] }
 0x363   : > { %v4239_v61 = vpop.f32.mrf.mxu1 }
 0x364   : > { %v4710_v1 = vsel %vm7473_vm3, %v4631_v17, %v5251_v14  ;;  %v4716_v63 = vsel %vm7478_vm5, %v4632_v18, %v5253_v15  ;;  %v4636_v5 = vrot.slane %v4634_v20, 7  ;;  %v5287_v19 = vpack.c.bf16 %v4239_v61, %v4239_v61  ;;  %v5267_v15 = vld [vmem:[%s7390_s6 + $0x28] sm:$0xf] }
 0x365   : > { %5252 = vst [vmem:[%s7390_s6 + $0x8] sm:$0xf] %v4710_v1  ;;  %5254 = vst [vmem:[%s7390_s6 + $0xc] sm:$0x1] %v4716_v63  ;;  %v5409_v26 = vpop.f32.mrf.mxu1 }
 0x366   : > { %v4639_v27 = vor.u32 %v4637_v21, %v4636_v5  ;;  %v4640_v28 = vrot.slane %v4636_v5, 4  ;;  %v4642_v29 = vshrl.u32 %v5287_v19, 16  ;;  %v4645_v30 = vshll.u32 %v5287_v19, 16 }
 0x367   : > { %v4309_v49 = vpop.f32.mrf.mxu1 }
 0x368   : > { %v4719_v12 = vsel %vm7473_vm3, %v4639_v27, %v5255_v24  ;;  %v4722_v31 = vsel %vm7478_vm5, %v4640_v28, %v5257_v25  ;;  %v4644_v16 = vrot.slane %v4642_v29, 7  ;;  %v5288_v39 = vpack.c.bf16 %v4309_v49, %v4309_v49  ;;  %v5271_v24 = vld [vmem:[%s7390_s6 + $0x30] sm:$0xf]  ;;  %v5273_v25 = vld [vmem:[%s7390_s6 + $0x34] sm:$0x1] }
 0x369   : > { %v5579_v34 = vpop.eup %5578  ;;  %5256 = vst [vmem:[%s7390_s6 + $0x10] sm:$0xf] %v4719_v12  ;;  %5258 = vst [vmem:[%s7390_s6 + $0x14] sm:$0x1] %v4722_v31  ;;  %v5416_v32 = vpop.f32.mrf.mxu1 }
 0x36a   : > { %v4647_v22 = vor.u32 %v4645_v30, %v4644_v16  ;;  %v4648_v40 = vrot.slane %v4644_v16, 4  ;;  %v4650_v36 = vshrl.u32 %v5288_v39, 16  ;;  %v4653_v42 = vshll.u32 %v5288_v39, 16  ;;  %v5275_v16 = vld [vmem:[%s7390_s6 + $0x38] sm:$0xf] }
 0x36b   : > { %v5581_v41 = vpop.eup %5580  ;;  %v5231_v44 = vadd.f32 -1.0, %v5579_v34  ;;  %v5277_v34 = vld [vmem:[%s7390_s6 + $0x3c] sm:$0x1] }
 0x36c   : > { %v5583_v43 = vpop.eup %5582  ;;  %v4725_v45 = vsel %vm7473_vm3, %v4647_v22, %v5259_v35  ;;  %v4728_v51 = vsel %vm7478_vm5, %v4648_v40, %v5261_v38  ;;  %v5234_v53 = vadd.f32 -1.0, %v5581_v41  ;;  %v4652_v57 = vrot.slane %v4650_v36, 7 }
 0x36d   : > { %5260 = vst [vmem:[%s7390_s6 + $0x18] sm:$0xf] %v4725_v45  ;;  %5262 = vst [vmem:[%s7390_s6 + $0x1c] sm:$0x1] %v4728_v51  ;;  %v5585_v59 = vpop.eup %5584  ;;  %v5233_v46 = vadd.f32 -1.0, %v5583_v43  ;;  %v4008_v7 = vsel %vm3848_vm6, %v7461_v37, %v5231_v44 }
 0x36e   : > { %v5232_v2 = vadd.f32 -1.0, %v5585_v59  ;;  %v4655_v3 = vor.u32 %v4653_v42, %v4652_v57  ;;  %v4656_v9 = vrot.slane %v4652_v57, 4  ;;  %v4011_v4 = vsel %vm3851_vm7, %v7466_v50, %v5234_v53  ;;  %v5279_v44 = vld [vmem:[%s7390_s6 + $0x40] sm:$0xf]  ;;  %v5281_v45 = vld [vmem:[%s7390_s6 + $0x44] sm:$0x1] }
 0x36f   : > { %v4010_v37 = vsel %vm3850_vm10, %v7458_v52, %v5233_v46 }
 0x370   : > { %v4009_v10 = vsel %vm3849_vm9, %v7470_v6, %v5232_v2  ;;  %v4731_v48 = vsel %vm7473_vm3, %v4655_v3, %v5263_v60  ;;  %v4734_v47 = vsel %vm7478_vm5, %v4656_v9, %v5265_v62  ;;  %v4027_v13 = vadd.f32 %v4010_v37, %v4008_v7 }
 0x371   : > { %v4028_v11 = vadd.f32 %v4011_v4, %v4009_v10  ;;  %5264 = vst [vmem:[%s7390_s6 + $0x20] sm:$0xf] %v4731_v48  ;;  %5266 = vst [vmem:[%s7390_s6 + $0x24] sm:$0x1] %v4734_v47 }
 0x373   : > { %5439 = vmatpush3.msra.mxu1 %v4028_v11 }
 0x374   : > { %5440 = vmatprep.subr.mxu1 %v5619_v23 }
 0x375   : > { %5441 = vmatpush3.msra.mxu1 %v4027_v13 }
 0x376   : > { %5443 = vmatmul.mubr.msk.f32.vlgmr.msra.gmra.mxu1 %vm4029_vm8, %v7327_v58 }
 0x37e   : > { %v4379_v50 = vpop.f32.mrf.mxu1 }
 0x37f   : > { %v5289_v6 = vpack.c.bf16 %v4379_v50, %v4379_v50 }
 0x380   : > { %v5423_v33 = vpop.f32.mrf.mxu1 }
 0x381   : > { %v4658_v55 = vshrl.u32 %v5289_v6, 16  ;;  %v4661_v8 = vshll.u32 %v5289_v6, 16 }
 0x383   : > { %v4660_v14 = vrot.slane %v4658_v55, 7 }
 0x385   : > { %v4663_v52 = vor.u32 %v4661_v8, %v4660_v14  ;;  %v4664_v17 = vrot.slane %v4660_v14, 4 }
 0x387   : > { %v4737_v23 = vsel %vm7473_vm3, %v4663_v52, %v5267_v15  ;;  %v4740_v18 = vsel %vm7478_vm5, %v4664_v17, %v5269_v0 }
 0x388   : > { %5268 = vst [vmem:[%s7390_s6 + $0x28] sm:$0xf] %v4737_v23  ;;  %5270 = vst [vmem:[%s7390_s6 + $0x2c] sm:$0x1] %v4740_v18 }
 0x3f7   : > { %v4449_v58 = vpop.f32.mrf.mxu1 }
 0x3f8   : > { %v5290_v20 = vpack.c.bf16 %v4449_v58, %v4449_v58 }
 0x3f9   : > { %v5430_v21 = vpop.f32.mrf.mxu1 }
 0x3fa   : > { %v4666_v61 = vshrl.u32 %v5290_v20, 16  ;;  %v4669_v1 = vshll.u32 %v5290_v20, 16 }
 0x3fb   : > { %v4519_v63 = vpop.f32.mrf.mxu1 }
 0x3fc   : > { %v4668_v5 = vrot.slane %v4666_v61, 7  ;;  %v5291_v19 = vpack.c.bf16 %v4519_v63, %v4519_v63 }
 0x3fd   : > { %v5437_v26 = vpop.f32.mrf.mxu1 }
 0x3fe   : > { %v4671_v27 = vor.u32 %v4669_v1, %v4668_v5  ;;  %v4672_v28 = vrot.slane %v4668_v5, 4  ;;  %v4674_v29 = vshrl.u32 %v5291_v19, 16  ;;  %v4677_v30 = vshll.u32 %v5291_v19, 16 }
 0x400   : > { %v4743_v49 = vsel %vm7473_vm3, %v4671_v27, %v5271_v24  ;;  %v4746_v12 = vsel %vm7478_vm5, %v4672_v28, %v5273_v25  ;;  %v4676_v31 = vrot.slane %v4674_v29, 7 }
 0x401   : > { %5272 = vst [vmem:[%s7390_s6 + $0x30] sm:$0xf] %v4743_v49  ;;  %5274 = vst [vmem:[%s7390_s6 + $0x34] sm:$0x1] %v4746_v12 }
 0x402   : > { %v4679_v35 = vor.u32 %v4677_v30, %v4676_v31  ;;  %v4680_v38 = vrot.slane %v4676_v31, 4 }
 0x404   : > { %v4749_v39 = vsel %vm7473_vm3, %v4679_v35, %v5275_v16  ;;  %v4752_v32 = vsel %vm7478_vm5, %v4680_v38, %v5277_v34 }
 0x405   : > { %5276 = vst [vmem:[%s7390_s6 + $0x38] sm:$0xf] %v4749_v39  ;;  %5278 = vst [vmem:[%s7390_s6 + $0x3c] sm:$0x1] %v4752_v32 }
 0x436   : > { %v4589_v22 = vpop.f32.mrf.mxu1 }
 0x437   : > { %v5292_v40 = vpack.c.bf16 %v4589_v22, %v4589_v22 }
 0x438   : > { %v5444_v41 = vpop.f32.mrf.mxu1 }
 0x439   : > { %v4682_v36 = vshrl.u32 %v5292_v40, 16  ;;  %v4685_v43 = vshll.u32 %v5292_v40, 16 }
 0x43b   : > { %v4684_v42 = vrot.slane %v4682_v36, 7 }
 0x43d   : > { %v4687_v51 = vor.u32 %v4685_v43, %v4684_v42  ;;  %v4688_v53 = vrot.slane %v4684_v42, 4 }
 0x43f   : > { %v4755_v57 = vsel %vm7473_vm3, %v4687_v51, %v5279_v44  ;;  %v4758_v59 = vsel %vm7478_vm5, %v4688_v53, %v5281_v45 }
 0x440   : > { %5280 = vst [vmem:[%s7390_s6 + $0x40] sm:$0xf] %v4755_v57  ;;  %5282 = vst [vmem:[%s7390_s6 + $0x44] sm:$0x1] %v4758_v59 }
 0x441 PF: > { %s14_s17 = sadd.s32 1, %s5608_s17   ;;  %s7578_s15 = smov %s5604_s16 }
 0x442   : > { %p11_p5 = scmp.ge.s32.totalorder %s14_s17, 4   ;;  %s7579_s16 = smov %s7581_s18 }
 0x444   :  { %13 = sbr.rel (!%p11_p5) target bundleno = 2 (0x2), region = 79 }

</bundles_post_ra>
